<compile_context>
chip_gen: v7x
topology: tpu7x:2x2x1
jax: 0.10.0
libtpu: 0.0.40
codegen_flags: <defaults>
</compile_context>

<pallas_src>
import functools

import jax
import jax.numpy as jnp
import numpy as np
from jax import lax
from jax.experimental import pallas as pl
from jax.experimental.pallas import tpu as pltpu

BN_EPS = 1e-5


# ----------------------------------------------------------------------------
# Fused kernel: one batch element per grid step.
# ----------------------------------------------------------------------------
def _fused_kernel(x_ref,
                  w_stem, b_stem, w_u1, b_u1, w_u2, b_u2,
                  w_u3, b_u3, w_redir, b_redir, w_out, b_out,
                  o_ref,
                  xpad, stempad, c1pad, c2pad, pbuf,
                  *, H, W, cin, c, c2):
    h2, w2 = H // 2, W // 2
    f32 = jnp.float32
    bf16 = jnp.bfloat16

    def mxu(a, w_r):
        # bf16 operands on the MXU, f32 accumulation; epilogue stays f32.
        return jnp.dot(a.astype(bf16), w_r[...], preferred_element_type=f32)

    def pack(taps, rows, width):
        # Assemble the im2col patch (rows, len(taps)*width) in VMEM scratch so
        # a whole conv is ONE MXU matmul instead of kh*kw tiny-K dots.
        for t, tap in enumerate(taps):
            pbuf[pl.ds(0, rows), pl.ds(t * width, width)] = tap.reshape(rows, width)
        return pbuf[pl.ds(0, rows), pl.ds(0, len(taps) * width)]

    # ---------------- stem: convbn(in, c, k=3, s=1, p=1) + ReLU ---------------
    xpad[...] = jnp.zeros(xpad.shape, xpad.dtype)           # in-kernel zero pad
    xpad[pl.ds(1, H), pl.ds(1, W), :] = x_ref[0]
    taps = [xpad[pl.ds(ky, H), pl.ds(kx, W), :]
            for ky in range(3) for kx in range(3)]
    stem = jnp.maximum(mxu(pack(taps, H * W, cin), w_stem) + b_stem[...], 0.0)

    stempad[...] = jnp.zeros(stempad.shape, stempad.dtype)
    stempad[pl.ds(1, H), pl.ds(1, W), :] = stem.reshape(H, W, c)

    # ------------- Unet.conv1: convbn(c, 2c, k=3, s=2, p=1) + ReLU ------------
    # Pre-slice the 4 even/odd phases once (strided loads), then take
    # unit-stride windows per tap.
    ph = [[stempad[pl.ds(a, h2 + 1, stride=2), pl.ds(b, w2 + 1, stride=2), :]
           for b in range(2)] for a in range(2)]
    taps = [ph[ky % 2][kx % 2][ky // 2:ky // 2 + h2, kx // 2:kx // 2 + w2, :]
            for ky in range(3) for kx in range(3)]
    c1 = jnp.maximum(mxu(pack(taps, h2 * w2, c), w_u1) + b_u1[...], 0.0)

    c1pad[...] = jnp.zeros(c1pad.shape, c1pad.dtype)
    c1pad[pl.ds(1, h2), pl.ds(1, w2), :] = c1.reshape(h2, w2, c2)

    # ------------- Unet.conv2: convbn(2c, 2c, k=3, s=1, p=1) + ReLU -----------
    taps = [c1pad[pl.ds(ky, h2), pl.ds(kx, w2), :]
            for ky in range(3) for kx in range(3)]
    c2v = jnp.maximum(mxu(pack(taps, h2 * w2, c2), w_u2) + b_u2[...], 0.0)

    # ---- Unet.conv3: ConvTranspose2d(2c, c, 3, s=2, p=1, op=1) + BN ----------
    # Polyphase: one block matmul over the 4 shifted taps gives all 4 output
    # phases; no zero-dilated buffer and ~4x fewer MACs than the direct form.
    c2pad[...] = jnp.zeros(c2pad.shape, c2pad.dtype)
    c2pad[pl.ds(0, h2), pl.ds(0, w2), :] = c2v.reshape(h2, w2, c2)
    shifts = [c2pad[pl.ds(dy, h2), pl.ds(dx, w2), :]       # x[m+dy, n+dx]
              for dy in range(2) for dx in range(2)]
    up_all = mxu(pack(shifts, h2 * w2, c2), w_u3)           # (h2*w2, 4*c)

    # ---- redir (1x1 convbn + ReLU), residual add, ReLU, conv_out (1x1+bias) --
    # All pointwise in space -> evaluate per output phase; each phase is stored
    # as a contiguous (h2*w2, c) block (the wrapper interleaves phases).
    for p_idx, (a, b) in enumerate(((0, 0), (0, 1), (1, 0), (1, 1))):
        up_ab = up_all[:, p_idx * c:(p_idx + 1) * c] + b_u3[...]
        stem_ab = stempad[pl.ds(1 + a, h2, stride=2),
                          pl.ds(1 + b, w2, stride=2), :].reshape(h2 * w2, c)
        redir_ab = jnp.maximum(mxu(stem_ab, w_redir) + b_redir[...], 0.0)
        merged = jnp.maximum(up_ab + redir_ab, 0.0)
        o_ref[0, p_idx] = mxu(merged, w_out) + b_out[...]


def _const_spec(shape):
    return pl.BlockSpec(tuple(shape), lambda n: (0,) * len(shape))


# ----------------------------------------------------------------------------
# Parameter preparation: fold BN into weights, reshape for im2col, cast bf16.
# ----------------------------------------------------------------------------
def prepare_params(p, dtype=jnp.bfloat16):
    def fold(prefix):
        scale = p[prefix + '_gamma'] / jnp.sqrt(1.0 + BN_EPS)   # eval-mode BN
        return scale, p[prefix + '_beta'].reshape(1, -1).astype(jnp.float32)

    def conv_w(w_hwio, scale):
        kh, kw, ci, co = w_hwio.shape
        return (w_hwio * scale[None, None, None, :]).reshape(kh * kw * ci, co).astype(dtype)

    q = {}
    s, q['stem_b'] = fold('stem');   q['stem_w'] = conv_w(p['stem_w'], s)
    s, q['u1_b'] = fold('u1');       q['u1_w'] = conv_w(p['u1_w'], s)
    s, q['u2_b'] = fold('u2');       q['u2_w'] = conv_w(p['u2_w'], s)
    s, q['redir_b'] = fold('redir'); q['redir_w'] = conv_w(p['redir_w'], s)

    # ConvTranspose2d weight (Cin, Cout, kH, kW): BN-fold over Cout, flip
    # spatially to get the equivalent direct-conv taps, then pack the polyphase
    # block matrix: rows [x00|x01|x10|x11] -> cols [ee|eo|oe|oo].
    s, q['u3_b'] = fold('u3')
    wt = p['u3_w'] * s[None, :, None, None]
    wc = wt[:, :, ::-1, ::-1]                      # wc[:, :, ky, kx] = direct-conv tap
    t = lambda ky, kx: wc[:, :, ky, kx]            # (Cin, Cout)
    c2_, c_ = wt.shape[0], wt.shape[1]
    z = jnp.zeros((c2_, c_), jnp.float32)
    q['u3_w'] = jnp.concatenate([
        jnp.concatenate([t(1, 1), t(1, 0), t(0, 1), t(0, 0)], axis=1),   # x[m,   n  ]
        jnp.concatenate([z,       t(1, 2), z,       t(0, 2)], axis=1),   # x[m,   n+1]
        jnp.concatenate([z,       z,       t(2, 1), t(2, 0)], axis=1),   # x[m+1, n  ]
        jnp.concatenate([z,       z,       z,       t(2, 2)], axis=1),   # x[m+1, n+1]
    ], axis=0).astype(dtype)

    q['out_w'] = p['out_w'].reshape(p['out_w'].shape[2], p['out_w'].shape[3]).astype(dtype)
    q['out_b'] = p['out_b'].reshape(1, -1).astype(jnp.float32)
    return q


# ----------------------------------------------------------------------------
# Public entry point: NCHW in / NCHW out, one fused pallas_call.
# ----------------------------------------------------------------------------
@jax.jit
def stereo_volume_encoder(x_nchw, params):
    n, cin, H, W = x_nchw.shape
    assert H % 2 == 0 and W % 2 == 0
    c = params['stem_w'].shape[-1]
    c2 = 2 * c
    h2, w2 = H // 2, W // 2

    q = prepare_params(params)
    x_nhwc = jnp.transpose(x_nchw, (0, 2, 3, 1)).astype(jnp.float32)

    names = ['stem_w', 'stem_b', 'u1_w', 'u1_b', 'u2_w', 'u2_b',
             'u3_w', 'u3_b', 'redir_w', 'redir_b', 'out_w', 'out_b']
    weights = [q[k] for k in names]

    kernel = functools.partial(_fused_kernel, H=H, W=W, cin=cin, c=c, c2=c2)

    in_specs = [pl.BlockSpec((1, H, W, cin), lambda nn: (nn, 0, 0, 0))]
    in_specs += [_const_spec(w.shape) for w in weights]

    out = pl.pallas_call(
        kernel,
        out_shape=jax.ShapeDtypeStruct((n, 4, h2 * w2, c), jnp.float32),
        grid_spec=pltpu.PrefetchScalarGridSpec(
            num_scalar_prefetch=0,
            grid=(n,),
            in_specs=in_specs,
            out_specs=pl.BlockSpec((1, 4, h2 * w2, c), lambda nn: (nn, 0, 0, 0)),
            scratch_shapes=[
                pltpu.VMEM((H + 2, W + 2, cin), jnp.float32),   # padded input
                pltpu.VMEM((H + 2, W + 2, c), jnp.float32),     # padded stem
                pltpu.VMEM((h2 + 2, w2 + 2, c2), jnp.float32),  # padded conv1
                pltpu.VMEM((h2 + 1, w2 + 1, c2), jnp.float32),  # conv2 (+1 zero edge)
                pltpu.VMEM((H * W, 9 * c2), jnp.float32),       # im2col patch buffer
            ]),
        compiler_params=pltpu.CompilerParams(
            dimension_semantics=("parallel",)),
    )(x_nhwc, *weights)

    # Interleave output phases: (N, 2a+b, h2*w2, C) -> NCHW.
    out = out.reshape(n, 2, 2, h2, w2, c)
    out = jnp.transpose(out, (0, 5, 3, 1, 4, 2)).reshape(n, c, H, W)
    return out


# ----------------------------------------------------------------------------
# Deterministic synthetic parameters.
# ----------------------------------------------------------------------------
def init_params(key, in_channels, out_channels):
    c, c2 = out_channels, 2 * out_channels
    ks = jax.random.split(key, 16)

    def w(k, shape, fan_in):
        return jax.random.normal(k, shape, jnp.float32) / np.sqrt(fan_in)

    def bn(kg, kb, ch):
        gamma = 1.0 + 0.1 * jax.random.normal(kg, (ch,), jnp.float32)
        beta = 0.1 * jax.random.normal(kb, (ch,), jnp.float32)
        return gamma, beta

    p = {}
    p['stem_w'] = w(ks[0], (3, 3, in_channels, c), 9 * in_channels)        # HWIO
    p['stem_gamma'], p['stem_beta'] = bn(ks[1], ks[2], c)
    p['u1_w'] = w(ks[3], (3, 3, c, c2), 9 * c)
    p['u1_gamma'], p['u1_beta'] = bn(ks[4], ks[5], c2)
    p['u2_w'] = w(ks[6], (3, 3, c2, c2), 9 * c2)
    p['u2_gamma'], p['u2_beta'] = bn(ks[7], ks[8], c2)
    p['u3_w'] = w(ks[9], (c2, c, 3, 3), 9 * c2)     # ConvTranspose2d (Cin,Cout,kH,kW)
    p['u3_gamma'], p['u3_beta'] = bn(ks[10], ks[11], c)
    p['redir_w'] = w(ks[12], (1, 1, c, c), c)
    p['redir_gamma'], p['redir_beta'] = bn(ks[13], ks[14], c)
    p['out_w'] = w(ks[15], (1, 1, c, c), c)
    p['out_b'] = 0.1 * jnp.ones((c,), jnp.float32)
    return p


# ----------------------------------------------------------------------------
# Pure-JAX (XLA conv) reference with matching bf16 operand rounding.
# ----------------------------------------------------------------------------
def _conv_ref(x, w, stride, pad):
    return lax.conv_general_dilated(
        x.astype(jnp.bfloat16), w.astype(jnp.bfloat16),
        (stride, stride), [(pad, pad), (pad, pad)],
        dimension_numbers=('NHWC', 'HWIO', 'NHWC'),
        preferred_element_type=jnp.float32)


def reference_forward(x_nchw, p):
    def fold(prefix):
        scale = p[prefix + '_gamma'] / jnp.sqrt(1.0 + BN_EPS)
        return scale, p[prefix + '_beta']

    def foldw(w_hwio, scale):
        return (w_hwio * scale[None, None, None, :]).astype(jnp.bfloat16).astype(jnp.float32)

    x = jnp.transpose(x_nchw, (0, 2, 3, 1)).astype(jnp.float32)
    s, b = fold('stem')
    stem = jnp.maximum(_conv_ref(x, foldw(p['stem_w'], s), 1, 1) + b, 0.0)
    s, b = fold('u1')
    c1 = jnp.maximum(_conv_ref(stem, foldw(p['u1_w'], s), 2, 1) + b, 0.0)
    s, b = fold('u2')
    c2 = jnp.maximum(_conv_ref(c1, foldw(p['u2_w'], s), 1, 1) + b, 0.0)
    s, b = fold('redir')
    redir = jnp.maximum(_conv_ref(stem, foldw(p['redir_w'], s), 1, 0) + b, 0.0)

    s, b = fold('u3')
    wt = (p['u3_w'] * s[None, :, None, None]).astype(jnp.bfloat16).astype(jnp.float32)
    w_conv = jnp.transpose(wt[:, :, ::-1, ::-1], (2, 3, 0, 1))   # HWIO for direct conv
    d = lax.conv_general_dilated(
        c2.astype(jnp.bfloat16), w_conv.astype(jnp.bfloat16), (1, 1),
        [(1, 2), (1, 2)], lhs_dilation=(2, 2),
        dimension_numbers=('NHWC', 'HWIO', 'NHWC'),
        preferred_element_type=jnp.float32)
    up = jnp.maximum(d + b + redir, 0.0)

    out = _conv_ref(up, p['out_w'], 1, 0) + p['out_b']
    return jnp.transpose(out, (0, 3, 1, 2))


if __name__ == "__main__":
    key = jax.random.PRNGKey(0)
    k_x, k_p = jax.random.split(key)

    N, C_IN, C_OUT, H, W = 2, 4, 8, 16, 16
    x = jax.random.normal(k_x, (N, C_IN, H, W), jnp.float32)
    params = init_params(k_p, C_IN, C_OUT)

    out = jax.block_until_ready(stereo_volume_encoder(x, params))
    assert out.shape == (N, C_OUT, H, W), out.shape

    ref = jax.block_until_ready(reference_forward(x, params))
    # bf16 MXU operands (f32 accumulation) in both paths -> 1e-2 tolerance.
    np.testing.assert_allclose(np.asarray(out), np.asarray(ref),
                               rtol=1e-2, atol=1e-2)
    print("KERNEL_OK")
</pallas_src>

<mosaic_0001>
module attributes {stable_mosaic.version = 11 : i64} {
  func.func @_fused_kernel(%arg0: i32, %arg1: memref<1x16x16x4xf32, #tpu.memory_space<vmem>>, %arg2: memref<36x8xbf16, #tpu.memory_space<vmem>>, %arg3: memref<1x8xf32, #tpu.memory_space<vmem>>, %arg4: memref<72x16xbf16, #tpu.memory_space<vmem>>, %arg5: memref<1x16xf32, #tpu.memory_space<vmem>>, %arg6: memref<144x16xbf16, #tpu.memory_space<vmem>>, %arg7: memref<1x16xf32, #tpu.memory_space<vmem>>, %arg8: memref<64x32xbf16, #tpu.memory_space<vmem>>, %arg9: memref<1x8xf32, #tpu.memory_space<vmem>>, %arg10: memref<8x8xbf16, #tpu.memory_space<vmem>>, %arg11: memref<1x8xf32, #tpu.memory_space<vmem>>, %arg12: memref<8x8xbf16, #tpu.memory_space<vmem>>, %arg13: memref<1x8xf32, #tpu.memory_space<vmem>>, %arg14: memref<1x4x64x8xf32, #tpu.memory_space<vmem>>, %arg15: memref<18x18x4xf32, #tpu.memory_space<vmem>>, %arg16: memref<18x18x8xf32, #tpu.memory_space<vmem>>, %arg17: memref<10x10x16xf32, #tpu.memory_space<vmem>>, %arg18: memref<9x9x16xf32, #tpu.memory_space<vmem>>, %arg19: memref<256x144xf32, #tpu.memory_space<vmem>>) attributes {dimension_semantics = [#tpu.dimension_semantics<parallel>], iteration_bounds = array<i64: 2>, scalar_prefetch = 0 : i64, scratch_operands = 5 : i64, tpu.core_type = #tpu.core_type<tc>, window_params = [{transform_indices = @transform_0, window_bounds = array<i64: 1, 16, 16, 4>}, {pipeline_mode = #tpu.pipeline_mode<synchronous>, transform_indices = @transform_1, window_bounds = array<i64: 36, 8>}, {pipeline_mode = #tpu.pipeline_mode<synchronous>, transform_indices = @transform_2, window_bounds = array<i64: 1, 8>}, {pipeline_mode = #tpu.pipeline_mode<synchronous>, transform_indices = @transform_3, window_bounds = array<i64: 72, 16>}, {pipeline_mode = #tpu.pipeline_mode<synchronous>, transform_indices = @transform_4, window_bounds = array<i64: 1, 16>}, {pipeline_mode = #tpu.pipeline_mode<synchronous>, transform_indices = @transform_5, window_bounds = array<i64: 144, 16>}, {pipeline_mode = #tpu.pipeline_mode<synchronous>, transform_indices = @transform_6, window_bounds = array<i64: 1, 16>}, {pipeline_mode = #tpu.pipeline_mode<synchronous>, transform_indices = @transform_7, window_bounds = array<i64: 64, 32>}, {pipeline_mode = #tpu.pipeline_mode<synchronous>, transform_indices = @transform_8, window_bounds = array<i64: 1, 8>}, {pipeline_mode = #tpu.pipeline_mode<synchronous>, transform_indices = @transform_9, window_bounds = array<i64: 8, 8>}, {pipeline_mode = #tpu.pipeline_mode<synchronous>, transform_indices = @transform_10, window_bounds = array<i64: 1, 8>}, {pipeline_mode = #tpu.pipeline_mode<synchronous>, transform_indices = @transform_11, window_bounds = array<i64: 8, 8>}, {pipeline_mode = #tpu.pipeline_mode<synchronous>, transform_indices = @transform_12, window_bounds = array<i64: 1, 8>}, {transform_indices = @transform_13, window_bounds = array<i64: 1, 4, 64, 8>}]} {
    %cst = arith.constant 0.000000e+00 : f32
    %0 = vector.broadcast %cst : f32 to vector<18x18x4xf32>
    %c0 = arith.constant 0 : index
    %c0_0 = arith.constant 0 : index
    %c0_1 = arith.constant 0 : index
    %1 = vector.load %arg15[%c0, %c0_0, %c0_1] : memref<18x18x4xf32, #tpu.memory_space<vmem>>, vector<18x18x4xf32>
    tpu.vector_store %arg15[%c0, %c0_0, %c0_1], %0 {strides = array<i32>} : memref<18x18x4xf32, #tpu.memory_space<vmem>>, vector<18x18x4xf32>,
    %c0_2 = arith.constant 0 : index
    %c0_3 = arith.constant 0 : index
    %c0_4 = arith.constant 0 : index
    %c0_5 = arith.constant 0 : index
    %2 = vector.load %arg1[%c0_2, %c0_3, %c0_4, %c0_5] : memref<1x16x16x4xf32, #tpu.memory_space<vmem>>, vector<1x16x16x4xf32>
    %3 = vector.shape_cast %2 : vector<1x16x16x4xf32> to vector<16x16x4xf32>
    %c1 = arith.constant 1 : index
    %c1_6 = arith.constant 1 : index
    %c0_7 = arith.constant 0 : index
    %4 = vector.load %arg15[%c1, %c1_6, %c0_7] : memref<18x18x4xf32, #tpu.memory_space<vmem>>, vector<16x16x4xf32>
    tpu.vector_store %arg15[%c1, %c1_6, %c0_7], %3 {strides = array<i32>} : memref<18x18x4xf32, #tpu.memory_space<vmem>>, vector<16x16x4xf32>,
    %c0_8 = arith.constant 0 : index
    %c0_9 = arith.constant 0 : index
    %c0_10 = arith.constant 0 : index
    %5 = vector.load %arg15[%c0_8, %c0_9, %c0_10] : memref<18x18x4xf32, #tpu.memory_space<vmem>>, vector<16x16x4xf32>
    %c0_11 = arith.constant 0 : index
    %c1_12 = arith.constant 1 : index
    %c0_13 = arith.constant 0 : index
    %6 = vector.load %arg15[%c0_11, %c1_12, %c0_13] : memref<18x18x4xf32, #tpu.memory_space<vmem>>, vector<16x16x4xf32>
    %c0_14 = arith.constant 0 : index
    %c2 = arith.constant 2 : index
    %c0_15 = arith.constant 0 : index
    %7 = vector.load %arg15[%c0_14, %c2, %c0_15] : memref<18x18x4xf32, #tpu.memory_space<vmem>>, vector<16x16x4xf32>
    %c1_16 = arith.constant 1 : index
    %c0_17 = arith.constant 0 : index
    %c0_18 = arith.constant 0 : index
    %8 = vector.load %arg15[%c1_16, %c0_17, %c0_18] : memref<18x18x4xf32, #tpu.memory_space<vmem>>, vector<16x16x4xf32>
    %c1_19 = arith.constant 1 : index
    %c1_20 = arith.constant 1 : index
    %c0_21 = arith.constant 0 : index
    %9 = vector.load %arg15[%c1_19, %c1_20, %c0_21] : memref<18x18x4xf32, #tpu.memory_space<vmem>>, vector<16x16x4xf32>
    %c1_22 = arith.constant 1 : index
    %c2_23 = arith.constant 2 : index
    %c0_24 = arith.constant 0 : index
    %10 = vector.load %arg15[%c1_22, %c2_23, %c0_24] : memref<18x18x4xf32, #tpu.memory_space<vmem>>, vector<16x16x4xf32>
    %c2_25 = arith.constant 2 : index
    %c0_26 = arith.constant 0 : index
    %c0_27 = arith.constant 0 : index
    %11 = vector.load %arg15[%c2_25, %c0_26, %c0_27] : memref<18x18x4xf32, #tpu.memory_space<vmem>>, vector<16x16x4xf32>
    %c2_28 = arith.constant 2 : index
    %c1_29 = arith.constant 1 : index
    %c0_30 = arith.constant 0 : index
    %12 = vector.load %arg15[%c2_28, %c1_29, %c0_30] : memref<18x18x4xf32, #tpu.memory_space<vmem>>, vector<16x16x4xf32>
    %c2_31 = arith.constant 2 : index
    %c2_32 = arith.constant 2 : index
    %c0_33 = arith.constant 0 : index
    %13 = vector.load %arg15[%c2_31, %c2_32, %c0_33] : memref<18x18x4xf32, #tpu.memory_space<vmem>>, vector<16x16x4xf32>
    %14 = vector.shape_cast %5 : vector<16x16x4xf32> to vector<256x4xf32>
    %c0_34 = arith.constant 0 : index
    %c0_35 = arith.constant 0 : index
    %15 = vector.load %arg19[%c0_34, %c0_35] : memref<256x144xf32, #tpu.memory_space<vmem>>, vector<256x4xf32>
    tpu.vector_store %arg19[%c0_34, %c0_35], %14 {strides = array<i32>} : memref<256x144xf32, #tpu.memory_space<vmem>>, vector<256x4xf32>,
    %16 = vector.shape_cast %6 : vector<16x16x4xf32> to vector<256x4xf32>
    %c0_36 = arith.constant 0 : index
    %c4 = arith.constant 4 : index
    %17 = vector.load %arg19[%c0_36, %c4] : memref<256x144xf32, #tpu.memory_space<vmem>>, vector<256x4xf32>
    tpu.vector_store %arg19[%c0_36, %c4], %16 {strides = array<i32>} : memref<256x144xf32, #tpu.memory_space<vmem>>, vector<256x4xf32>,
    %18 = vector.shape_cast %7 : vector<16x16x4xf32> to vector<256x4xf32>
    %c0_37 = arith.constant 0 : index
    %c8 = arith.constant 8 : index
    %19 = vector.load %arg19[%c0_37, %c8] : memref<256x144xf32, #tpu.memory_space<vmem>>, vector<256x4xf32>
    tpu.vector_store %arg19[%c0_37, %c8], %18 {strides = array<i32>} : memref<256x144xf32, #tpu.memory_space<vmem>>, vector<256x4xf32>,
    %20 = vector.shape_cast %8 : vector<16x16x4xf32> to vector<256x4xf32>
    %c0_38 = arith.constant 0 : index
    %c12 = arith.constant 12 : index
    %21 = vector.load %arg19[%c0_38, %c12] : memref<256x144xf32, #tpu.memory_space<vmem>>, vector<256x4xf32>
    tpu.vector_store %arg19[%c0_38, %c12], %20 {strides = array<i32>} : memref<256x144xf32, #tpu.memory_space<vmem>>, vector<256x4xf32>,
    %22 = vector.shape_cast %9 : vector<16x16x4xf32> to vector<256x4xf32>
    %c0_39 = arith.constant 0 : index
    %c16 = arith.constant 16 : index
    %23 = vector.load %arg19[%c0_39, %c16] : memref<256x144xf32, #tpu.memory_space<vmem>>, vector<256x4xf32>
    tpu.vector_store %arg19[%c0_39, %c16], %22 {strides = array<i32>} : memref<256x144xf32, #tpu.memory_space<vmem>>, vector<256x4xf32>,
    %24 = vector.shape_cast %10 : vector<16x16x4xf32> to vector<256x4xf32>
    %c0_40 = arith.constant 0 : index
    %c20 = arith.constant 20 : index
    %25 = vector.load %arg19[%c0_40, %c20] : memref<256x144xf32, #tpu.memory_space<vmem>>, vector<256x4xf32>
    tpu.vector_store %arg19[%c0_40, %c20], %24 {strides = array<i32>} : memref<256x144xf32, #tpu.memory_space<vmem>>, vector<256x4xf32>,
    %26 = vector.shape_cast %11 : vector<16x16x4xf32> to vector<256x4xf32>
    %c0_41 = arith.constant 0 : index
    %c24 = arith.constant 24 : index
    %27 = vector.load %arg19[%c0_41, %c24] : memref<256x144xf32, #tpu.memory_space<vmem>>, vector<256x4xf32>
    tpu.vector_store %arg19[%c0_41, %c24], %26 {strides = array<i32>} : memref<256x144xf32, #tpu.memory_space<vmem>>, vector<256x4xf32>,
    %28 = vector.shape_cast %12 : vector<16x16x4xf32> to vector<256x4xf32>
    %c0_42 = arith.constant 0 : index
    %c28 = arith.constant 28 : index
    %29 = vector.load %arg19[%c0_42, %c28] : memref<256x144xf32, #tpu.memory_space<vmem>>, vector<256x4xf32>
    tpu.vector_store %arg19[%c0_42, %c28], %28 {strides = array<i32>} : memref<256x144xf32, #tpu.memory_space<vmem>>, vector<256x4xf32>,
    %30 = vector.shape_cast %13 : vector<16x16x4xf32> to vector<256x4xf32>
    %c0_43 = arith.constant 0 : index
    %c32 = arith.constant 32 : index
    %31 = vector.load %arg19[%c0_43, %c32] : memref<256x144xf32, #tpu.memory_space<vmem>>, vector<256x4xf32>
    tpu.vector_store %arg19[%c0_43, %c32], %30 {strides = array<i32>} : memref<256x144xf32, #tpu.memory_space<vmem>>, vector<256x4xf32>,
    %c0_44 = arith.constant 0 : index
    %c0_45 = arith.constant 0 : index
    %32 = vector.load %arg19[%c0_44, %c0_45] : memref<256x144xf32, #tpu.memory_space<vmem>>, vector<256x36xf32>
    %33 = arith.truncf %32 : vector<256x36xf32> to vector<256x36xbf16>
    %c0_46 = arith.constant 0 : index
    %c0_47 = arith.constant 0 : index
    %34 = vector.load %arg2[%c0_46, %c0_47] : memref<36x8xbf16, #tpu.memory_space<vmem>>, vector<36x8xbf16>
    %cst_48 = arith.constant dense<0.000000e+00> : vector<256x8xf32>
    %35 = tpu.matmul %33, %34, %cst_48 {dimension_numbers = #tpu.dot_dimension_numbers<[1], [0], [0], [1], [0, 0, 1, 1], [], []>} : vector<256x36xbf16>, vector<36x8xbf16>, vector<256x8xf32> -> vector<256x8xf32>
    %c0_49 = arith.constant 0 : index
    %c0_50 = arith.constant 0 : index
    %36 = vector.load %arg3[%c0_49, %c0_50] : memref<1x8xf32, #tpu.memory_space<vmem>>, vector<1x8xf32>
    %37 = vector.broadcast %36 : vector<1x8xf32> to vector<256x8xf32>
    %38 = arith.addf %35, %37 : vector<256x8xf32>
    %cst_51 = arith.constant 0.000000e+00 : f32
    %39 = vector.broadcast %cst_51 : f32 to vector<256x8xf32>
    %40 = arith.maximumf %38, %39 : vector<256x8xf32>
    %cst_52 = arith.constant 0.000000e+00 : f32
    %41 = vector.broadcast %cst_52 : f32 to vector<18x18x8xf32>
    %c0_53 = arith.constant 0 : index
    %c0_54 = arith.constant 0 : index
    %c0_55 = arith.constant 0 : index
    %42 = vector.load %arg16[%c0_53, %c0_54, %c0_55] : memref<18x18x8xf32, #tpu.memory_space<vmem>>, vector<18x18x8xf32>
    tpu.vector_store %arg16[%c0_53, %c0_54, %c0_55], %41 {strides = array<i32>} : memref<18x18x8xf32, #tpu.memory_space<vmem>>, vector<18x18x8xf32>,
    %43 = vector.shape_cast %40 : vector<256x8xf32> to vector<16x16x8xf32>
    %c1_56 = arith.constant 1 : index
    %c1_57 = arith.constant 1 : index
    %c0_58 = arith.constant 0 : index
    %44 = vector.load %arg16[%c1_56, %c1_57, %c0_58] : memref<18x18x8xf32, #tpu.memory_space<vmem>>, vector<16x16x8xf32>
    tpu.vector_store %arg16[%c1_56, %c1_57, %c0_58], %43 {strides = array<i32>} : memref<18x18x8xf32, #tpu.memory_space<vmem>>, vector<16x16x8xf32>,
    %c0_59 = arith.constant 0 : index
    %c0_60 = arith.constant 0 : index
    %c0_61 = arith.constant 0 : index
    %45 = tpu.strided_load %arg16[%c0_59, %c0_60, %c0_61] {strides = array<i32: 2, 2, 1>} : memref<18x18x8xf32, #tpu.memory_space<vmem>>, vector<9x9x8xf32>
    %c0_62 = arith.constant 0 : index
    %c1_63 = arith.constant 1 : index
    %c0_64 = arith.constant 0 : index
    %46 = tpu.strided_load %arg16[%c0_62, %c1_63, %c0_64] {strides = array<i32: 2, 2, 1>} : memref<18x18x8xf32, #tpu.memory_space<vmem>>, vector<9x9x8xf32>
    %c1_65 = arith.constant 1 : index
    %c0_66 = arith.constant 0 : index
    %c0_67 = arith.constant 0 : index
    %47 = tpu.strided_load %arg16[%c1_65, %c0_66, %c0_67] {strides = array<i32: 2, 2, 1>} : memref<18x18x8xf32, #tpu.memory_space<vmem>>, vector<9x9x8xf32>
    %c1_68 = arith.constant 1 : index
    %c1_69 = arith.constant 1 : index
    %c0_70 = arith.constant 0 : index
    %48 = tpu.strided_load %arg16[%c1_68, %c1_69, %c0_70] {strides = array<i32: 2, 2, 1>} : memref<18x18x8xf32, #tpu.memory_space<vmem>>, vector<9x9x8xf32>
    %49 = vector.extract_strided_slice %45 {offsets = [0, 0, 0], sizes = [8, 8, 8], strides = [1, 1, 1]} : vector<9x9x8xf32> to vector<8x8x8xf32>
    %50 = vector.extract_strided_slice %46 {offsets = [0, 0, 0], sizes = [8, 8, 8], strides = [1, 1, 1]} : vector<9x9x8xf32> to vector<8x8x8xf32>
    %51 = vector.extract_strided_slice %45 {offsets = [0, 1, 0], sizes = [8, 8, 8], strides = [1, 1, 1]} : vector<9x9x8xf32> to vector<8x8x8xf32>
    %52 = vector.extract_strided_slice %47 {offsets = [0, 0, 0], sizes = [8, 8, 8], strides = [1, 1, 1]} : vector<9x9x8xf32> to vector<8x8x8xf32>
    %53 = vector.extract_strided_slice %48 {offsets = [0, 0, 0], sizes = [8, 8, 8], strides = [1, 1, 1]} : vector<9x9x8xf32> to vector<8x8x8xf32>
    %54 = vector.extract_strided_slice %47 {offsets = [0, 1, 0], sizes = [8, 8, 8], strides = [1, 1, 1]} : vector<9x9x8xf32> to vector<8x8x8xf32>
    %55 = vector.extract_strided_slice %45 {offsets = [1, 0, 0], sizes = [8, 8, 8], strides = [1, 1, 1]} : vector<9x9x8xf32> to vector<8x8x8xf32>
    %56 = vector.extract_strided_slice %46 {offsets = [1, 0, 0], sizes = [8, 8, 8], strides = [1, 1, 1]} : vector<9x9x8xf32> to vector<8x8x8xf32>
    %57 = vector.extract_strided_slice %45 {offsets = [1, 1, 0], sizes = [8, 8, 8], strides = [1, 1, 1]} : vector<9x9x8xf32> to vector<8x8x8xf32>
    %58 = vector.shape_cast %49 : vector<8x8x8xf32> to vector<64x8xf32>
    %c0_71 = arith.constant 0 : index
    %c0_72 = arith.constant 0 : index
    %59 = vector.load %arg19[%c0_71, %c0_72] : memref<256x144xf32, #tpu.memory_space<vmem>>, vector<64x8xf32>
    tpu.vector_store %arg19[%c0_71, %c0_72], %58 {strides = array<i32>} : memref<256x144xf32, #tpu.memory_space<vmem>>, vector<64x8xf32>,
    %60 = vector.shape_cast %50 : vector<8x8x8xf32> to vector<64x8xf32>
    %c0_73 = arith.constant 0 : index
    %c8_74 = arith.constant 8 : index
    %61 = vector.load %arg19[%c0_73, %c8_74] : memref<256x144xf32, #tpu.memory_space<vmem>>, vector<64x8xf32>
    tpu.vector_store %arg19[%c0_73, %c8_74], %60 {strides = array<i32>} : memref<256x144xf32, #tpu.memory_space<vmem>>, vector<64x8xf32>,
    %62 = vector.shape_cast %51 : vector<8x8x8xf32> to vector<64x8xf32>
    %c0_75 = arith.constant 0 : index
    %c16_76 = arith.constant 16 : index
    %63 = vector.load %arg19[%c0_75, %c16_76] : memref<256x144xf32, #tpu.memory_space<vmem>>, vector<64x8xf32>
    tpu.vector_store %arg19[%c0_75, %c16_76], %62 {strides = array<i32>} : memref<256x144xf32, #tpu.memory_space<vmem>>, vector<64x8xf32>,
    %64 = vector.shape_cast %52 : vector<8x8x8xf32> to vector<64x8xf32>
    %c0_77 = arith.constant 0 : index
    %c24_78 = arith.constant 24 : index
    %65 = vector.load %arg19[%c0_77, %c24_78] : memref<256x144xf32, #tpu.memory_space<vmem>>, vector<64x8xf32>
    tpu.vector_store %arg19[%c0_77, %c24_78], %64 {strides = array<i32>} : memref<256x144xf32, #tpu.memory_space<vmem>>, vector<64x8xf32>,
    %66 = vector.shape_cast %53 : vector<8x8x8xf32> to vector<64x8xf32>
    %c0_79 = arith.constant 0 : index
    %c32_80 = arith.constant 32 : index
    %67 = vector.load %arg19[%c0_79, %c32_80] : memref<256x144xf32, #tpu.memory_space<vmem>>, vector<64x8xf32>
    tpu.vector_store %arg19[%c0_79, %c32_80], %66 {strides = array<i32>} : memref<256x144xf32, #tpu.memory_space<vmem>>, vector<64x8xf32>,
    %68 = vector.shape_cast %54 : vector<8x8x8xf32> to vector<64x8xf32>
    %c0_81 = arith.constant 0 : index
    %c40 = arith.constant 40 : index
    %69 = vector.load %arg19[%c0_81, %c40] : memref<256x144xf32, #tpu.memory_space<vmem>>, vector<64x8xf32>
    tpu.vector_store %arg19[%c0_81, %c40], %68 {strides = array<i32>} : memref<256x144xf32, #tpu.memory_space<vmem>>, vector<64x8xf32>,
    %70 = vector.shape_cast %55 : vector<8x8x8xf32> to vector<64x8xf32>
    %c0_82 = arith.constant 0 : index
    %c48 = arith.constant 48 : index
    %71 = vector.load %arg19[%c0_82, %c48] : memref<256x144xf32, #tpu.memory_space<vmem>>, vector<64x8xf32>
    tpu.vector_store %arg19[%c0_82, %c48], %70 {strides = array<i32>} : memref<256x144xf32, #tpu.memory_space<vmem>>, vector<64x8xf32>,
    %72 = vector.shape_cast %56 : vector<8x8x8xf32> to vector<64x8xf32>
    %c0_83 = arith.constant 0 : index
    %c56 = arith.constant 56 : index
    %73 = vector.load %arg19[%c0_83, %c56] : memref<256x144xf32, #tpu.memory_space<vmem>>, vector<64x8xf32>
    tpu.vector_store %arg19[%c0_83, %c56], %72 {strides = array<i32>} : memref<256x144xf32, #tpu.memory_space<vmem>>, vector<64x8xf32>,
    %74 = vector.shape_cast %57 : vector<8x8x8xf32> to vector<64x8xf32>
    %c0_84 = arith.constant 0 : index
    %c64 = arith.constant 64 : index
    %75 = vector.load %arg19[%c0_84, %c64] : memref<256x144xf32, #tpu.memory_space<vmem>>, vector<64x8xf32>
    tpu.vector_store %arg19[%c0_84, %c64], %74 {strides = array<i32>} : memref<256x144xf32, #tpu.memory_space<vmem>>, vector<64x8xf32>,
    %c0_85 = arith.constant 0 : index
    %c0_86 = arith.constant 0 : index
    %76 = vector.load %arg19[%c0_85, %c0_86] : memref<256x144xf32, #tpu.memory_space<vmem>>, vector<64x72xf32>
    %77 = arith.truncf %76 : vector<64x72xf32> to vector<64x72xbf16>
    %c0_87 = arith.constant 0 : index
    %c0_88 = arith.constant 0 : index
    %78 = vector.load %arg4[%c0_87, %c0_88] : memref<72x16xbf16, #tpu.memory_space<vmem>>, vector<72x16xbf16>
    %cst_89 = arith.constant dense<0.000000e+00> : vector<64x16xf32>
    %79 = tpu.matmul %77, %78, %cst_89 {dimension_numbers = #tpu.dot_dimension_numbers<[1], [0], [0], [1], [0, 0, 1, 1], [], []>} : vector<64x72xbf16>, vector<72x16xbf16>, vector<64x16xf32> -> vector<64x16xf32>
    %c0_90 = arith.constant 0 : index
    %c0_91 = arith.constant 0 : index
    %80 = vector.load %arg5[%c0_90, %c0_91] : memref<1x16xf32, #tpu.memory_space<vmem>>, vector<1x16xf32>
    %81 = vector.broadcast %80 : vector<1x16xf32> to vector<64x16xf32>
    %82 = arith.addf %79, %81 : vector<64x16xf32>
    %cst_92 = arith.constant 0.000000e+00 : f32
    %83 = vector.broadcast %cst_92 : f32 to vector<64x16xf32>
    %84 = arith.maximumf %82, %83 : vector<64x16xf32>
    %cst_93 = arith.constant 0.000000e+00 : f32
    %85 = vector.broadcast %cst_93 : f32 to vector<10x10x16xf32>
    %c0_94 = arith.constant 0 : index
    %c0_95 = arith.constant 0 : index
    %c0_96 = arith.constant 0 : index
    %86 = vector.load %arg17[%c0_94, %c0_95, %c0_96] : memref<10x10x16xf32, #tpu.memory_space<vmem>>, vector<10x10x16xf32>
    tpu.vector_store %arg17[%c0_94, %c0_95, %c0_96], %85 {strides = array<i32>} : memref<10x10x16xf32, #tpu.memory_space<vmem>>, vector<10x10x16xf32>,
    %87 = vector.shape_cast %84 : vector<64x16xf32> to vector<8x8x16xf32>
    %c1_97 = arith.constant 1 : index
    %c1_98 = arith.constant 1 : index
    %c0_99 = arith.constant 0 : index
    %88 = vector.load %arg17[%c1_97, %c1_98, %c0_99] : memref<10x10x16xf32, #tpu.memory_space<vmem>>, vector<8x8x16xf32>
    tpu.vector_store %arg17[%c1_97, %c1_98, %c0_99], %87 {strides = array<i32>} : memref<10x10x16xf32, #tpu.memory_space<vmem>>, vector<8x8x16xf32>,
    %c0_100 = arith.constant 0 : index
    %c0_101 = arith.constant 0 : index
    %c0_102 = arith.constant 0 : index
    %89 = vector.load %arg17[%c0_100, %c0_101, %c0_102] : memref<10x10x16xf32, #tpu.memory_space<vmem>>, vector<8x8x16xf32>
    %c0_103 = arith.constant 0 : index
    %c1_104 = arith.constant 1 : index
    %c0_105 = arith.constant 0 : index
    %90 = vector.load %arg17[%c0_103, %c1_104, %c0_105] : memref<10x10x16xf32, #tpu.memory_space<vmem>>, vector<8x8x16xf32>
    %c0_106 = arith.constant 0 : index
    %c2_107 = arith.constant 2 : index
    %c0_108 = arith.constant 0 : index
    %91 = vector.load %arg17[%c0_106, %c2_107, %c0_108] : memref<10x10x16xf32, #tpu.memory_space<vmem>>, vector<8x8x16xf32>
    %c1_109 = arith.constant 1 : index
    %c0_110 = arith.constant 0 : index
    %c0_111 = arith.constant 0 : index
    %92 = vector.load %arg17[%c1_109, %c0_110, %c0_111] : memref<10x10x16xf32, #tpu.memory_space<vmem>>, vector<8x8x16xf32>
    %c1_112 = arith.constant 1 : index
    %c1_113 = arith.constant 1 : index
    %c0_114 = arith.constant 0 : index
    %93 = vector.load %arg17[%c1_112, %c1_113, %c0_114] : memref<10x10x16xf32, #tpu.memory_space<vmem>>, vector<8x8x16xf32>
    %c1_115 = arith.constant 1 : index
    %c2_116 = arith.constant 2 : index
    %c0_117 = arith.constant 0 : index
    %94 = vector.load %arg17[%c1_115, %c2_116, %c0_117] : memref<10x10x16xf32, #tpu.memory_space<vmem>>, vector<8x8x16xf32>
    %c2_118 = arith.constant 2 : index
    %c0_119 = arith.constant 0 : index
    %c0_120 = arith.constant 0 : index
    %95 = vector.load %arg17[%c2_118, %c0_119, %c0_120] : memref<10x10x16xf32, #tpu.memory_space<vmem>>, vector<8x8x16xf32>
    %c2_121 = arith.constant 2 : index
    %c1_122 = arith.constant 1 : index
    %c0_123 = arith.constant 0 : index
    %96 = vector.load %arg17[%c2_121, %c1_122, %c0_123] : memref<10x10x16xf32, #tpu.memory_space<vmem>>, vector<8x8x16xf32>
    %c2_124 = arith.constant 2 : index
    %c2_125 = arith.constant 2 : index
    %c0_126 = arith.constant 0 : index
    %97 = vector.load %arg17[%c2_124, %c2_125, %c0_126] : memref<10x10x16xf32, #tpu.memory_space<vmem>>, vector<8x8x16xf32>
    %98 = vector.shape_cast %89 : vector<8x8x16xf32> to vector<64x16xf32>
    %c0_127 = arith.constant 0 : index
    %c0_128 = arith.constant 0 : index
    %99 = vector.load %arg19[%c0_127, %c0_128] : memref<256x144xf32, #tpu.memory_space<vmem>>, vector<64x16xf32>
    tpu.vector_store %arg19[%c0_127, %c0_128], %98 {strides = array<i32>} : memref<256x144xf32, #tpu.memory_space<vmem>>, vector<64x16xf32>,
    %100 = vector.shape_cast %90 : vector<8x8x16xf32> to vector<64x16xf32>
    %c0_129 = arith.constant 0 : index
    %c16_130 = arith.constant 16 : index
    %101 = vector.load %arg19[%c0_129, %c16_130] : memref<256x144xf32, #tpu.memory_space<vmem>>, vector<64x16xf32>
    tpu.vector_store %arg19[%c0_129, %c16_130], %100 {strides = array<i32>} : memref<256x144xf32, #tpu.memory_space<vmem>>, vector<64x16xf32>,
    %102 = vector.shape_cast %91 : vector<8x8x16xf32> to vector<64x16xf32>
    %c0_131 = arith.constant 0 : index
    %c32_132 = arith.constant 32 : index
    %103 = vector.load %arg19[%c0_131, %c32_132] : memref<256x144xf32, #tpu.memory_space<vmem>>, vector<64x16xf32>
    tpu.vector_store %arg19[%c0_131, %c32_132], %102 {strides = array<i32>} : memref<256x144xf32, #tpu.memory_space<vmem>>, vector<64x16xf32>,
    %104 = vector.shape_cast %92 : vector<8x8x16xf32> to vector<64x16xf32>
    %c0_133 = arith.constant 0 : index
    %c48_134 = arith.constant 48 : index
    %105 = vector.load %arg19[%c0_133, %c48_134] : memref<256x144xf32, #tpu.memory_space<vmem>>, vector<64x16xf32>
    tpu.vector_store %arg19[%c0_133, %c48_134], %104 {strides = array<i32>} : memref<256x144xf32, #tpu.memory_space<vmem>>, vector<64x16xf32>,
    %106 = vector.shape_cast %93 : vector<8x8x16xf32> to vector<64x16xf32>
    %c0_135 = arith.constant 0 : index
    %c64_136 = arith.constant 64 : index
    %107 = vector.load %arg19[%c0_135, %c64_136] : memref<256x144xf32, #tpu.memory_space<vmem>>, vector<64x16xf32>
    tpu.vector_store %arg19[%c0_135, %c64_136], %106 {strides = array<i32>} : memref<256x144xf32, #tpu.memory_space<vmem>>, vector<64x16xf32>,
    %108 = vector.shape_cast %94 : vector<8x8x16xf32> to vector<64x16xf32>
    %c0_137 = arith.constant 0 : index
    %c80 = arith.constant 80 : index
    %109 = vector.load %arg19[%c0_137, %c80] : memref<256x144xf32, #tpu.memory_space<vmem>>, vector<64x16xf32>
    tpu.vector_store %arg19[%c0_137, %c80], %108 {strides = array<i32>} : memref<256x144xf32, #tpu.memory_space<vmem>>, vector<64x16xf32>,
    %110 = vector.shape_cast %95 : vector<8x8x16xf32> to vector<64x16xf32>
    %c0_138 = arith.constant 0 : index
    %c96 = arith.constant 96 : index
    %111 = vector.load %arg19[%c0_138, %c96] : memref<256x144xf32, #tpu.memory_space<vmem>>, vector<64x16xf32>
    tpu.vector_store %arg19[%c0_138, %c96], %110 {strides = array<i32>} : memref<256x144xf32, #tpu.memory_space<vmem>>, vector<64x16xf32>,
    %112 = vector.shape_cast %96 : vector<8x8x16xf32> to vector<64x16xf32>
    %c0_139 = arith.constant 0 : index
    %c112 = arith.constant 112 : index
    %113 = vector.load %arg19[%c0_139, %c112] : memref<256x144xf32, #tpu.memory_space<vmem>>, vector<64x16xf32>
    tpu.vector_store %arg19[%c0_139, %c112], %112 {strides = array<i32>} : memref<256x144xf32, #tpu.memory_space<vmem>>, vector<64x16xf32>,
    %114 = vector.shape_cast %97 : vector<8x8x16xf32> to vector<64x16xf32>
    %c0_140 = arith.constant 0 : index
    %c128 = arith.constant 128 : index
    %115 = vector.load %arg19[%c0_140, %c128] : memref<256x144xf32, #tpu.memory_space<vmem>>, vector<64x16xf32>
    tpu.vector_store %arg19[%c0_140, %c128], %114 {strides = array<i32>} : memref<256x144xf32, #tpu.memory_space<vmem>>, vector<64x16xf32>,
    %c0_141 = arith.constant 0 : index
    %c0_142 = arith.constant 0 : index
    %116 = vector.load %arg19[%c0_141, %c0_142] : memref<256x144xf32, #tpu.memory_space<vmem>>, vector<64x144xf32>
    %117 = arith.truncf %116 : vector<64x144xf32> to vector<64x144xbf16>
    %c0_143 = arith.constant 0 : index
    %c0_144 = arith.constant 0 : index
    %118 = vector.load %arg6[%c0_143, %c0_144] : memref<144x16xbf16, #tpu.memory_space<vmem>>, vector<144x16xbf16>
    %cst_145 = arith.constant dense<0.000000e+00> : vector<64x16xf32>
    %119 = tpu.matmul %117, %118, %cst_145 {dimension_numbers = #tpu.dot_dimension_numbers<[1], [0], [0], [1], [0, 0, 1, 1], [], []>} : vector<64x144xbf16>, vector<144x16xbf16>, vector<64x16xf32> -> vector<64x16xf32>
    %c0_146 = arith.constant 0 : index
    %c0_147 = arith.constant 0 : index
    %120 = vector.load %arg7[%c0_146, %c0_147] : memref<1x16xf32, #tpu.memory_space<vmem>>, vector<1x16xf32>
    %121 = vector.broadcast %120 : vector<1x16xf32> to vector<64x16xf32>
    %122 = arith.addf %119, %121 : vector<64x16xf32>
    %cst_148 = arith.constant 0.000000e+00 : f32
    %123 = vector.broadcast %cst_148 : f32 to vector<64x16xf32>
    %124 = arith.maximumf %122, %123 : vector<64x16xf32>
    %cst_149 = arith.constant 0.000000e+00 : f32
    %125 = vector.broadcast %cst_149 : f32 to vector<9x9x16xf32>
    %c0_150 = arith.constant 0 : index
    %c0_151 = arith.constant 0 : index
    %c0_152 = arith.constant 0 : index
    %126 = vector.load %arg18[%c0_150, %c0_151, %c0_152] : memref<9x9x16xf32, #tpu.memory_space<vmem>>, vector<9x9x16xf32>
    tpu.vector_store %arg18[%c0_150, %c0_151, %c0_152], %125 {strides = array<i32>} : memref<9x9x16xf32, #tpu.memory_space<vmem>>, vector<9x9x16xf32>,
    %127 = vector.shape_cast %124 : vector<64x16xf32> to vector<8x8x16xf32>
    %c0_153 = arith.constant 0 : index
    %c0_154 = arith.constant 0 : index
    %c0_155 = arith.constant 0 : index
    %128 = vector.load %arg18[%c0_153, %c0_154, %c0_155] : memref<9x9x16xf32, #tpu.memory_space<vmem>>, vector<8x8x16xf32>
    tpu.vector_store %arg18[%c0_153, %c0_154, %c0_155], %127 {strides = array<i32>} : memref<9x9x16xf32, #tpu.memory_space<vmem>>, vector<8x8x16xf32>,
    %c0_156 = arith.constant 0 : index
    %c0_157 = arith.constant 0 : index
    %c0_158 = arith.constant 0 : index
    %129 = vector.load %arg18[%c0_156, %c0_157, %c0_158] : memref<9x9x16xf32, #tpu.memory_space<vmem>>, vector<8x8x16xf32>
    %c0_159 = arith.constant 0 : index
    %c1_160 = arith.constant 1 : index
    %c0_161 = arith.constant 0 : index
    %130 = vector.load %arg18[%c0_159, %c1_160, %c0_161] : memref<9x9x16xf32, #tpu.memory_space<vmem>>, vector<8x8x16xf32>
    %c1_162 = arith.constant 1 : index
    %c0_163 = arith.constant 0 : index
    %c0_164 = arith.constant 0 : index
    %131 = vector.load %arg18[%c1_162, %c0_163, %c0_164] : memref<9x9x16xf32, #tpu.memory_space<vmem>>, vector<8x8x16xf32>
    %c1_165 = arith.constant 1 : index
    %c1_166 = arith.constant 1 : index
    %c0_167 = arith.constant 0 : index
    %132 = vector.load %arg18[%c1_165, %c1_166, %c0_167] : memref<9x9x16xf32, #tpu.memory_space<vmem>>, vector<8x8x16xf32>
    %133 = vector.shape_cast %129 : vector<8x8x16xf32> to vector<64x16xf32>
    %c0_168 = arith.constant 0 : index
    %c0_169 = arith.constant 0 : index
    %134 = vector.load %arg19[%c0_168, %c0_169] : memref<256x144xf32, #tpu.memory_space<vmem>>, vector<64x16xf32>
    tpu.vector_store %arg19[%c0_168, %c0_169], %133 {strides = array<i32>} : memref<256x144xf32, #tpu.memory_space<vmem>>, vector<64x16xf32>,
    %135 = vector.shape_cast %130 : vector<8x8x16xf32> to vector<64x16xf32>
    %c0_170 = arith.constant 0 : index
    %c16_171 = arith.constant 16 : index
    %136 = vector.load %arg19[%c0_170, %c16_171] : memref<256x144xf32, #tpu.memory_space<vmem>>, vector<64x16xf32>
    tpu.vector_store %arg19[%c0_170, %c16_171], %135 {strides = array<i32>} : memref<256x144xf32, #tpu.memory_space<vmem>>, vector<64x16xf32>,
    %137 = vector.shape_cast %131 : vector<8x8x16xf32> to vector<64x16xf32>
    %c0_172 = arith.constant 0 : index
    %c32_173 = arith.constant 32 : index
    %138 = vector.load %arg19[%c0_172, %c32_173] : memref<256x144xf32, #tpu.memory_space<vmem>>, vector<64x16xf32>
    tpu.vector_store %arg19[%c0_172, %c32_173], %137 {strides = array<i32>} : memref<256x144xf32, #tpu.memory_space<vmem>>, vector<64x16xf32>,
    %139 = vector.shape_cast %132 : vector<8x8x16xf32> to vector<64x16xf32>
    %c0_174 = arith.constant 0 : index
    %c48_175 = arith.constant 48 : index
    %140 = vector.load %arg19[%c0_174, %c48_175] : memref<256x144xf32, #tpu.memory_space<vmem>>, vector<64x16xf32>
    tpu.vector_store %arg19[%c0_174, %c48_175], %139 {strides = array<i32>} : memref<256x144xf32, #tpu.memory_space<vmem>>, vector<64x16xf32>,
    %c0_176 = arith.constant 0 : index
    %c0_177 = arith.constant 0 : index
    %141 = vector.load %arg19[%c0_176, %c0_177] : memref<256x144xf32, #tpu.memory_space<vmem>>, vector<64x64xf32>
    %142 = arith.truncf %141 : vector<64x64xf32> to vector<64x64xbf16>
    %c0_178 = arith.constant 0 : index
    %c0_179 = arith.constant 0 : index
    %143 = vector.load %arg8[%c0_178, %c0_179] : memref<64x32xbf16, #tpu.memory_space<vmem>>, vector<64x32xbf16>
    %cst_180 = arith.constant dense<0.000000e+00> : vector<64x32xf32>
    %144 = tpu.matmul %142, %143, %cst_180 {dimension_numbers = #tpu.dot_dimension_numbers<[1], [0], [0], [1], [0, 0, 1, 1], [], []>} : vector<64x64xbf16>, vector<64x32xbf16>, vector<64x32xf32> -> vector<64x32xf32>
    %145 = vector.extract_strided_slice %144 {offsets = [0, 0], sizes = [64, 8], strides = [1, 1]} : vector<64x32xf32> to vector<64x8xf32>
    %c0_181 = arith.constant 0 : index
    %c0_182 = arith.constant 0 : index
    %146 = vector.load %arg9[%c0_181, %c0_182] : memref<1x8xf32, #tpu.memory_space<vmem>>, vector<1x8xf32>
    %147 = vector.broadcast %146 : vector<1x8xf32> to vector<64x8xf32>
    %148 = arith.addf %145, %147 : vector<64x8xf32>
    %c1_183 = arith.constant 1 : index
    %c1_184 = arith.constant 1 : index
    %c0_185 = arith.constant 0 : index
    %149 = tpu.strided_load %arg16[%c1_183, %c1_184, %c0_185] {strides = array<i32: 2, 2, 1>} : memref<18x18x8xf32, #tpu.memory_space<vmem>>, vector<8x8x8xf32>
    %150 = vector.shape_cast %149 : vector<8x8x8xf32> to vector<64x8xf32>
    %151 = arith.truncf %150 : vector<64x8xf32> to vector<64x8xbf16>
    %c0_186 = arith.constant 0 : index
    %c0_187 = arith.constant 0 : index
    %152 = vector.load %arg10[%c0_186, %c0_187] : memref<8x8xbf16, #tpu.memory_space<vmem>>, vector<8x8xbf16>
    %cst_188 = arith.constant dense<0.000000e+00> : vector<64x8xf32>
    %153 = tpu.matmul %151, %152, %cst_188 {dimension_numbers = #tpu.dot_dimension_numbers<[1], [0], [0], [1], [0, 0, 1, 1], [], []>} : vector<64x8xbf16>, vector<8x8xbf16>, vector<64x8xf32> -> vector<64x8xf32>
    %c0_189 = arith.constant 0 : index
    %c0_190 = arith.constant 0 : index
    %154 = vector.load %arg11[%c0_189, %c0_190] : memref<1x8xf32, #tpu.memory_space<vmem>>, vector<1x8xf32>
    %155 = vector.broadcast %154 : vector<1x8xf32> to vector<64x8xf32>
    %156 = arith.addf %153, %155 : vector<64x8xf32>
    %cst_191 = arith.constant 0.000000e+00 : f32
    %157 = vector.broadcast %cst_191 : f32 to vector<64x8xf32>
    %158 = arith.maximumf %156, %157 : vector<64x8xf32>
    %159 = arith.addf %148, %158 : vector<64x8xf32>
    %cst_192 = arith.constant 0.000000e+00 : f32
    %160 = vector.broadcast %cst_192 : f32 to vector<64x8xf32>
    %161 = arith.maximumf %159, %160 : vector<64x8xf32>
    %162 = arith.truncf %161 : vector<64x8xf32> to vector<64x8xbf16>
    %c0_193 = arith.constant 0 : index
    %c0_194 = arith.constant 0 : index
    %163 = vector.load %arg12[%c0_193, %c0_194] : memref<8x8xbf16, #tpu.memory_space<vmem>>, vector<8x8xbf16>
    %cst_195 = arith.constant dense<0.000000e+00> : vector<64x8xf32>
    %164 = tpu.matmul %162, %163, %cst_195 {dimension_numbers = #tpu.dot_dimension_numbers<[1], [0], [0], [1], [0, 0, 1, 1], [], []>} : vector<64x8xbf16>, vector<8x8xbf16>, vector<64x8xf32> -> vector<64x8xf32>
    %c0_196 = arith.constant 0 : index
    %c0_197 = arith.constant 0 : index
    %165 = vector.load %arg13[%c0_196, %c0_197] : memref<1x8xf32, #tpu.memory_space<vmem>>, vector<1x8xf32>
    %166 = vector.broadcast %165 : vector<1x8xf32> to vector<64x8xf32>
    %167 = arith.addf %164, %166 : vector<64x8xf32>
    %c0_198 = arith.constant 0 : index
    %c0_199 = arith.constant 0 : index
    %c0_200 = arith.constant 0 : index
    %c0_201 = arith.constant 0 : index
    %168 = vector.load %arg14[%c0_198, %c0_199, %c0_200, %c0_201] : memref<1x4x64x8xf32, #tpu.memory_space<vmem>>, vector<1x1x64x8xf32>
    %169 = vector.shape_cast %168 : vector<1x1x64x8xf32> to vector<64x8xf32>
    %170 = vector.shape_cast %167 : vector<64x8xf32> to vector<1x1x64x8xf32>
    tpu.vector_store %arg14[%c0_198, %c0_199, %c0_200, %c0_201], %170 {strides = array<i32>} : memref<1x4x64x8xf32, #tpu.memory_space<vmem>>, vector<1x1x64x8xf32>,
    %171 = vector.extract_strided_slice %144 {offsets = [0, 8], sizes = [64, 8], strides = [1, 1]} : vector<64x32xf32> to vector<64x8xf32>
    %c0_202 = arith.constant 0 : index
    %c0_203 = arith.constant 0 : index
    %172 = vector.load %arg9[%c0_202, %c0_203] : memref<1x8xf32, #tpu.memory_space<vmem>>, vector<1x8xf32>
    %173 = vector.broadcast %172 : vector<1x8xf32> to vector<64x8xf32>
    %174 = arith.addf %171, %173 : vector<64x8xf32>
    %c1_204 = arith.constant 1 : index
    %c2_205 = arith.constant 2 : index
    %c0_206 = arith.constant 0 : index
    %175 = tpu.strided_load %arg16[%c1_204, %c2_205, %c0_206] {strides = array<i32: 2, 2, 1>} : memref<18x18x8xf32, #tpu.memory_space<vmem>>, vector<8x8x8xf32>
    %176 = vector.shape_cast %175 : vector<8x8x8xf32> to vector<64x8xf32>
    %177 = arith.truncf %176 : vector<64x8xf32> to vector<64x8xbf16>
    %c0_207 = arith.constant 0 : index
    %c0_208 = arith.constant 0 : index
    %178 = vector.load %arg10[%c0_207, %c0_208] : memref<8x8xbf16, #tpu.memory_space<vmem>>, vector<8x8xbf16>
    %cst_209 = arith.constant dense<0.000000e+00> : vector<64x8xf32>
    %179 = tpu.matmul %177, %178, %cst_209 {dimension_numbers = #tpu.dot_dimension_numbers<[1], [0], [0], [1], [0, 0, 1, 1], [], []>} : vector<64x8xbf16>, vector<8x8xbf16>, vector<64x8xf32> -> vector<64x8xf32>
    %c0_210 = arith.constant 0 : index
    %c0_211 = arith.constant 0 : index
    %180 = vector.load %arg11[%c0_210, %c0_211] : memref<1x8xf32, #tpu.memory_space<vmem>>, vector<1x8xf32>
    %181 = vector.broadcast %180 : vector<1x8xf32> to vector<64x8xf32>
    %182 = arith.addf %179, %181 : vector<64x8xf32>
    %cst_212 = arith.constant 0.000000e+00 : f32
    %183 = vector.broadcast %cst_212 : f32 to vector<64x8xf32>
    %184 = arith.maximumf %182, %183 : vector<64x8xf32>
    %185 = arith.addf %174, %184 : vector<64x8xf32>
    %cst_213 = arith.constant 0.000000e+00 : f32
    %186 = vector.broadcast %cst_213 : f32 to vector<64x8xf32>
    %187 = arith.maximumf %185, %186 : vector<64x8xf32>
    %188 = arith.truncf %187 : vector<64x8xf32> to vector<64x8xbf16>
    %c0_214 = arith.constant 0 : index
    %c0_215 = arith.constant 0 : index
    %189 = vector.load %arg12[%c0_214, %c0_215] : memref<8x8xbf16, #tpu.memory_space<vmem>>, vector<8x8xbf16>
    %cst_216 = arith.constant dense<0.000000e+00> : vector<64x8xf32>
    %190 = tpu.matmul %188, %189, %cst_216 {dimension_numbers = #tpu.dot_dimension_numbers<[1], [0], [0], [1], [0, 0, 1, 1], [], []>} : vector<64x8xbf16>, vector<8x8xbf16>, vector<64x8xf32> -> vector<64x8xf32>
    %c0_217 = arith.constant 0 : index
    %c0_218 = arith.constant 0 : index
    %191 = vector.load %arg13[%c0_217, %c0_218] : memref<1x8xf32, #tpu.memory_space<vmem>>, vector<1x8xf32>
    %192 = vector.broadcast %191 : vector<1x8xf32> to vector<64x8xf32>
    %193 = arith.addf %190, %192 : vector<64x8xf32>
    %c0_219 = arith.constant 0 : index
    %c1_220 = arith.constant 1 : index
    %c0_221 = arith.constant 0 : index
    %c0_222 = arith.constant 0 : index
    %194 = vector.load %arg14[%c0_219, %c1_220, %c0_221, %c0_222] : memref<1x4x64x8xf32, #tpu.memory_space<vmem>>, vector<1x1x64x8xf32>
    %195 = vector.shape_cast %194 : vector<1x1x64x8xf32> to vector<64x8xf32>
    %196 = vector.shape_cast %193 : vector<64x8xf32> to vector<1x1x64x8xf32>
    tpu.vector_store %arg14[%c0_219, %c1_220, %c0_221, %c0_222], %196 {strides = array<i32>} : memref<1x4x64x8xf32, #tpu.memory_space<vmem>>, vector<1x1x64x8xf32>,
    %197 = vector.extract_strided_slice %144 {offsets = [0, 16], sizes = [64, 8], strides = [1, 1]} : vector<64x32xf32> to vector<64x8xf32>
    %c0_223 = arith.constant 0 : index
    %c0_224 = arith.constant 0 : index
    %198 = vector.load %arg9[%c0_223, %c0_224] : memref<1x8xf32, #tpu.memory_space<vmem>>, vector<1x8xf32>
    %199 = vector.broadcast %198 : vector<1x8xf32> to vector<64x8xf32>
    %200 = arith.addf %197, %199 : vector<64x8xf32>
    %c2_225 = arith.constant 2 : index
    %c1_226 = arith.constant 1 : index
    %c0_227 = arith.constant 0 : index
    %201 = tpu.strided_load %arg16[%c2_225, %c1_226, %c0_227] {strides = array<i32: 2, 2, 1>} : memref<18x18x8xf32, #tpu.memory_space<vmem>>, vector<8x8x8xf32>
    %202 = vector.shape_cast %201 : vector<8x8x8xf32> to vector<64x8xf32>
    %203 = arith.truncf %202 : vector<64x8xf32> to vector<64x8xbf16>
    %c0_228 = arith.constant 0 : index
    %c0_229 = arith.constant 0 : index
    %204 = vector.load %arg10[%c0_228, %c0_229] : memref<8x8xbf16, #tpu.memory_space<vmem>>, vector<8x8xbf16>
    %cst_230 = arith.constant dense<0.000000e+00> : vector<64x8xf32>
    %205 = tpu.matmul %203, %204, %cst_230 {dimension_numbers = #tpu.dot_dimension_numbers<[1], [0], [0], [1], [0, 0, 1, 1], [], []>} : vector<64x8xbf16>, vector<8x8xbf16>, vector<64x8xf32> -> vector<64x8xf32>
    %c0_231 = arith.constant 0 : index
    %c0_232 = arith.constant 0 : index
    %206 = vector.load %arg11[%c0_231, %c0_232] : memref<1x8xf32, #tpu.memory_space<vmem>>, vector<1x8xf32>
    %207 = vector.broadcast %206 : vector<1x8xf32> to vector<64x8xf32>
    %208 = arith.addf %205, %207 : vector<64x8xf32>
    %cst_233 = arith.constant 0.000000e+00 : f32
    %209 = vector.broadcast %cst_233 : f32 to vector<64x8xf32>
    %210 = arith.maximumf %208, %209 : vector<64x8xf32>
    %211 = arith.addf %200, %210 : vector<64x8xf32>
    %cst_234 = arith.constant 0.000000e+00 : f32
    %212 = vector.broadcast %cst_234 : f32 to vector<64x8xf32>
    %213 = arith.maximumf %211, %212 : vector<64x8xf32>
    %214 = arith.truncf %213 : vector<64x8xf32> to vector<64x8xbf16>
    %c0_235 = arith.constant 0 : index
    %c0_236 = arith.constant 0 : index
    %215 = vector.load %arg12[%c0_235, %c0_236] : memref<8x8xbf16, #tpu.memory_space<vmem>>, vector<8x8xbf16>
    %cst_237 = arith.constant dense<0.000000e+00> : vector<64x8xf32>
    %216 = tpu.matmul %214, %215, %cst_237 {dimension_numbers = #tpu.dot_dimension_numbers<[1], [0], [0], [1], [0, 0, 1, 1], [], []>} : vector<64x8xbf16>, vector<8x8xbf16>, vector<64x8xf32> -> vector<64x8xf32>
    %c0_238 = arith.constant 0 : index
    %c0_239 = arith.constant 0 : index
    %217 = vector.load %arg13[%c0_238, %c0_239] : memref<1x8xf32, #tpu.memory_space<vmem>>, vector<1x8xf32>
    %218 = vector.broadcast %217 : vector<1x8xf32> to vector<64x8xf32>
    %219 = arith.addf %216, %218 : vector<64x8xf32>
    %c0_240 = arith.constant 0 : index
    %c2_241 = arith.constant 2 : index
    %c0_242 = arith.constant 0 : index
    %c0_243 = arith.constant 0 : index
    %220 = vector.load %arg14[%c0_240, %c2_241, %c0_242, %c0_243] : memref<1x4x64x8xf32, #tpu.memory_space<vmem>>, vector<1x1x64x8xf32>
    %221 = vector.shape_cast %220 : vector<1x1x64x8xf32> to vector<64x8xf32>
    %222 = vector.shape_cast %219 : vector<64x8xf32> to vector<1x1x64x8xf32>
    tpu.vector_store %arg14[%c0_240, %c2_241, %c0_242, %c0_243], %222 {strides = array<i32>} : memref<1x4x64x8xf32, #tpu.memory_space<vmem>>, vector<1x1x64x8xf32>,
    %223 = vector.extract_strided_slice %144 {offsets = [0, 24], sizes = [64, 8], strides = [1, 1]} : vector<64x32xf32> to vector<64x8xf32>
    %c0_244 = arith.constant 0 : index
    %c0_245 = arith.constant 0 : index
    %224 = vector.load %arg9[%c0_244, %c0_245] : memref<1x8xf32, #tpu.memory_space<vmem>>, vector<1x8xf32>
    %225 = vector.broadcast %224 : vector<1x8xf32> to vector<64x8xf32>
    %226 = arith.addf %223, %225 : vector<64x8xf32>
    %c2_246 = arith.constant 2 : index
    %c2_247 = arith.constant 2 : index
    %c0_248 = arith.constant 0 : index
    %227 = tpu.strided_load %arg16[%c2_246, %c2_247, %c0_248] {strides = array<i32: 2, 2, 1>} : memref<18x18x8xf32, #tpu.memory_space<vmem>>, vector<8x8x8xf32>
    %228 = vector.shape_cast %227 : vector<8x8x8xf32> to vector<64x8xf32>
    %229 = arith.truncf %228 : vector<64x8xf32> to vector<64x8xbf16>
    %c0_249 = arith.constant 0 : index
    %c0_250 = arith.constant 0 : index
    %230 = vector.load %arg10[%c0_249, %c0_250] : memref<8x8xbf16, #tpu.memory_space<vmem>>, vector<8x8xbf16>
    %cst_251 = arith.constant dense<0.000000e+00> : vector<64x8xf32>
    %231 = tpu.matmul %229, %230, %cst_251 {dimension_numbers = #tpu.dot_dimension_numbers<[1], [0], [0], [1], [0, 0, 1, 1], [], []>} : vector<64x8xbf16>, vector<8x8xbf16>, vector<64x8xf32> -> vector<64x8xf32>
    %c0_252 = arith.constant 0 : index
    %c0_253 = arith.constant 0 : index
    %232 = vector.load %arg11[%c0_252, %c0_253] : memref<1x8xf32, #tpu.memory_space<vmem>>, vector<1x8xf32>
    %233 = vector.broadcast %232 : vector<1x8xf32> to vector<64x8xf32>
    %234 = arith.addf %231, %233 : vector<64x8xf32>
    %cst_254 = arith.constant 0.000000e+00 : f32
    %235 = vector.broadcast %cst_254 : f32 to vector<64x8xf32>
    %236 = arith.maximumf %234, %235 : vector<64x8xf32>
    %237 = arith.addf %226, %236 : vector<64x8xf32>
    %cst_255 = arith.constant 0.000000e+00 : f32
    %238 = vector.broadcast %cst_255 : f32 to vector<64x8xf32>
    %239 = arith.maximumf %237, %238 : vector<64x8xf32>
    %240 = arith.truncf %239 : vector<64x8xf32> to vector<64x8xbf16>
    %c0_256 = arith.constant 0 : index
    %c0_257 = arith.constant 0 : index
    %241 = vector.load %arg12[%c0_256, %c0_257] : memref<8x8xbf16, #tpu.memory_space<vmem>>, vector<8x8xbf16>
    %cst_258 = arith.constant dense<0.000000e+00> : vector<64x8xf32>
    %242 = tpu.matmul %240, %241, %cst_258 {dimension_numbers = #tpu.dot_dimension_numbers<[1], [0], [0], [1], [0, 0, 1, 1], [], []>} : vector<64x8xbf16>, vector<8x8xbf16>, vector<64x8xf32> -> vector<64x8xf32>
    %c0_259 = arith.constant 0 : index
    %c0_260 = arith.constant 0 : index
    %243 = vector.load %arg13[%c0_259, %c0_260] : memref<1x8xf32, #tpu.memory_space<vmem>>, vector<1x8xf32>
    %244 = vector.broadcast %243 : vector<1x8xf32> to vector<64x8xf32>
    %245 = arith.addf %242, %244 : vector<64x8xf32>
    %c0_261 = arith.constant 0 : index
    %c3 = arith.constant 3 : index
    %c0_262 = arith.constant 0 : index
    %c0_263 = arith.constant 0 : index
    %246 = vector.load %arg14[%c0_261, %c3, %c0_262, %c0_263] : memref<1x4x64x8xf32, #tpu.memory_space<vmem>>, vector<1x1x64x8xf32>
    %247 = vector.shape_cast %246 : vector<1x1x64x8xf32> to vector<64x8xf32>
    %248 = vector.shape_cast %245 : vector<64x8xf32> to vector<1x1x64x8xf32>
    tpu.vector_store %arg14[%c0_261, %c3, %c0_262, %c0_263], %248 {strides = array<i32>} : memref<1x4x64x8xf32, #tpu.memory_space<vmem>>, vector<1x1x64x8xf32>,
    return
  }
  func.func @transform_0(%arg0: i32) -> (i32, i32, i32, i32) {
    %c0_i32 = arith.constant 0 : i32
    %c0_i32_0 = arith.constant 0 : i32
    %c0_i32_1 = arith.constant 0 : i32
    %c0_i32_2 = arith.constant 0 : i32
    return %arg0, %c0_i32, %c0_i32_0, %c0_i32_1 : i32, i32, i32, i32
  }
  func.func @transform_1(%arg0: i32) -> (i32, i32) {
    %c0_i32 = arith.constant 0 : i32
    %c0_i32_0 = arith.constant 0 : i32
    %c0_i32_1 = arith.constant 0 : i32
    return %c0_i32, %c0_i32_0 : i32, i32
  }
  func.func @transform_2(%arg0: i32) -> (i32, i32) {
    %c0_i32 = arith.constant 0 : i32
    %c0_i32_0 = arith.constant 0 : i32
    %c0_i32_1 = arith.constant 0 : i32
    return %c0_i32, %c0_i32_0 : i32, i32
  }
  func.func @transform_3(%arg0: i32) -> (i32, i32) {
    %c0_i32 = arith.constant 0 : i32
    %c0_i32_0 = arith.constant 0 : i32
    %c0_i32_1 = arith.constant 0 : i32
    return %c0_i32, %c0_i32_0 : i32, i32
  }
  func.func @transform_4(%arg0: i32) -> (i32, i32) {
    %c0_i32 = arith.constant 0 : i32
    %c0_i32_0 = arith.constant 0 : i32
    %c0_i32_1 = arith.constant 0 : i32
    return %c0_i32, %c0_i32_0 : i32, i32
  }
  func.func @transform_5(%arg0: i32) -> (i32, i32) {
    %c0_i32 = arith.constant 0 : i32
    %c0_i32_0 = arith.constant 0 : i32
    %c0_i32_1 = arith.constant 0 : i32
    return %c0_i32, %c0_i32_0 : i32, i32
  }
  func.func @transform_6(%arg0: i32) -> (i32, i32) {
    %c0_i32 = arith.constant 0 : i32
    %c0_i32_0 = arith.constant 0 : i32
    %c0_i32_1 = arith.constant 0 : i32
    return %c0_i32, %c0_i32_0 : i32, i32
  }
  func.func @transform_7(%arg0: i32) -> (i32, i32) {
    %c0_i32 = arith.constant 0 : i32
    %c0_i32_0 = arith.constant 0 : i32
    %c0_i32_1 = arith.constant 0 : i32
    return %c0_i32, %c0_i32_0 : i32, i32
  }
  func.func @transform_8(%arg0: i32) -> (i32, i32) {
    %c0_i32 = arith.constant 0 : i32
    %c0_i32_0 = arith.constant 0 : i32
    %c0_i32_1 = arith.constant 0 : i32
    return %c0_i32, %c0_i32_0 : i32, i32
  }
  func.func @transform_9(%arg0: i32) -> (i32, i32) {
    %c0_i32 = arith.constant 0 : i32
    %c0_i32_0 = arith.constant 0 : i32
    %c0_i32_1 = arith.constant 0 : i32
    return %c0_i32, %c0_i32_0 : i32, i32
  }
  func.func @transform_10(%arg0: i32) -> (i32, i32) {
    %c0_i32 = arith.constant 0 : i32
    %c0_i32_0 = arith.constant 0 : i32
    %c0_i32_1 = arith.constant 0 : i32
    return %c0_i32, %c0_i32_0 : i32, i32
  }
  func.func @transform_11(%arg0: i32) -> (i32, i32) {
    %c0_i32 = arith.constant 0 : i32
    %c0_i32_0 = arith.constant 0 : i32
    %c0_i32_1 = arith.constant 0 : i32
    return %c0_i32, %c0_i32_0 : i32, i32
  }
  func.func @transform_12(%arg0: i32) -> (i32, i32) {
    %c0_i32 = arith.constant 0 : i32
    %c0_i32_0 = arith.constant 0 : i32
    %c0_i32_1 = arith.constant 0 : i32
    return %c0_i32, %c0_i32_0 : i32, i32
  }
  func.func @transform_13(%arg0: i32) -> (i32, i32, i32, i32) {
    %c0_i32 = arith.constant 0 : i32
    %c0_i32_0 = arith.constant 0 : i32
    %c0_i32_1 = arith.constant 0 : i32
    %c0_i32_2 = arith.constant 0 : i32
    return %arg0, %c0_i32, %c0_i32_0, %c0_i32_1 : i32, i32, i32, i32
  }
}

</mosaic_0001>

<bundles_post_ra>
// kernel: stereo_volume_encoder.1
= control target key start
LH: loop header
LB: loop body
LE: loop exit
PB: predicated region body
PF: predicated region fallthrough
CT: control target
= control target key end

     0   :  { %s5848_s25 = smov 0   ;;  %s8128_s0 = inlined_call_operand.vmem [shape: f32[2,16,16,4], index: 0, kind: input, shape index: {}]   ;;  %s8129_s1 = inlined_call_operand.vmem [shape: bf16[36,8], index: 1, kind: input, shape index: {}]   ;;  %s8130_s2 = inlined_call_operand.vmem [shape: f32[1,8], index: 2, kind: input, shape index: {}]   ;;  %s8131_s3 = inlined_call_operand.vmem [shape: bf16[72,16], index: 3, kind: input, shape index: {}]   ;;  %s8132_s4 = inlined_call_operand.vmem [shape: f32[1,16], index: 4, kind: input, shape index: {}]   ;;  %s8133_s5 = inlined_call_operand.vmem [shape: bf16[144,16], index: 5, kind: input, shape index: {}]   ;;  %s8134_s6 = inlined_call_operand.vmem [shape: f32[1,16], index: 6, kind: input, shape index: {}]   ;;  %s8135_s7 = inlined_call_operand.vmem [shape: bf16[64,32], index: 7, kind: input, shape index: {}]   ;;  %s8136_s8 = inlined_call_operand.vmem [shape: f32[1,8], index: 8, kind: input, shape index: {}]   ;;  %s8137_s9 = inlined_call_operand.vmem [shape: bf16[8,8], index: 9, kind: input, shape index: {}]   ;;  %s8138_s10 = inlined_call_operand.vmem [shape: f32[1,8], index: 10, kind: input, shape index: {}]   ;;  %s8139_s11 = inlined_call_operand.vmem [shape: bf16[8,8], index: 11, kind: input, shape index: {}]   ;;  %s8140_s12 = inlined_call_operand.vmem [shape: f32[1,8], index: 12, kind: input, shape index: {}]   ;;  %s8141_s13 = inlined_call_operand.vmem [shape: f32[2,4,64,8], index: 13, kind: output, shape index: {}]  }
   0x1 LB: > { %s5331_s26 = sadd.s32 4294967295, %s5757_s25   ;;  %p5335_p0 = scmp.ge.s32.totalorder %s5757_s25, 1  ;;  %s5757_s25 = sphi %s5848_s25, %s23_s25  }
   0x2   : > { %p387_p1 = scmp.lt.s32.totalorder %s5757_s25, 3 }
   0x4   : > { %p388_p2 = pnand %p5335_p0, %p387_p1 }
   0x5   : > { %vm442_vm0 = vcmask (!%p388_p2), 31744   ;;  %vm445_vm1 = vcmask (!%p388_p2), 25600   ;;  %v5759_v0 = vmov (!%p388_p2), 0.0   ;;  %p431_p3 = scmp.lt.s32.totalorder (!%p388_p2), %s5331_s26, 1  ;;  %s5760_s14 = smov (!%p388_p2), 4   ;;  %v5729_v44 = vld [vmem:[%s8129_s1] sm:$0xff] (!%p388_p2)  }
   0x6   : > { %391 = sbr.rel (%p388_p2) target bundleno = 2428 (0x97c), region = 72  ;;  %443 = vst.msk [vmem:[#allocation2] sm:$0xff] (!%p388_p2), %vm442_vm0, %v5759_v0  ;;  %444 = vst.msk [vmem:[#allocation2 + $0x8] sm:$0xff] (!%p388_p2), %vm442_vm0, %v5759_v0  ;;  %s5761_s15 = smov (!%p388_p2), 8   ;;  %5540 = vmatprep.subr.bf16.mxu0 (!%p388_p2), %v5729_v44  ;;  %v5730_v46 = vld [vmem:[%s8129_s1 + $0x8] sm:$0xff] (!%p388_p2)   ;;  %vm2296_vm2 = vcmask (!%p388_p2), 1041408  }
   0x7   : > { %447 = vst.msk [vmem:[#allocation2 + $0x18] sm:$0xff] (!%p388_p2), %vm442_vm0, %v5759_v0  ;;  %448 = vst.msk [vmem:[#allocation2 + $0x20] sm:$0xff] (!%p388_p2), %vm442_vm0, %v5759_v0  ;;  %s5762_s16 = smov (!%p388_p2), 12   ;;  %s5763_s17 = smov (!%p388_p2), 16   ;;  %5541 = vmatpush3.bf16.msra.mxu0 (!%p388_p2), %v5729_v44  ;;  %vm1012_vm3 = vcmask (!%p388_p2), 64544   ;;  %vm1173_vm4 = vcmask (!%p388_p2), 97344  }
   0x8   : > { %450 = vst.msk [vmem:[#allocation2 + $0x30] sm:$0xff] (!%p388_p2), %vm442_vm0, %v5759_v0  ;;  %451 = vst.msk [vmem:[#allocation2 + $0x38] sm:$0xff] (!%p388_p2), %vm442_vm0, %v5759_v0  ;;  %s5764_s18 = smov (!%p388_p2), 20   ;;  %s5765_s19 = smov (!%p388_p2), 24   ;;  %5542 = vmatprep.subr.bf16.mxu0 (!%p388_p2), %v5730_v46  ;;  %vm1334_vm5 = vcmask (!%p388_p2), 130144   ;;  %vm1495_vm6 = vcmask (!%p388_p2), 162944  }
   0x9   : > { %453 = vst.msk [vmem:[#allocation2 + $0x48] sm:$0xff] (!%p388_p2), %vm442_vm0, %v5759_v0  ;;  %454 = vst.msk [vmem:[#allocation2 + $0x50] sm:$0xff] (!%p388_p2), %vm442_vm0, %v5759_v0  ;;  %s5766_s20 = smov (!%p388_p2), 28   ;;  %s5767_s28 = smov (!%p388_p2), 32   ;;  %vm1656_vm7 = vcmask (!%p388_p2), 195744   ;;  %vm1817_vm8 = vcmask (!%p388_p2), 228544  }
   0xa   : > { %456 = vst.msk [vmem:[#allocation2 + $0x60] sm:$0xff] (!%p388_p2), %vm442_vm0, %v5759_v0  ;;  %457 = vst.msk [vmem:[#allocation2 + $0x68] sm:$0xff] (!%p388_p2), %vm442_vm0, %v5759_v0  ;;  %v5731_v47 = vld [vmem:[%s8129_s1 + $0x10] ss:$0 sps:$4 sm:$0x33] (!%p388_p2)   ;;  %vm1978_vm9 = vcmask (!%p388_p2), 261344  }
   0xb   : > { %459 = vst.msk [vmem:[#allocation2 + $0x78] sm:$0xff] (!%p388_p2), %vm442_vm0, %v5759_v0  ;;  %460 = vst.msk [vmem:[#allocation2 + $0x80] sm:$0xff] (!%p388_p2), %vm442_vm0, %v5759_v0  ;;  %5543 = vmatpush3.bf16.msra.mxu0 (!%p388_p2), %v5730_v46  ;;  %v2298_v48 = vsel (!%p388_p2), %vm2296_vm2, %v5731_v47, 0  ;;  %vm2139_vm10 = vcmask (!%p388_p2), 294144   ;;  %vm2247_vm11 = vcmask (!%p388_p2), 293888   ;;  %vm2493_vm12 = vcmask (!%p388_p2), 64512  }
   0xc   : > { %462 = vst.msk [vmem:[#allocation2 + $0x90] sm:$0xff] (!%p388_p2), %vm442_vm0, %v5759_v0  ;;  %463 = vst.msk [vmem:[#allocation2 + $0x98] sm:$0xff] (!%p388_p2), %vm442_vm0, %v5759_v0  ;;  %5692 = vmatprep.subr.msk.bf16.mxu0 (!%p388_p2), %vm2296_vm2, %v5731_v47  ;;  %vm2496_vm13 = vcmask (!%p388_p2), 58368   ;;  %vm2747_vm14 = vcmask (!%p388_p2), 1046528   ;;  %vm2722_vm15 = vcmask (!%p388_p2), 130112   ;;  %vm2837_vm2 = vcmask (!%p388_p2), 261312  }
   0xd   : > { %465 = vst.msk [vmem:[#allocation2 + $0xa8] sm:$0xff] %vm442_vm0, %v5759_v0  ;;  %466 = vst.msk [vmem:[#allocation2 + $0xb0] sm:$0xff] %vm442_vm0, %v5759_v0  ;;  %s8143_s26 = smov (!%p431_p3, %s5331_s26), 1  ;;  %v595_v4 = vld [vmem:[#allocation2 + $0x1] sm:$0xff]  ;;  %s5772_s23 = smov 96  }
   0xe   : > { %468 = vst.msk [vmem:[#allocation2 + $0xc0] sm:$0xff] %vm442_vm0, %v5759_v0  ;;  %469 = vst.msk [vmem:[#allocation2 + $0xc8] sm:$0xff] %vm442_vm0, %v5759_v0  ;;  %s5462_s27 = sshll.u32 %s8143_s26, 8  ;;  %916 = vrot.lane.b32.xlu0 %v595_v4, %s5760_s14  ;;  %v563_v14 = vld [vmem:[#allocation2] sm:$0xff]  ;;  %v564_v16 = vld [vmem:[#allocation2 + $0x8] sm:$0xff]  ;;  %s5773_s24 = smov 112  }
   0xf   : > { %471 = vst.msk [vmem:[#allocation2 + $0xd8] sm:$0xff] %vm442_vm0, %v5759_v0  ;;  %472 = vst.msk [vmem:[#allocation2 + $0xe0] sm:$0xff] %vm442_vm0, %v5759_v0  ;;  %s5976_s30 = scalar_lea.vmem %s8128_s0, %s5462_s27  ;;  %v627_v15 = vld [vmem:[#allocation2 + $0x2] sm:$0xff]  ;;  %5545 = vmatpush3.bf16.msra.mxu0 %v2298_v48 }
  0x10   : > { %474 = vst.msk [vmem:[#allocation2 + $0xf0] sm:$0xff] %vm442_vm0, %v5759_v0  ;;  %475 = vst.msk [vmem:[#allocation2 + $0xf8] sm:$0xff] %vm442_vm0, %v5759_v0  ;;  %v498_v1 = vld [vmem:[%s5976_s30] sm:$0xff]  ;;  %v499_v2 = vld [vmem:[%s5976_s30 + $0x8] sm:$0xff] }
  0x11   : > { %477 = vst.msk [vmem:[#allocation2 + $0x108] sm:$0xff] %vm442_vm0, %v5759_v0  ;;  %478 = vst.msk [vmem:[#allocation2 + $0x110] sm:$0xff] %vm442_vm0, %v5759_v0  ;;  %v500_v3 = vld [vmem:[%s5976_s30 + $0x10] sm:$0xff]  ;;  %v501_v7 = vld [vmem:[%s5976_s30 + $0x18] sm:$0xff] }
  0x12   : > { %480 = vst.msk [vmem:[#allocation2 + $0x120] sm:$0xff] %vm442_vm0, %v5759_v0  ;;  %481 = vst.msk [vmem:[#allocation2 + $0x128] sm:$0xff] %vm442_vm0, %v5759_v0  ;;  %v502_v8 = vld [vmem:[%s5976_s30 + $0x20] sm:$0xff]  ;;  %v503_v9 = vld [vmem:[%s5976_s30 + $0x28] sm:$0xff] }
  0x13   : > { %483 = vst.msk [vmem:[#allocation2 + $0x138] sm:$0xff] %vm442_vm0, %v5759_v0  ;;  %484 = vst.msk [vmem:[#allocation2 + $0x140] sm:$0xff] %vm442_vm0, %v5759_v0  ;;  %v504_v10 = vld [vmem:[%s5976_s30 + $0x30] sm:$0xff]  ;;  %v505_v11 = vld [vmem:[%s5976_s30 + $0x38] sm:$0xff] }
  0x14   : > { %486 = vst.msk [vmem:[#allocation2 + $0x150] sm:$0xff] %vm442_vm0, %v5759_v0  ;;  %487 = vst.msk [vmem:[#allocation2 + $0x158] sm:$0xff] %vm442_vm0, %v5759_v0  ;;  %v506_v12 = vld [vmem:[%s5976_s30 + $0x40] sm:$0xff]  ;;  %v507_v13 = vld [vmem:[%s5976_s30 + $0x48] sm:$0xff] }
  0x15   : > { %489 = vst.msk [vmem:[#allocation2 + $0x168] sm:$0xff] %vm442_vm0, %v5759_v0  ;;  %490 = vst.msk [vmem:[#allocation2 + $0x170] sm:$0xff] %vm442_vm0, %v5759_v0  ;;  %v508_v31 = vld [vmem:[%s5976_s30 + $0x50] sm:$0xff]  ;;  %v509_v32 = vld [vmem:[%s5976_s30 + $0x58] sm:$0xff] }
  0x16   : > { %492 = vst.msk [vmem:[#allocation2 + $0x180] sm:$0xff] %vm442_vm0, %v5759_v0  ;;  %493 = vst.msk [vmem:[#allocation2 + $0x188] sm:$0xff] %vm442_vm0, %v5759_v0  ;;  %v510_v39 = vld [vmem:[%s5976_s30 + $0x60] sm:$0xff]  ;;  %v511_v40 = vld [vmem:[%s5976_s30 + $0x68] sm:$0xff] }
  0x17   : > { %495 = vst.msk [vmem:[#allocation2 + $0x198] sm:$0xff] %vm442_vm0, %v5759_v0  ;;  %496 = vst.msk [vmem:[#allocation2 + $0x1a0] sm:$0xff] %vm442_vm0, %v5759_v0  ;;  %v512_v51 = vld [vmem:[%s5976_s30 + $0x70] sm:$0xff]  ;;  %v513_v52 = vld [vmem:[%s5976_s30 + $0x78] sm:$0xff] }
  0x18   : > { %446 = vst.msk [vmem:[#allocation2 + $0x10] sm:$0x3] %vm445_vm1, %v5759_v0  ;;  %449 = vst.msk [vmem:[#allocation2 + $0x28] sm:$0x3] %vm445_vm1, %v5759_v0  ;;  %v514_v59 = vld [vmem:[%s5976_s30 + $0x80] sm:$0xff]  ;;  %v515_v60 = vld [vmem:[%s5976_s30 + $0x88] sm:$0xff] }
  0x19   : > { %452 = vst.msk [vmem:[#allocation2 + $0x40] sm:$0x3] %vm445_vm1, %v5759_v0  ;;  %455 = vst.msk [vmem:[#allocation2 + $0x58] sm:$0x3] %vm445_vm1, %v5759_v0  ;;  %v519_v44 = vld [vmem:[%s5976_s30 + $0xa8] sm:$0xff] }
  0x1a   : > { %458 = vst.msk [vmem:[#allocation2 + $0x70] sm:$0x3] %vm445_vm1, %v5759_v0  ;;  %461 = vst.msk [vmem:[#allocation2 + $0x88] sm:$0x3] %vm445_vm1, %v5759_v0 }
  0x1b   : > { %464 = vst.msk [vmem:[#allocation2 + $0xa0] sm:$0x3] %vm445_vm1, %v5759_v0  ;;  %467 = vst.msk [vmem:[#allocation2 + $0xb8] sm:$0x3] %vm445_vm1, %v5759_v0 }
  0x1c   : > { %470 = vst.msk [vmem:[#allocation2 + $0xd0] sm:$0x3] %vm445_vm1, %v5759_v0  ;;  %473 = vst.msk [vmem:[#allocation2 + $0xe8] sm:$0x3] %vm445_vm1, %v5759_v0 }
  0x1d   : > { %476 = vst.msk [vmem:[#allocation2 + $0x100] sm:$0x3] %vm445_vm1, %v5759_v0  ;;  %479 = vst.msk [vmem:[#allocation2 + $0x118] sm:$0x3] %vm445_vm1, %v5759_v0 }
  0x1e   : > { %482 = vst.msk [vmem:[#allocation2 + $0x130] sm:$0x3] %vm445_vm1, %v5759_v0  ;;  %485 = vst.msk [vmem:[#allocation2 + $0x148] sm:$0x3] %vm445_vm1, %v5759_v0 }
  0x1f   : > { %488 = vst.msk [vmem:[#allocation2 + $0x160] sm:$0x3] %vm445_vm1, %v5759_v0  ;;  %491 = vst.msk [vmem:[#allocation2 + $0x178] sm:$0x3] %vm445_vm1, %v5759_v0  ;;  %v628_v5 = vld [vmem:[#allocation2 + $0xa] sm:$0xff] }
  0x20   : > { %494 = vst.msk [vmem:[#allocation2 + $0x190] sm:$0x3] %vm445_vm1, %v5759_v0  ;;  %497 = vst.msk [vmem:[#allocation2 + $0x1a8] sm:$0x3] %vm445_vm1, %v5759_v0  ;;  %1079 = vrot.lane.b32.xlu1 %v628_v5, %s5761_s15  ;;  %v596_v6 = vld [vmem:[#allocation2 + $0x9] sm:$0xff]  ;;  %vm3125_vm1 = vcmask 1043456  }
  0x21   : > { %531 = vst.msk [vmem:[#allocation2 + $0x19] sm:$0xff] %vm442_vm0, %v498_v1  ;;  %532 = vst.msk [vmem:[#allocation2 + $0x21] sm:$0xff] %vm442_vm0, %v499_v2  ;;  %918 = vrot.lane.b32.xlu0 %v596_v6, %s5760_s14 }
  0x22   : > { %533 = vst.msk [vmem:[#allocation2 + $0x31] sm:$0xff] %vm442_vm0, %v500_v3  ;;  %534 = vst.msk [vmem:[#allocation2 + $0x39] sm:$0xff] %vm442_vm0, %v501_v7 }
  0x23   : > { %535 = vst.msk [vmem:[#allocation2 + $0x49] sm:$0xff] %vm442_vm0, %v502_v8  ;;  %536 = vst.msk [vmem:[#allocation2 + $0x51] sm:$0xff] %vm442_vm0, %v503_v9 }
  0x24   : > { %537 = vst.msk [vmem:[#allocation2 + $0x61] sm:$0xff] %vm442_vm0, %v504_v10  ;;  %538 = vst.msk [vmem:[#allocation2 + $0x69] sm:$0xff] %vm442_vm0, %v505_v11 }
  0x25   : > { %539 = vst.msk [vmem:[#allocation2 + $0x79] sm:$0xff] %vm442_vm0, %v506_v12  ;;  %540 = vst.msk [vmem:[#allocation2 + $0x81] sm:$0xff] %vm442_vm0, %v507_v13  ;;  %1077 = vrot.lane.b32.xlu0 %v627_v15, %s5761_s15 }
  0x26   : > { %852 = vst.msk [vmem:[#allocation6] sm:$0xff] %vm442_vm0, %v563_v14  ;;  %853 = vst.msk [vmem:[#allocation6 + $0x10] sm:$0xff] %vm442_vm0, %v564_v16 }
  0x27   : > { %541 = vst.msk [vmem:[#allocation2 + $0x91] sm:$0xff] %vm442_vm0, %v508_v31  ;;  %542 = vst.msk [vmem:[#allocation2 + $0x99] sm:$0xff] %vm442_vm0, %v509_v32 }
  0x28   : > { %v597_v17 = vld [vmem:[#allocation2 + $0x19] sm:$0xff]  ;;  %v598_v20 = vld [vmem:[#allocation2 + $0x21] sm:$0xff]  ;;  %543 = vst.msk [vmem:[#allocation2 + $0xa9] sm:$0xff] %vm442_vm0, %v510_v39  ;;  %544 = vst.msk [vmem:[#allocation2 + $0xb1] sm:$0xff] %vm442_vm0, %v511_v40 }
  0x29   : > { %920 = vrot.lane.b32.xlu1 %v597_v17, %s5760_s14  ;;  %v659_v18 = vld [vmem:[#allocation2 + $0x18] sm:$0xff]  ;;  %v660_v19 = vld [vmem:[#allocation2 + $0x20] sm:$0xff]  ;;  %v661_v21 = vld [vmem:[#allocation2 + $0x30] sm:$0xff]  ;;  %545 = vst.msk [vmem:[#allocation2 + $0xc1] sm:$0xff] %vm442_vm0, %v512_v51 }
  0x2a   : > { %v662_v22 = vld [vmem:[#allocation2 + $0x38] sm:$0xff]  ;;  %854 = vst.msk [vmem:[#allocation6 + $0x20] sm:$0xff] %vm442_vm0, %v659_v18  ;;  %855 = vst.msk [vmem:[#allocation6 + $0x30] sm:$0xff] %vm442_vm0, %v660_v19  ;;  %v6009_v24 = vld [vmem:[#allocation2 + $0x48] sm:$0xff] }
  0x2b   : > { %v629_v23 = vld [vmem:[#allocation2 + $0x1a] sm:$0xff]  ;;  %856 = vst.msk [vmem:[#allocation6 + $0x40] sm:$0xff] %vm442_vm0, %v661_v21  ;;  %857 = vst.msk [vmem:[#allocation6 + $0x50] sm:$0xff] %vm442_vm0, %v662_v22  ;;  %v6011_v25 = vld [vmem:[#allocation2 + $0x50] sm:$0xff] }
  0x2c   : > { %858 = vst.msk [vmem:[#allocation6 + $0x60] sm:$0xff] %vm442_vm0, %v6009_v24  ;;  %859 = vst.msk [vmem:[#allocation6 + $0x70] sm:$0xff] %vm442_vm0, %v6011_v25  ;;  %1081 = vrot.lane.b32.xlu0 %v629_v23, %s5761_s15  ;;  %v630_v26 = vld [vmem:[#allocation2 + $0x22] sm:$0xff]  ;;  %v6027_v29 = vld [vmem:[#allocation2 + $0x78] sm:$0xff] }
  0x2d   : > { %922 = vrot.lane.b32.xlu1 %v598_v20, %s5760_s14  ;;  %v6019_v27 = vld [vmem:[#allocation2 + $0x60] sm:$0xff]  ;;  %v6021_v28 = vld [vmem:[#allocation2 + $0x68] sm:$0xff]  ;;  %862 = vst.msk [vmem:[#allocation6 + $0xa0] sm:$0xff] %vm442_vm0, %v6027_v29  ;;  %v693_v35 = vld [vmem:[#allocation2 + $0x31] sm:$0xff] }
  0x2e   : > { %860 = vst.msk [vmem:[#allocation6 + $0x80] sm:$0xff] %vm442_vm0, %v6019_v27  ;;  %861 = vst.msk [vmem:[#allocation6 + $0x90] sm:$0xff] %vm442_vm0, %v6021_v28  ;;  %v6029_v30 = vld [vmem:[#allocation2 + $0x80] sm:$0xff]  ;;  %v6045_v33 = vld [vmem:[#allocation2 + $0x90] sm:$0xff] }
  0x2f   : > { %863 = vst.msk [vmem:[#allocation6 + $0xb0] sm:$0xff] %vm442_vm0, %v6029_v30  ;;  %v6047_v34 = vld [vmem:[#allocation2 + $0x98] sm:$0xff]  ;;  %864 = vst.msk [vmem:[#allocation6 + $0xc0] sm:$0xff] %vm442_vm0, %v6045_v33  ;;  %v6068_v41 = vld [vmem:[#allocation2 + $0xa8] sm:$0xff] }
  0x30   : > { %1238 = vrot.lane.b32.xlu0 %v659_v18, %s5762_s16  ;;  %865 = vst.msk [vmem:[#allocation6 + $0xd0] sm:$0xff] %vm442_vm0, %v6047_v34  ;;  %v694_v36 = vld [vmem:[#allocation2 + $0x39] sm:$0xff]  ;;  %866 = vst.msk [vmem:[#allocation6 + $0xe0] sm:$0xff] %vm442_vm0, %v6068_v41  ;;  %v6072_v42 = vld [vmem:[#allocation2 + $0xb0] sm:$0xff] }
  0x31   : > { %1083 = vrot.lane.b32.xlu1 %v630_v26, %s5761_s15  ;;  %v725_v37 = vld [vmem:[#allocation2 + $0x32] sm:$0xff]  ;;  %v726_v38 = vld [vmem:[#allocation2 + $0x3a] sm:$0xff]  ;;  %867 = vst.msk [vmem:[#allocation6 + $0xf0] sm:$0xff] %vm442_vm0, %v6072_v42  ;;  %v790_v43 = vld [vmem:[#allocation2 + $0x49] sm:$0xff] }
  0x32   : > { %v791_v45 = vld [vmem:[#allocation2 + $0x51] sm:$0xff]  ;;  %546 = vst.msk [vmem:[#allocation2 + $0xc9] sm:$0xff] %vm442_vm0, %v513_v52  ;;  %v6113_v53 = vld [vmem:[#allocation2 + $0xc0] sm:$0xff]  ;;  %v698_v56 = vld [vmem:[#allocation2 + $0x69] sm:$0xff] }
  0x33   : > { %v822_v49 = vld [vmem:[#allocation2 + $0x4a] sm:$0xff]  ;;  %v823_v50 = vld [vmem:[#allocation2 + $0x52] sm:$0xff]  ;;  %868 = vst.msk [vmem:[#allocation6 + $0x100] sm:$0xff] %vm442_vm0, %v6113_v53  ;;  %v697_v55 = vld [vmem:[#allocation2 + $0x61] sm:$0xff] }
  0x34   : > { %1242 = vrot.lane.b32.xlu0 %v661_v21, %s5762_s16  ;;  %v729_v57 = vld [vmem:[#allocation2 + $0x62] sm:$0xff]  ;;  %v730_v58 = vld [vmem:[#allocation2 + $0x6a] sm:$0xff]  ;;  %547 = vst.msk [vmem:[#allocation2 + $0xd9] sm:$0xff] %vm442_vm0, %v514_v59  ;;  %548 = vst.msk [vmem:[#allocation2 + $0xe1] sm:$0xff] %vm442_vm0, %v515_v60 }
  0x35   : > { %1240 = vrot.lane.b32.xlu1 %v660_v19, %s5762_s16  ;;  %v6152_v63 = vld [vmem:[#allocation2 + $0x79] sm:$0xff]  ;;  %v6158_v3 = vld [vmem:[#allocation2 + $0x81] sm:$0xff]  ;;  %552 = vst.msk [vmem:[#allocation2 + $0x111] sm:$0xff] %vm442_vm0, %v519_v44 }
  0x36   : > { %v6169_v8 = vld [vmem:[#allocation2 + $0x7a] sm:$0xff]  ;;  %v6176_v10 = vld [vmem:[#allocation2 + $0x82] sm:$0xff]  ;;  %2501 = vst.msk [vmem:[#allocation3 + $0x30] sm:$0xff] %vm2493_vm12, %v5759_v0  ;;  %2502 = vst.msk [vmem:[#allocation3 + $0x38] sm:$0xff] %vm2493_vm12, %v5759_v0 }
  0x37   : > { %v518_v39 = vld [vmem:[%s5976_s30 + $0xa0] sm:$0xff]  ;;  %2494 = vst.msk [vmem:[#allocation3] sm:$0xff] %vm2493_vm12, %v5759_v0  ;;  %2495 = vst.msk [vmem:[#allocation3 + $0x8] sm:$0xff] %vm2493_vm12, %v5759_v0 }
  0x38   : > { %1399 = vrot.lane.b32.xlu0 %v597_v17, %s5763_s17  ;;  %v516_v17 = vld [vmem:[%s5976_s30 + $0x90] sm:$0xff]  ;;  %551 = vst.msk [vmem:[#allocation2 + $0x109] sm:$0xff] %vm442_vm0, %v518_v39  ;;  %v523_v39 = vld [vmem:[%s5976_s30 + $0xc8] sm:$0xff] }
  0x39   : > { %1244 = vrot.lane.b32.xlu1 %v662_v22, %s5762_s16  ;;  %v6117_v54 = vld [vmem:[#allocation2 + $0xc8] sm:$0xff]  ;;  %549 = vst.msk [vmem:[#allocation2 + $0xf1] sm:$0xff] %vm442_vm0, %v516_v17  ;;  %v521_v17 = vld [vmem:[%s5976_s30 + $0xb8] sm:$0xff]  ;;  %556 = vst.msk [vmem:[#allocation2 + $0x141] sm:$0xff] %vm442_vm0, %v523_v39 }
  0x3a   : > { %869 = vst.msk [vmem:[#allocation6 + $0x110] sm:$0xff] %vm442_vm0, %v6117_v54  ;;  %554 = vst.msk [vmem:[#allocation2 + $0x129] sm:$0xff] %vm442_vm0, %v521_v17 }
  0x3b   : > { %v6141_v61 = vld [vmem:[#allocation2 + $0xd8] sm:$0xff]  ;;  %v6145_v62 = vld [vmem:[#allocation2 + $0xe0] sm:$0xff]  ;;  %2498 = vst.msk [vmem:[#allocation3 + $0x18] sm:$0xff] %vm2493_vm12, %v5759_v0  ;;  %2499 = vst.msk [vmem:[#allocation3 + $0x20] sm:$0xff] %vm2493_vm12, %v5759_v0 }
  0x3c   : > { %1403 = vrot.lane.b32.xlu0 %v693_v35, %s5763_s17  ;;  %870 = vst.msk [vmem:[#allocation6 + $0x120] sm:$0xff] %vm442_vm0, %v6141_v61  ;;  %871 = vst.msk [vmem:[#allocation6 + $0x130] sm:$0xff] %vm442_vm0, %v6145_v62 }
  0x3d   : > { %1401 = vrot.lane.b32.xlu1 %v598_v20, %s5763_s17  ;;  %v517_v20 = vld [vmem:[%s5976_s30 + $0x98] sm:$0xff]  ;;  %2504 = vst.msk [vmem:[#allocation3 + $0x48] sm:$0xff] %vm2493_vm12, %v5759_v0  ;;  %2505 = vst.msk [vmem:[#allocation3 + $0x50] sm:$0xff] %vm2493_vm12, %v5759_v0 }
  0x3e   : > { %550 = vst.msk [vmem:[#allocation2 + $0xf9] sm:$0xff] %vm442_vm0, %v517_v20 }
  0x3f   : > { %v6266_v47 = vld [vmem:[#allocation2 + $0x108] sm:$0xff]  ;;  %2507 = vst.msk [vmem:[#allocation3 + $0x60] sm:$0xff] %vm2493_vm12, %v5759_v0  ;;  %2508 = vst.msk [vmem:[#allocation3 + $0x68] sm:$0xff] %vm2493_vm12, %v5759_v0 }
  0x40   : > { %1560 = vrot.lane.b32.xlu0 %v629_v23, %s5764_s18  ;;  %v6210_v23 = vld [vmem:[#allocation2 + $0xf0] sm:$0xff]  ;;  %874 = vst.msk [vmem:[#allocation6 + $0x160] sm:$0xff] %vm442_vm0, %v6266_v47 }
  0x41   : > { %1405 = vrot.lane.b32.xlu1 %v694_v36, %s5763_s17  ;;  %872 = vst.msk [vmem:[#allocation6 + $0x140] sm:$0xff] %vm442_vm0, %v6210_v23 }
  0x42   : > { %2510 = vst.msk [vmem:[#allocation3 + $0x78] sm:$0xff] %vm2493_vm12, %v5759_v0  ;;  %2511 = vst.msk [vmem:[#allocation3 + $0x80] sm:$0xff] %vm2493_vm12, %v5759_v0 }
  0x43   : > { %2513 = vst.msk [vmem:[#allocation3 + $0x90] sm:$0xff] %vm2493_vm12, %v5759_v0  ;;  %2514 = vst.msk [vmem:[#allocation3 + $0x98] sm:$0xff] %vm2493_vm12, %v5759_v0 }
  0x44   : > { %1564 = vrot.lane.b32.xlu0 %v725_v37, %s5764_s18  ;;  %2516 = vst.msk [vmem:[#allocation3 + $0xa8] sm:$0xff] %vm2493_vm12, %v5759_v0  ;;  %2517 = vst.msk [vmem:[#allocation3 + $0xb0] sm:$0xff] %vm2493_vm12, %v5759_v0 }
  0x45   : > { %1562 = vrot.lane.b32.xlu1 %v630_v26, %s5764_s18  ;;  %v6215_v26 = vld [vmem:[#allocation2 + $0xf8] sm:$0xff]  ;;  %2519 = vst.msk [vmem:[#allocation3 + $0xc0] sm:$0xff] %vm2493_vm12, %v5759_v0  ;;  %2520 = vst.msk [vmem:[#allocation3 + $0xc8] sm:$0xff] %vm2493_vm12, %v5759_v0 }
  0x46   : > { %873 = vst.msk [vmem:[#allocation6 + $0x150] sm:$0xff] %vm442_vm0, %v6215_v26 }
  0x47   : > { %2522 = vst.msk [vmem:[#allocation3 + $0xd8] sm:$0xff] %vm2493_vm12, %v5759_v0  ;;  %2523 = vst.msk [vmem:[#allocation3 + $0xe0] sm:$0xff] %vm2493_vm12, %v5759_v0 }
  0x48   : > { %1721 = vrot.lane.b32.xlu0 %v661_v21, %s5765_s19  ;;  %2525 = vst.msk [vmem:[#allocation3 + $0xf0] sm:$0xff] %vm2493_vm12, %v5759_v0  ;;  %2526 = vst.msk [vmem:[#allocation3 + $0xf8] sm:$0xff] %vm2493_vm12, %v5759_v0 }
  0x49   : > { %1566 = vrot.lane.b32.xlu1 %v726_v38, %s5764_s18  ;;  %2528 = vst.msk [vmem:[#allocation3 + $0x108] sm:$0xff] %vm2493_vm12, %v5759_v0  ;;  %2529 = vst.msk [vmem:[#allocation3 + $0x110] sm:$0xff] %vm2493_vm12, %v5759_v0 }
  0x4a   : > { %2531 = vst.msk [vmem:[#allocation3 + $0x120] sm:$0xff] %vm2493_vm12, %v5759_v0  ;;  %2532 = vst.msk [vmem:[#allocation3 + $0x128] sm:$0xff] %vm2493_vm12, %v5759_v0 }
  0x4b   : > { %2534 = vst.msk [vmem:[#allocation3 + $0x138] sm:$0xff] %vm2493_vm12, %v5759_v0  ;;  %2535 = vst.msk [vmem:[#allocation3 + $0x140] sm:$0xff] %vm2493_vm12, %v5759_v0 }
  0x4c   : > { %1725 = vrot.lane.b32.xlu0 %v6009_v24, %s5765_s19  ;;  %2537 = vst.msk [vmem:[#allocation3 + $0x150] sm:$0xff] %vm2493_vm12, %v5759_v0  ;;  %2538 = vst.msk [vmem:[#allocation3 + $0x158] sm:$0xff] %vm2493_vm12, %v5759_v0 }
  0x4d   : > { %1723 = vrot.lane.b32.xlu1 %v662_v22, %s5765_s19  ;;  %2540 = vst.msk [vmem:[#allocation3 + $0x168] sm:$0xff] %vm2493_vm12, %v5759_v0  ;;  %2541 = vst.msk [vmem:[#allocation3 + $0x170] sm:$0xff] %vm2493_vm12, %v5759_v0 }
  0x4e   : > { %2543 = vst.msk [vmem:[#allocation3 + $0x180] sm:$0xff] %vm2493_vm12, %v5759_v0  ;;  %2544 = vst.msk [vmem:[#allocation3 + $0x188] sm:$0xff] %vm2493_vm12, %v5759_v0 }
  0x4f   : > { %2503 = vst.msk [vmem:[#allocation3 + $0x40] sm:$0x3] %vm2496_vm13, %v5759_v0  ;;  %2497 = vst.msk [vmem:[#allocation3 + $0x10] sm:$0x3] %vm2496_vm13, %v5759_v0 }
  0x50   : > { %1882 = vrot.lane.b32.xlu0 %v693_v35, %s5766_s20  ;;  %2500 = vst.msk [vmem:[#allocation3 + $0x28] sm:$0x3] %vm2496_vm13, %v5759_v0  ;;  %2506 = vst.msk [vmem:[#allocation3 + $0x58] sm:$0x3] %vm2496_vm13, %v5759_v0 }
  0x51   : > { %1727 = vrot.lane.b32.xlu1 %v6011_v25, %s5765_s19  ;;  %2509 = vst.msk [vmem:[#allocation3 + $0x70] sm:$0x3] %vm2496_vm13, %v5759_v0  ;;  %2512 = vst.msk [vmem:[#allocation3 + $0x88] sm:$0x3] %vm2496_vm13, %v5759_v0 }
  0x52   : > { %2515 = vst.msk [vmem:[#allocation3 + $0xa0] sm:$0x3] %vm2496_vm13, %v5759_v0  ;;  %2518 = vst.msk [vmem:[#allocation3 + $0xb8] sm:$0x3] %vm2496_vm13, %v5759_v0 }
  0x53   : > { %2521 = vst.msk [vmem:[#allocation3 + $0xd0] sm:$0x3] %vm2496_vm13, %v5759_v0  ;;  %2524 = vst.msk [vmem:[#allocation3 + $0xe8] sm:$0x3] %vm2496_vm13, %v5759_v0 }
  0x54   : > { %1886 = vrot.lane.b32.xlu0 %v790_v43, %s5766_s20  ;;  %2527 = vst.msk [vmem:[#allocation3 + $0x100] sm:$0x3] %vm2496_vm13, %v5759_v0  ;;  %2530 = vst.msk [vmem:[#allocation3 + $0x118] sm:$0x3] %vm2496_vm13, %v5759_v0 }
  0x55   : > { %1884 = vrot.lane.b32.xlu1 %v694_v36, %s5766_s20  ;;  %2533 = vst.msk [vmem:[#allocation3 + $0x130] sm:$0x3] %vm2496_vm13, %v5759_v0  ;;  %2536 = vst.msk [vmem:[#allocation3 + $0x148] sm:$0x3] %vm2496_vm13, %v5759_v0 }
  0x56   : > { %2539 = vst.msk [vmem:[#allocation3 + $0x160] sm:$0x3] %vm2496_vm13, %v5759_v0  ;;  %2542 = vst.msk [vmem:[#allocation3 + $0x178] sm:$0x3] %vm2496_vm13, %v5759_v0 }
  0x57   : > { %2545 = vst.msk [vmem:[#allocation3 + $0x190] sm:$0x3] %vm2496_vm13, %v5759_v0  ;;  %vm3387_vm13 = vcmask 392448  }
  0x58   : > { %2043 = vrot.lane.b32.xlu0 %v725_v37, %s5767_s28 }
  0x59   : > { %1888 = vrot.lane.b32.xlu1 %v791_v45, %s5766_s20 }
  0x5c   : > { %924 = vrot.lane.b32.xlu0 %v693_v35, %s5760_s14 }
  0x5d   : > { %2045 = vrot.lane.b32.xlu1 %v726_v38, %s5767_s28 }
  0x60   : > { %2047 = vrot.lane.b32.xlu0 %v822_v49, %s5767_s28 }
  0x61   : > { %926 = vrot.lane.b32.xlu1 %v694_v36, %s5760_s14  ;;  %v6240_v36 = vld [vmem:[#allocation2 + $0x92] sm:$0xff] }
  0x64   : > { %928 = vrot.lane.b32.xlu0 %v790_v43, %s5760_s14 }
  0x65   : > { %2049 = vrot.lane.b32.xlu1 %v823_v50, %s5767_s28 }
  0x68   : > { %1085 = vrot.lane.b32.xlu0 %v725_v37, %s5761_s15 }
  0x69   : > { %930 = vrot.lane.b32.xlu1 %v791_v45, %s5760_s14 }
  0x6c   : > { %1089 = vrot.lane.b32.xlu0 %v822_v49, %s5761_s15 }
  0x6d   : > { %1087 = vrot.lane.b32.xlu1 %v726_v38, %s5761_s15  ;;  %v6248_v38 = vld [vmem:[#allocation2 + $0x9a] sm:$0xff] }
  0x70   : > { %1246 = vrot.lane.b32.xlu0 %v6009_v24, %s5762_s16 }
  0x71   : > { %1091 = vrot.lane.b32.xlu1 %v823_v50, %s5761_s15 }
  0x74   : > { %1250 = vrot.lane.b32.xlu0 %v6019_v27, %s5762_s16 }
  0x75   : > { %1248 = vrot.lane.b32.xlu1 %v6011_v25, %s5762_s16 }
  0x78   : > { %1407 = vrot.lane.b32.xlu0 %v790_v43, %s5763_s17 }
  0x79   : > { %1252 = vrot.lane.b32.xlu1 %v6021_v28, %s5762_s16 }
  0x7c   : > { %1411 = vrot.lane.b32.xlu0 %v697_v55, %s5763_s17 }
  0x7d   : > { %1409 = vrot.lane.b32.xlu1 %v791_v45, %s5763_s17 }
  0x80   : > { %1568 = vrot.lane.b32.xlu0 %v822_v49, %s5764_s18  ;;  %v917_v1 = vpop.permute.xlu0 %916  ;;  %v6271_v49 = vld [vmem:[#allocation2 + $0x110] sm:$0xff] }
  0x81   : > { %1413 = vrot.lane.b32.xlu1 %v698_v56, %s5763_s17  ;;  %1013 = vst.msk [vmem:[#allocation6] sm:$0xff] %vm1012_vm3, %v917_v1 }
  0x82   : > { %875 = vst.msk [vmem:[#allocation6 + $0x170] sm:$0xff] %vm442_vm0, %v6271_v49 }
  0x84   : > { %1572 = vrot.lane.b32.xlu0 %v729_v57, %s5764_s18 }
  0x85   : > { %1570 = vrot.lane.b32.xlu1 %v823_v50, %s5764_s18  ;;  %v6280_v50 = vld [vmem:[#allocation2 + $0xa9] sm:$0xff] }
  0x88   : > { %1729 = vrot.lane.b32.xlu0 %v6019_v27, %s5765_s19 }
  0x89   : > { %1574 = vrot.lane.b32.xlu1 %v730_v58, %s5764_s18 }
  0x8c   : > { %1733 = vrot.lane.b32.xlu0 %v6027_v29, %s5765_s19 }
  0x8d   : > { %1731 = vrot.lane.b32.xlu1 %v6021_v28, %s5765_s19  ;;  %v6224_v28 = vld [vmem:[#allocation2 + $0x91] sm:$0xff] }
  0x90   : > { %1890 = vrot.lane.b32.xlu0 %v697_v55, %s5766_s20 }
  0x91   : > { %1735 = vrot.lane.b32.xlu1 %v6029_v30, %s5765_s19 }
  0x92   : > { %v1080_v2 = vpop.permute.xlu1 %1079 }
  0x93   : > { %v919_v4 = vpop.permute.xlu0 %918 }
  0x94   : > { %1894 = vrot.lane.b32.xlu0 %v6152_v63, %s5766_s20  ;;  %1014 = vst.msk [vmem:[#allocation6 + $0x10] sm:$0xff] %vm1012_vm3, %v919_v4  ;;  %v6303_v4 = vld [vmem:[#allocation2 + $0xaa] sm:$0xff] }
  0x95   : > { %1892 = vrot.lane.b32.xlu1 %v698_v56, %s5766_s20  ;;  %1175 = vst.msk [vmem:[#allocation6 + $0x10] sm:$0xff] %vm1173_vm4, %v1080_v2 }
  0x97   : > { %v1078_v6 = vpop.permute.xlu0 %1077 }
  0x98   : > { %2051 = vrot.lane.b32.xlu0 %v729_v57, %s5767_s28  ;;  %1174 = vst.msk [vmem:[#allocation6] sm:$0xff] %vm1173_vm4, %v1078_v6 }
  0x99   : > { %1896 = vrot.lane.b32.xlu1 %v6158_v3, %s5766_s20 }
  0x9b   : > { %v921_v5 = vpop.permute.xlu1 %920 }
  0x9c   : > { %1015 = vst.msk [vmem:[#allocation6 + $0x20] sm:$0xff] %vm1012_vm3, %v921_v5  ;;  %932 = vrot.lane.b32.xlu0 %v697_v55, %s5760_s14  ;;  %v6288_v55 = vld [vmem:[#allocation2 + $0xb1] sm:$0xff] }
  0x9d   : > { %2053 = vrot.lane.b32.xlu1 %v730_v58, %s5767_s28 }
  0x9e   : > { %v1082_v9 = vpop.permute.xlu0 %1081 }
  0x9f   : > { %v923_v7 = vpop.permute.xlu1 %922  ;;  %1176 = vst.msk [vmem:[#allocation6 + $0x20] sm:$0xff] %vm1173_vm4, %v1082_v9 }
  0xa0   : > { %1016 = vst.msk [vmem:[#allocation6 + $0x30] sm:$0xff] %vm1012_vm3, %v923_v7  ;;  %2055 = vrot.lane.b32.xlu0 %v6169_v8, %s5767_s28  ;;  %v6312_v7 = vld [vmem:[#allocation2 + $0xb2] sm:$0xff] }
  0xa1   : > { %934 = vrot.lane.b32.xlu1 %v698_v56, %s5760_s14 }
  0xa2   : > { %v1239_v12 = vpop.permute.xlu0 %1238 }
  0xa3   : > { %v1084_v11 = vpop.permute.xlu1 %1083  ;;  %1335 = vst.msk [vmem:[#allocation6] sm:$0xff] %vm1334_vm5, %v1239_v12 }
  0xa4   : > { %1177 = vst.msk [vmem:[#allocation6 + $0x30] sm:$0xff] %vm1173_vm4, %v1084_v11  ;;  %936 = vrot.lane.b32.xlu0 %v6152_v63, %s5760_s14 }
  0xa5   : > { %2057 = vrot.lane.b32.xlu1 %v6176_v10, %s5767_s28 }
  0xa6   : > { %v1243_v14 = vpop.permute.xlu0 %1242 }
  0xa7   : > { %v1241_v13 = vpop.permute.xlu1 %1240  ;;  %1337 = vst.msk [vmem:[#allocation6 + $0x20] sm:$0xff] %vm1334_vm5, %v1243_v14  ;;  %v520_v14 = vld [vmem:[%s5976_s30 + $0xb0] sm:$0xff] }
  0xa8   : > { %1336 = vst.msk [vmem:[#allocation6 + $0x10] sm:$0xff] %vm1334_vm5, %v1241_v13  ;;  %1093 = vrot.lane.b32.xlu0 %v729_v57, %s5761_s15 }
  0xa9   : > { %938 = vrot.lane.b32.xlu1 %v6158_v3, %s5760_s14  ;;  %553 = vst.msk [vmem:[#allocation2 + $0x121] sm:$0xff] %vm442_vm0, %v520_v14  ;;  %v525_v14 = vld [vmem:[%s5976_s30 + $0xd8] sm:$0xff] }
  0xaa   : > { %v1400_v16 = vpop.permute.xlu0 %1399  ;;  %558 = vst.msk [vmem:[#allocation2 + $0x159] sm:$0xff] %vm442_vm0, %v525_v14 }
  0xab   : > { %v1245_v15 = vpop.permute.xlu1 %1244  ;;  %1496 = vst.msk [vmem:[#allocation6] sm:$0xff] %vm1495_vm6, %v1400_v16 }
  0xac   : > { %1338 = vst.msk [vmem:[#allocation6 + $0x30] sm:$0xff] %vm1334_vm5, %v1245_v15  ;;  %1097 = vrot.lane.b32.xlu0 %v6169_v8, %s5761_s15 }
  0xad   : > { %1095 = vrot.lane.b32.xlu1 %v730_v58, %s5761_s15 }
  0xae   : > { %v1404_v19 = vpop.permute.xlu0 %1403 }
  0xaf   : > { %v1402_v18 = vpop.permute.xlu1 %1401  ;;  %1498 = vst.msk [vmem:[#allocation6 + $0x20] sm:$0xff] %vm1495_vm6, %v1404_v19 }
  0xb0   : > { %1497 = vst.msk [vmem:[#allocation6 + $0x10] sm:$0xff] %vm1495_vm6, %v1402_v18  ;;  %1254 = vrot.lane.b32.xlu0 %v6027_v29, %s5762_s16  ;;  %v6348_v20 = vld [vmem:[#allocation2 + $0x120] sm:$0xff] }
  0xb1   : > { %1099 = vrot.lane.b32.xlu1 %v6176_v10, %s5761_s15  ;;  %876 = vst.msk [vmem:[#allocation6 + $0x180] sm:$0xff] %vm442_vm0, %v6348_v20 }
  0xb2   : > { %v1561_v22 = vpop.permute.xlu0 %1560 }
  0xb3   : > { %v1406_v21 = vpop.permute.xlu1 %1405  ;;  %1657 = vst.msk [vmem:[#allocation6] sm:$0xff] %vm1656_vm7, %v1561_v22  ;;  %v6353_v22 = vld [vmem:[#allocation2 + $0x128] sm:$0xff] }
  0xb4   : > { %1499 = vst.msk [vmem:[#allocation6 + $0x30] sm:$0xff] %vm1495_vm6, %v1406_v21  ;;  %1258 = vrot.lane.b32.xlu0 %v6045_v33, %s5762_s16 }
  0xb5   : > { %1256 = vrot.lane.b32.xlu1 %v6029_v30, %s5762_s16  ;;  %v6232_v30 = vld [vmem:[#allocation2 + $0x99] sm:$0xff]  ;;  %877 = vst.msk [vmem:[#allocation6 + $0x190] sm:$0xff] %vm442_vm0, %v6353_v22 }
  0xb6   : > { %v1565_v25 = vpop.permute.xlu0 %1564 }
  0xb7   : > { %v1563_v24 = vpop.permute.xlu1 %1562  ;;  %1659 = vst.msk [vmem:[#allocation6 + $0x20] sm:$0xff] %vm1656_vm7, %v1565_v25 }
  0xb8   : > { %1658 = vst.msk [vmem:[#allocation6 + $0x10] sm:$0xff] %vm1656_vm7, %v1563_v24  ;;  %1415 = vrot.lane.b32.xlu0 %v6152_v63, %s5763_s17  ;;  %v6362_v24 = vld [vmem:[#allocation2 + $0xc1] sm:$0xff] }
  0xb9   : > { %1260 = vrot.lane.b32.xlu1 %v6047_v34, %s5762_s16 }
  0xba   : > { %v1722_v29 = vpop.permute.xlu0 %1721 }
  0xbb   : > { %v1567_v27 = vpop.permute.xlu1 %1566  ;;  %1818 = vst.msk [vmem:[#allocation6] sm:$0xff] %vm1817_vm8, %v1722_v29 }
  0xbc   : > { %1660 = vst.msk [vmem:[#allocation6 + $0x30] sm:$0xff] %vm1656_vm7, %v1567_v27  ;;  %1419 = vrot.lane.b32.xlu0 %v6224_v28, %s5763_s17  ;;  %v6370_v27 = vld [vmem:[#allocation2 + $0xc9] sm:$0xff] }
  0xbd   : > { %1417 = vrot.lane.b32.xlu1 %v6158_v3, %s5763_s17 }
  0xbe   : > { %v1726_v32 = vpop.permute.xlu0 %1725 }
  0xbf   : > { %v1724_v31 = vpop.permute.xlu1 %1723  ;;  %1820 = vst.msk [vmem:[#allocation6 + $0x20] sm:$0xff] %vm1817_vm8, %v1726_v32 }
  0xc0   : > { %1819 = vst.msk [vmem:[#allocation6 + $0x10] sm:$0xff] %vm1817_vm8, %v1724_v31  ;;  %1576 = vrot.lane.b32.xlu0 %v6169_v8, %s5764_s18  ;;  %v6378_v31 = vld [vmem:[#allocation2 + $0xc2] sm:$0xff] }
  0xc1   : > { %1421 = vrot.lane.b32.xlu1 %v6232_v30, %s5763_s17 }
  0xc2   : > { %v1883_v37 = vpop.permute.xlu0 %1882 }
  0xc3   : > { %v1728_v35 = vpop.permute.xlu1 %1727  ;;  %1979 = vst.msk [vmem:[#allocation6] sm:$0xff] %vm1978_vm9, %v1883_v37 }
  0xc4   : > { %1821 = vst.msk [vmem:[#allocation6 + $0x30] sm:$0xff] %vm1817_vm8, %v1728_v35  ;;  %1580 = vrot.lane.b32.xlu0 %v6240_v36, %s5764_s18  ;;  %v6386_v35 = vld [vmem:[#allocation2 + $0xca] sm:$0xff] }
  0xc5   : > { %1578 = vrot.lane.b32.xlu1 %v6176_v10, %s5764_s18 }
  0xc6   : > { %v1887_v43 = vpop.permute.xlu0 %1886 }
  0xc7   : > { %v1885_v40 = vpop.permute.xlu1 %1884  ;;  %1981 = vst.msk [vmem:[#allocation6 + $0x20] sm:$0xff] %vm1978_vm9, %v1887_v43 }
  0xc8   : > { %1980 = vst.msk [vmem:[#allocation6 + $0x10] sm:$0xff] %vm1978_vm9, %v1885_v40  ;;  %1737 = vrot.lane.b32.xlu0 %v6045_v33, %s5765_s19 }
  0xc9   : > { %1582 = vrot.lane.b32.xlu1 %v6248_v38, %s5764_s18 }
  0xca   : > { %v2044_v46 = vpop.permute.xlu0 %2043 }
  0xcb   : > { %v1889_v45 = vpop.permute.xlu1 %1888  ;;  %2140 = vst.msk [vmem:[#allocation6] sm:$0xff] %vm2139_vm10, %v2044_v46 }
  0xcc   : > { %1982 = vst.msk [vmem:[#allocation6 + $0x30] sm:$0xff] %vm1978_vm9, %v1889_v45  ;;  %1741 = vrot.lane.b32.xlu0 %v6068_v41, %s5765_s19 }
  0xcd   : > { %1739 = vrot.lane.b32.xlu1 %v6047_v34, %s5765_s19 }
  0xce   : > { %v925_v33 = vpop.permute.xlu0 %924 }
  0xcf   : > { %v2046_v48 = vpop.permute.xlu1 %2045  ;;  %1017 = vst.msk [vmem:[#allocation6 + $0x40] sm:$0xff] %vm1012_vm3, %v925_v33 }
  0xd0   : > { %2141 = vst.msk [vmem:[#allocation6 + $0x10] sm:$0xff] %vm2139_vm10, %v2046_v48  ;;  %1898 = vrot.lane.b32.xlu0 %v6224_v28, %s5766_s20  ;;  %v6418_v48 = vld [vmem:[#allocation2 + $0xd9] sm:$0xff] }
  0xd1   : > { %1743 = vrot.lane.b32.xlu1 %v6072_v42, %s5765_s19 }
  0xd2   : > { %v2048_v51 = vpop.permute.xlu0 %2047  ;;  %v2172_v52 = vld [vmem:[#allocation6] sm:$0xff] }
  0xd3   : > { %v927_v34 = vpop.permute.xlu1 %926  ;;  %2142 = vst.msk [vmem:[#allocation6 + $0x20] sm:$0xff] %vm2139_vm10, %v2048_v51 }
  0xd4   : > { %1018 = vst.msk [vmem:[#allocation6 + $0x50] sm:$0xff] %vm1012_vm3, %v927_v34  ;;  %1902 = vrot.lane.b32.xlu0 %v6280_v50, %s5766_s20 }
  0xd5   : > { %1900 = vrot.lane.b32.xlu1 %v6232_v30, %s5766_s20 }
  0xd6   : > { %v929_v58 = vpop.permute.xlu0 %928 }
  0xd7   : > { %v2050_v56 = vpop.permute.xlu1 %2049  ;;  %v2173_v57 = vld [vmem:[#allocation6 + $0x10] sm:$0xff]  ;;  %1019 = vst.msk [vmem:[#allocation6 + $0x60] sm:$0xff] %vm1012_vm3, %v929_v58 }
  0xd8   : > { %2143 = vst.msk [vmem:[#allocation6 + $0x30] sm:$0xff] %vm2139_vm10, %v2050_v56  ;;  %v2204_v59 = vpack.c.bf16 %v2173_v57, %v2172_v52  ;;  %2059 = vrot.lane.b32.xlu0 %v6240_v36, %s5767_s28 }
  0xd9   : > { %1904 = vrot.lane.b32.xlu1 %v6288_v55, %s5766_s20 }
  0xda   : > { %5546 = vmatprep.mubr.msk.bf16.mxu0 %vm2247_vm11, %v2204_v59  ;;  %v1086_v63 = vpop.permute.xlu0 %1085  ;;  %v2174_v1 = vld [vmem:[#allocation6 + $0x20] sm:$0xff] }
  0xdb   : > { %v931_v60 = vpop.permute.xlu1 %930  ;;  %1178 = vst.msk [vmem:[#allocation6 + $0x40] sm:$0xff] %vm1173_vm4, %v1086_v63 }
  0xdc   : > { %1020 = vst.msk [vmem:[#allocation6 + $0x70] sm:$0xff] %vm1012_vm3, %v931_v60  ;;  %940 = vrot.lane.b32.xlu0 %v6224_v28, %s5760_s14 }
  0xdd   : > { %2061 = vrot.lane.b32.xlu1 %v6248_v38, %s5767_s28 }
  0xde   : > { %v1090_v5 = vpop.permute.xlu0 %1089 }
  0xdf   : > { %v1088_v2 = vpop.permute.xlu1 %1087  ;;  %v2175_v3 = vld [vmem:[#allocation6 + $0x30] sm:$0xff]  ;;  %1180 = vst.msk [vmem:[#allocation6 + $0x60] sm:$0xff] %vm1173_vm4, %v1090_v5 }
  0xe0   : > { %1179 = vst.msk [vmem:[#allocation6 + $0x50] sm:$0xff] %vm1173_vm4, %v1088_v2  ;;  %v2205_v6 = vpack.c.bf16 %v2175_v3, %v2174_v1  ;;  %2063 = vrot.lane.b32.xlu0 %v6303_v4, %s5767_s28  ;;  %v6441_v1 = vld [vmem:[#allocation2 + $0xda] sm:$0xff] }
  0xe1   : > { %942 = vrot.lane.b32.xlu1 %v6232_v30, %s5760_s14 }
  0xe2   : > { %5547 = vmatmul.mubr.msk.bf16.vlgmr.msra.gmra.mrb[0].mxu0 %vm2247_vm11, %v2205_v6  ;;  %v1247_v9 = vpop.permute.xlu0 %1246 }
  0xe3   : > { %v1092_v8 = vpop.permute.xlu1 %1091  ;;  %1339 = vst.msk [vmem:[#allocation6 + $0x40] sm:$0xff] %vm1334_vm5, %v1247_v9 }
  0xe4   : > { %1181 = vst.msk [vmem:[#allocation6 + $0x70] sm:$0xff] %vm1173_vm4, %v1092_v8  ;;  %944 = vrot.lane.b32.xlu0 %v6280_v50, %s5760_s14 }
  0xe5   : > { %2065 = vrot.lane.b32.xlu1 %v6312_v7, %s5767_s28 }
  0xe6   : > { %v1251_v11 = vpop.permute.xlu0 %1250 }
  0xe7   : > { %v1249_v10 = vpop.permute.xlu1 %1248  ;;  %1341 = vst.msk [vmem:[#allocation6 + $0x60] sm:$0xff] %vm1334_vm5, %v1251_v11  ;;  %v524_v11 = vld [vmem:[%s5976_s30 + $0xd0] sm:$0xff] }
  0xe8   : > { %1340 = vst.msk [vmem:[#allocation6 + $0x50] sm:$0xff] %vm1334_vm5, %v1249_v10  ;;  %1101 = vrot.lane.b32.xlu0 %v6240_v36, %s5761_s15  ;;  %v522_v36 = vld [vmem:[%s5976_s30 + $0xc0] sm:$0xff] }
  0xe9   : > { %946 = vrot.lane.b32.xlu1 %v6288_v55, %s5760_s14  ;;  %555 = vst.msk [vmem:[#allocation2 + $0x139] sm:$0xff] %vm442_vm0, %v522_v36  ;;  %557 = vst.msk [vmem:[#allocation2 + $0x151] sm:$0xff] %vm442_vm0, %v524_v11  ;;  %v527_v36 = vld [vmem:[%s5976_s30 + $0xe8] sm:$0xff]  ;;  %v529_v11 = vld [vmem:[%s5976_s30 + $0xf8] sm:$0xff] }
  0xea   : > { %v1408_v13 = vpop.permute.xlu0 %1407  ;;  %560 = vst.msk [vmem:[#allocation2 + $0x171] sm:$0xff] %vm442_vm0, %v527_v36  ;;  %562 = vst.msk [vmem:[#allocation2 + $0x189] sm:$0xff] %vm442_vm0, %v529_v11  ;;  %v6770_v36 = vld [vmem:[#allocation2 + $0x141] sm:$0xff] }
  0xeb   : > { %v1253_v12 = vpop.permute.xlu1 %1252  ;;  %1500 = vst.msk [vmem:[#allocation6 + $0x40] sm:$0xff] %vm1495_vm6, %v1408_v13 }
  0xec   : > { %1342 = vst.msk [vmem:[#allocation6 + $0x70] sm:$0xff] %vm1334_vm5, %v1253_v12  ;;  %1105 = vrot.lane.b32.xlu0 %v6303_v4, %s5761_s15 }
  0xed   : > { %1103 = vrot.lane.b32.xlu1 %v6248_v38, %s5761_s15 }
  0xee   : > { %v1412_v16 = vpop.permute.xlu0 %1411 }
  0xef   : > { %v1410_v15 = vpop.permute.xlu1 %1409  ;;  %1502 = vst.msk [vmem:[#allocation6 + $0x60] sm:$0xff] %vm1495_vm6, %v1412_v16 }
  0xf0   : > { %1501 = vst.msk [vmem:[#allocation6 + $0x50] sm:$0xff] %vm1495_vm6, %v1410_v15  ;;  %1262 = vrot.lane.b32.xlu0 %v6068_v41, %s5762_s16  ;;  %v6404_v44 = vld [vmem:[#allocation2 + $0x138] sm:$0xff]  ;;  %v6409_v46 = vld [vmem:[#allocation2 + $0x140] sm:$0xff]  ;;  %v6486_v17 = vld [vmem:[#allocation2 + $0x150] sm:$0xff] }
  0xf1   : > { %1107 = vrot.lane.b32.xlu1 %v6312_v7, %s5761_s15  ;;  %878 = vst.msk [vmem:[#allocation6 + $0x1a0] sm:$0xff] %vm442_vm0, %v6404_v44  ;;  %879 = vst.msk [vmem:[#allocation6 + $0x1b0] sm:$0xff] %vm442_vm0, %v6409_v46 }
  0xf2   : > { %v1569_v19 = vpop.permute.xlu0 %1568  ;;  %880 = vst.msk [vmem:[#allocation6 + $0x1c0] sm:$0xff] %vm442_vm0, %v6486_v17 }
  0xf3   : > { %v1414_v18 = vpop.permute.xlu1 %1413  ;;  %1661 = vst.msk [vmem:[#allocation6 + $0x40] sm:$0xff] %vm1656_vm7, %v1569_v19  ;;  %v6491_v19 = vld [vmem:[#allocation2 + $0x158] sm:$0xff] }
  0xf4   : > { %1503 = vst.msk [vmem:[#allocation6 + $0x70] sm:$0xff] %vm1495_vm6, %v1414_v18  ;;  %1266 = vrot.lane.b32.xlu0 %v6113_v53, %s5762_s16 }
  0xf5   : > { %1264 = vrot.lane.b32.xlu1 %v6072_v42, %s5762_s16  ;;  %881 = vst.msk [vmem:[#allocation6 + $0x1d0] sm:$0xff] %vm442_vm0, %v6491_v19 }
  0xf6   : > { %v1573_v41 = vpop.permute.xlu0 %1572 }
  0xf7   : > { %v1571_v21 = vpop.permute.xlu1 %1570  ;;  %1663 = vst.msk [vmem:[#allocation6 + $0x60] sm:$0xff] %vm1656_vm7, %v1573_v41 }
  0xf8   : > { %1662 = vst.msk [vmem:[#allocation6 + $0x50] sm:$0xff] %vm1656_vm7, %v1571_v21  ;;  %1423 = vrot.lane.b32.xlu0 %v6280_v50, %s5763_s17  ;;  %v6426_v50 = vld [vmem:[#allocation2 + $0xe1] sm:$0xff]  ;;  %v6568_v21 = vld [vmem:[#allocation2 + $0xf1] sm:$0xff] }
  0xf9   : > { %1268 = vrot.lane.b32.xlu1 %v6117_v54, %s5762_s16 }
  0xfa   : > { %v1730_v25 = vpop.permute.xlu0 %1729 }
  0xfb   : > { %v1575_v42 = vpop.permute.xlu1 %1574  ;;  %1822 = vst.msk [vmem:[#allocation6 + $0x40] sm:$0xff] %vm1817_vm8, %v1730_v25 }
  0xfc   : > { %1664 = vst.msk [vmem:[#allocation6 + $0x70] sm:$0xff] %vm1656_vm7, %v1575_v42  ;;  %1427 = vrot.lane.b32.xlu0 %v6362_v24, %s5763_s17  ;;  %v6610_v42 = vld [vmem:[#allocation2 + $0xf9] sm:$0xff] }
  0xfd   : > { %1425 = vrot.lane.b32.xlu1 %v6288_v55, %s5763_s17 }
  0xfe   : > { %v1734_v29 = vpop.permute.xlu0 %1733 }
  0xff   : > { %v1732_v28 = vpop.permute.xlu1 %1731  ;;  %1824 = vst.msk [vmem:[#allocation6 + $0x60] sm:$0xff] %vm1817_vm8, %v1734_v29 }
 0x100   : > { %1823 = vst.msk [vmem:[#allocation6 + $0x50] sm:$0xff] %vm1817_vm8, %v1732_v28  ;;  %1584 = vrot.lane.b32.xlu0 %v6303_v4, %s5764_s18  ;;  %v6450_v4 = vld [vmem:[#allocation2 + $0xe2] sm:$0xff]  ;;  %v6618_v28 = vld [vmem:[#allocation2 + $0xf2] sm:$0xff] }
 0x101   : > { %1429 = vrot.lane.b32.xlu1 %v6370_v27, %s5763_s17 }
 0x102   : > { %v1891_v32 = vpop.permute.xlu0 %1890 }
 0x103   : > { %v1736_v30 = vpop.permute.xlu1 %1735  ;;  %1983 = vst.msk [vmem:[#allocation6 + $0x40] sm:$0xff] %vm1978_vm9, %v1891_v32 }
 0x104   : > { %1825 = vst.msk [vmem:[#allocation6 + $0x70] sm:$0xff] %vm1817_vm8, %v1736_v30  ;;  %1588 = vrot.lane.b32.xlu0 %v6378_v31, %s5764_s18  ;;  %v6626_v30 = vld [vmem:[#allocation2 + $0xfa] sm:$0xff] }
 0x105   : > { %1586 = vrot.lane.b32.xlu1 %v6312_v7, %s5764_s18 }
 0x106   : > { %v1895_v38 = vpop.permute.xlu0 %1894 }
 0x107   : > { %v1893_v37 = vpop.permute.xlu1 %1892  ;;  %1985 = vst.msk [vmem:[#allocation6 + $0x60] sm:$0xff] %vm1978_vm9, %v1895_v38 }
 0x108   : > { %1984 = vst.msk [vmem:[#allocation6 + $0x50] sm:$0xff] %vm1978_vm9, %v1893_v37  ;;  %1745 = vrot.lane.b32.xlu0 %v6113_v53, %s5765_s19 }
 0x109   : > { %1590 = vrot.lane.b32.xlu1 %v6386_v35, %s5764_s18 }
 0x10a   : > { %v2052_v43 = vpop.permute.xlu0 %2051 }
 0x10b   : > { %v1897_v40 = vpop.permute.xlu1 %1896  ;;  %2144 = vst.msk [vmem:[#allocation6 + $0x40] sm:$0xff] %vm2139_vm10, %v2052_v43 }
 0x10c   : > { %1986 = vst.msk [vmem:[#allocation6 + $0x70] sm:$0xff] %vm1978_vm9, %v1897_v40  ;;  %1749 = vrot.lane.b32.xlu0 %v6141_v61, %s5765_s19 }
 0x10d   : > { %1747 = vrot.lane.b32.xlu1 %v6117_v54, %s5765_s19 }
 0x10e   : > { %v933_v53 = vpop.permute.xlu0 %932 }
 0x10f   : > { %v2054_v45 = vpop.permute.xlu1 %2053  ;;  %1021 = vst.msk [vmem:[#allocation6 + $0x80] sm:$0xff] %vm1012_vm3, %v933_v53 }
 0x110   : > { %2145 = vst.msk [vmem:[#allocation6 + $0x50] sm:$0xff] %vm2139_vm10, %v2054_v45  ;;  %1906 = vrot.lane.b32.xlu0 %v6362_v24, %s5766_s20  ;;  %v6658_v45 = vld [vmem:[#allocation2 + $0x109] sm:$0xff] }
 0x111   : > { %1751 = vrot.lane.b32.xlu1 %v6145_v62, %s5765_s19 }
 0x112   : > { %v2056_v33 = vpop.permute.xlu0 %2055  ;;  %v2176_v34 = vld [vmem:[#allocation6 + $0x40] sm:$0xff] }
 0x113   : > { %v935_v54 = vpop.permute.xlu1 %934  ;;  %2146 = vst.msk [vmem:[#allocation6 + $0x60] sm:$0xff] %vm2139_vm10, %v2056_v33 }
 0x114   : > { %1022 = vst.msk [vmem:[#allocation6 + $0x90] sm:$0xff] %vm1012_vm3, %v935_v54  ;;  %1910 = vrot.lane.b32.xlu0 %v6418_v48, %s5766_s20 }
 0x115   : > { %1908 = vrot.lane.b32.xlu1 %v6370_v27, %s5766_s20 }
 0x116   : > { %v937_v55 = vpop.permute.xlu0 %936 }
 0x117   : > { %v2058_v51 = vpop.permute.xlu1 %2057  ;;  %v2177_v52 = vld [vmem:[#allocation6 + $0x50] sm:$0xff]  ;;  %1023 = vst.msk [vmem:[#allocation6 + $0xa0] sm:$0xff] %vm1012_vm3, %v937_v55 }
 0x118   : > { %2147 = vst.msk [vmem:[#allocation6 + $0x70] sm:$0xff] %vm2139_vm10, %v2058_v51  ;;  %v2206_v56 = vpack.c.bf16 %v2177_v52, %v2176_v34  ;;  %2067 = vrot.lane.b32.xlu0 %v6378_v31, %s5767_s28 }
 0x119   : > { %1912 = vrot.lane.b32.xlu1 %v6426_v50, %s5766_s20 }
 0x11a   : > { %5550 = vmatprep.mubr.msk.bf16.mxu0 %vm2247_vm11, %v2206_v56  ;;  %v1094_v58 = vpop.permute.xlu0 %1093  ;;  %v2178_v59 = vld [vmem:[#allocation6 + $0x60] sm:$0xff] }
 0x11b   : > { %v939_v57 = vpop.permute.xlu1 %938  ;;  %1182 = vst.msk [vmem:[#allocation6 + $0x80] sm:$0xff] %vm1173_vm4, %v1094_v58 }
 0x11c   : > { %1024 = vst.msk [vmem:[#allocation6 + $0xb0] sm:$0xff] %vm1012_vm3, %v939_v57  ;;  %948 = vrot.lane.b32.xlu0 %v6362_v24, %s5760_s14 }
 0x11d   : > { %2069 = vrot.lane.b32.xlu1 %v6386_v35, %s5767_s28 }
 0x11e   : > { %v1098_v2 = vpop.permute.xlu0 %1097 }
 0x11f   : > { %v1096_v60 = vpop.permute.xlu1 %1095  ;;  %v2179_v63 = vld [vmem:[#allocation6 + $0x70] sm:$0xff]  ;;  %1184 = vst.msk [vmem:[#allocation6 + $0xa0] sm:$0xff] %vm1173_vm4, %v1098_v2 }
 0x120   : > { %1183 = vst.msk [vmem:[#allocation6 + $0x90] sm:$0xff] %vm1173_vm4, %v1096_v60  ;;  %v2207_v3 = vpack.c.bf16 %v2179_v63, %v2178_v59  ;;  %2071 = vrot.lane.b32.xlu0 %v6441_v1, %s5767_s28  ;;  %v838_v59 = vld [vmem:[#allocation2 + $0x10a] sm:$0xff] }
 0x121   : > { %950 = vrot.lane.b32.xlu1 %v6370_v27, %s5760_s14 }
 0x122   : > { %5551 = vmatmul.mubr.msk.bf16.gmra.mrb[4].mxu0 %vm2247_vm11, %v2207_v3  ;;  %v1255_v6 = vpop.permute.xlu0 %1254 }
 0x123   : > { %v1100_v5 = vpop.permute.xlu1 %1099  ;;  %1343 = vst.msk [vmem:[#allocation6 + $0x80] sm:$0xff] %vm1334_vm5, %v1255_v6 }
 0x124   : > { %1185 = vst.msk [vmem:[#allocation6 + $0xb0] sm:$0xff] %vm1173_vm4, %v1100_v5  ;;  %952 = vrot.lane.b32.xlu0 %v6418_v48, %s5760_s14 }
 0x125   : > { %2073 = vrot.lane.b32.xlu1 %v6450_v4, %s5767_s28 }
 0x126   : > { %v1259_v8 = vpop.permute.xlu0 %1258 }
 0x127   : > { %v1257_v7 = vpop.permute.xlu1 %1256  ;;  %1345 = vst.msk [vmem:[#allocation6 + $0xa0] sm:$0xff] %vm1334_vm5, %v1259_v8  ;;  %v528_v8 = vld [vmem:[%s5976_s30 + $0xf0] sm:$0xff] }
 0x128   : > { %1344 = vst.msk [vmem:[#allocation6 + $0x90] sm:$0xff] %vm1334_vm5, %v1257_v7  ;;  %1109 = vrot.lane.b32.xlu0 %v6378_v31, %s5761_s15  ;;  %v526_v31 = vld [vmem:[%s5976_s30 + $0xe0] sm:$0xff]  ;;  %s5774_s30 = smov 80  }
 0x129   : > { %954 = vrot.lane.b32.xlu1 %v6426_v50, %s5760_s14  ;;  %559 = vst.msk [vmem:[#allocation2 + $0x169] sm:$0xff] %vm442_vm0, %v526_v31  ;;  %561 = vst.msk [vmem:[#allocation2 + $0x181] sm:$0xff] %vm442_vm0, %v528_v8 }
 0x12a   : > { %v1416_v10 = vpop.permute.xlu0 %1415 }
 0x12b   : > { %v1261_v9 = vpop.permute.xlu1 %1260  ;;  %1504 = vst.msk [vmem:[#allocation6 + $0x80] sm:$0xff] %vm1495_vm6, %v1416_v10 }
 0x12c   : > { %1346 = vst.msk [vmem:[#allocation6 + $0xb0] sm:$0xff] %vm1334_vm5, %v1261_v9  ;;  %1113 = vrot.lane.b32.xlu0 %v6441_v1, %s5761_s15 }
 0x12d   : > { %1111 = vrot.lane.b32.xlu1 %v6386_v35, %s5761_s15 }
 0x12e   : > { %v1420_v13 = vpop.permute.xlu0 %1419 }
 0x12f   : > { %v1418_v12 = vpop.permute.xlu1 %1417  ;;  %1506 = vst.msk [vmem:[#allocation6 + $0xa0] sm:$0xff] %vm1495_vm6, %v1420_v13 }
 0x130   : > { %1505 = vst.msk [vmem:[#allocation6 + $0x90] sm:$0xff] %vm1495_vm6, %v1418_v12  ;;  %1270 = vrot.lane.b32.xlu0 %v6141_v61, %s5762_s16  ;;  %v6644_v39 = vld [vmem:[#allocation2 + $0x168] sm:$0xff]  ;;  %v6649_v43 = vld [vmem:[#allocation2 + $0x170] sm:$0xff] }
 0x131   : > { %1115 = vrot.lane.b32.xlu1 %v6450_v4, %s5761_s15  ;;  %882 = vst.msk [vmem:[#allocation6 + $0x1e0] sm:$0xff] %vm442_vm0, %v6644_v39  ;;  %883 = vst.msk [vmem:[#allocation6 + $0x1f0] sm:$0xff] %vm442_vm0, %v6649_v43  ;;  %vm2796_vm0 = vcmask 195712  }
 0x132   : > { %v1577_v16 = vpop.permute.xlu0 %1576 }
 0x133   : > { %v1422_v15 = vpop.permute.xlu1 %1421  ;;  %1665 = vst.msk [vmem:[#allocation6 + $0x80] sm:$0xff] %vm1656_vm7, %v1577_v16  ;;  %v713_v16 = vld [vmem:[#allocation2 + $0x121] sm:$0xff] }
 0x134   : > { %1507 = vst.msk [vmem:[#allocation6 + $0xb0] sm:$0xff] %vm1495_vm6, %v1422_v15  ;;  %1274 = vrot.lane.b32.xlu0 %v6210_v23, %s5762_s16 }
 0x135   : > { %1272 = vrot.lane.b32.xlu1 %v6145_v62, %s5762_s16 }
 0x136   : > { %v1581_v61 = vpop.permute.xlu0 %1580 }
 0x137   : > { %v1579_v18 = vpop.permute.xlu1 %1578  ;;  %1667 = vst.msk [vmem:[#allocation6 + $0xa0] sm:$0xff] %vm1656_vm7, %v1581_v61 }
 0x138   : > { %1666 = vst.msk [vmem:[#allocation6 + $0x90] sm:$0xff] %vm1656_vm7, %v1579_v18  ;;  %1431 = vrot.lane.b32.xlu0 %v6418_v48, %s5763_s17  ;;  %v6666_v48 = vld [vmem:[#allocation2 + $0x111] sm:$0xff]  ;;  %v6729_v18 = vld [vmem:[#allocation2 + $0x129] sm:$0xff] }
 0x139   : > { %1276 = vrot.lane.b32.xlu1 %v6215_v26, %s5762_s16 }
 0x13a   : > { %v1738_v41 = vpop.permute.xlu0 %1737 }
 0x13b   : > { %v1583_v62 = vpop.permute.xlu1 %1582  ;;  %1826 = vst.msk [vmem:[#allocation6 + $0x80] sm:$0xff] %vm1817_vm8, %v1738_v41  ;;  %v6736_v41 = vld [vmem:[#allocation2 + $0x122] sm:$0xff] }
 0x13c   : > { %1668 = vst.msk [vmem:[#allocation6 + $0xb0] sm:$0xff] %vm1656_vm7, %v1583_v62  ;;  %1435 = vrot.lane.b32.xlu0 %v6568_v21, %s5763_s17 }
 0x13d   : > { %1433 = vrot.lane.b32.xlu1 %v6426_v50, %s5763_s17 }
 0x13e   : > { %v1742_v25 = vpop.permute.xlu0 %1741 }
 0x13f   : > { %v1740_v24 = vpop.permute.xlu1 %1739  ;;  %1828 = vst.msk [vmem:[#allocation6 + $0xa0] sm:$0xff] %vm1817_vm8, %v1742_v25 }
 0x140   : > { %1827 = vst.msk [vmem:[#allocation6 + $0x90] sm:$0xff] %vm1817_vm8, %v1740_v24  ;;  %1592 = vrot.lane.b32.xlu0 %v6441_v1, %s5764_s18  ;;  %v839_v1 = vld [vmem:[#allocation2 + $0x112] sm:$0xff]  ;;  %v6743_v24 = vld [vmem:[#allocation2 + $0x12a] sm:$0xff] }
 0x141   : > { %1437 = vrot.lane.b32.xlu1 %v6610_v42, %s5763_s17 }
 0x142   : > { %v1899_v29 = vpop.permute.xlu0 %1898 }
 0x143   : > { %v1744_v27 = vpop.permute.xlu1 %1743  ;;  %1987 = vst.msk [vmem:[#allocation6 + $0x80] sm:$0xff] %vm1978_vm9, %v1899_v29 }
 0x144   : > { %1829 = vst.msk [vmem:[#allocation6 + $0xb0] sm:$0xff] %vm1817_vm8, %v1744_v27  ;;  %1596 = vrot.lane.b32.xlu0 %v6618_v28, %s5764_s18 }
 0x145   : > { %1594 = vrot.lane.b32.xlu1 %v6450_v4, %s5764_s18 }
 0x146   : > { %v1903_v35 = vpop.permute.xlu0 %1902 }
 0x147   : > { %v1901_v32 = vpop.permute.xlu1 %1900  ;;  %1989 = vst.msk [vmem:[#allocation6 + $0xa0] sm:$0xff] %vm1978_vm9, %v1903_v35 }
 0x148   : > { %1988 = vst.msk [vmem:[#allocation6 + $0x90] sm:$0xff] %vm1978_vm9, %v1901_v32  ;;  %1753 = vrot.lane.b32.xlu0 %v6210_v23, %s5765_s19  ;;  %v6762_v32 = vld [vmem:[#allocation2 + $0x139] sm:$0xff] }
 0x149   : > { %1598 = vrot.lane.b32.xlu1 %v6626_v30, %s5764_s18 }
 0x14a   : > { %v2060_v38 = vpop.permute.xlu0 %2059 }
 0x14b   : > { %v1905_v37 = vpop.permute.xlu1 %1904  ;;  %2148 = vst.msk [vmem:[#allocation6 + $0x80] sm:$0xff] %vm2139_vm10, %v2060_v38 }
 0x14c   : > { %1990 = vst.msk [vmem:[#allocation6 + $0xb0] sm:$0xff] %vm1978_vm9, %v1905_v37  ;;  %1757 = vrot.lane.b32.xlu0 %v6266_v47, %s5765_s19 }
 0x14d   : > { %1755 = vrot.lane.b32.xlu1 %v6215_v26, %s5765_s19 }
 0x14e   : > { %v941_v23 = vpop.permute.xlu0 %940 }
 0x14f   : > { %v2062_v40 = vpop.permute.xlu1 %2061  ;;  %1025 = vst.msk [vmem:[#allocation6 + $0xc0] sm:$0xff] %vm1012_vm3, %v941_v23 }
 0x150   : > { %2149 = vst.msk [vmem:[#allocation6 + $0x90] sm:$0xff] %vm2139_vm10, %v2062_v40  ;;  %1914 = vrot.lane.b32.xlu0 %v6568_v21, %s5766_s20 }
 0x151   : > { %1759 = vrot.lane.b32.xlu1 %v6271_v49, %s5765_s19 }
 0x152   : > { %v2064_v53 = vpop.permute.xlu0 %2063  ;;  %v2180_v54 = vld [vmem:[#allocation6 + $0x80] sm:$0xff] }
 0x153   : > { %v943_v26 = vpop.permute.xlu1 %942  ;;  %2150 = vst.msk [vmem:[#allocation6 + $0xa0] sm:$0xff] %vm2139_vm10, %v2064_v53 }
 0x154   : > { %1026 = vst.msk [vmem:[#allocation6 + $0xd0] sm:$0xff] %vm1012_vm3, %v943_v26  ;;  %1918 = vrot.lane.b32.xlu0 %v6658_v45, %s5766_s20 }
 0x155   : > { %1916 = vrot.lane.b32.xlu1 %v6610_v42, %s5766_s20 }
 0x156   : > { %v945_v50 = vpop.permute.xlu0 %944 }
 0x157   : > { %v2066_v33 = vpop.permute.xlu1 %2065  ;;  %v2181_v34 = vld [vmem:[#allocation6 + $0x90] sm:$0xff]  ;;  %1027 = vst.msk [vmem:[#allocation6 + $0xe0] sm:$0xff] %vm1012_vm3, %v945_v50 }
 0x158   : > { %2151 = vst.msk [vmem:[#allocation6 + $0xb0] sm:$0xff] %vm2139_vm10, %v2066_v33  ;;  %v2208_v51 = vpack.c.bf16 %v2181_v34, %v2180_v54  ;;  %2075 = vrot.lane.b32.xlu0 %v6618_v28, %s5767_s28  ;;  %v6784_v33 = vld [vmem:[#allocation2 + $0x13a] sm:$0xff] }
 0x159   : > { %1920 = vrot.lane.b32.xlu1 %v6666_v48, %s5766_s20 }
 0x15a   : > { %5554 = vmatprep.mubr.msk.bf16.mxu0 %vm2247_vm11, %v2208_v51  ;;  %v1102_v55 = vpop.permute.xlu0 %1101  ;;  %v2182_v56 = vld [vmem:[#allocation6 + $0xa0] sm:$0xff]  ;;  %v6793_v51 = vld [vmem:[#allocation2 + $0x142] sm:$0xff] }
 0x15b   : > { %v947_v52 = vpop.permute.xlu1 %946  ;;  %1186 = vst.msk [vmem:[#allocation6 + $0xc0] sm:$0xff] %vm1173_vm4, %v1102_v55 }
 0x15c   : > { %1028 = vst.msk [vmem:[#allocation6 + $0xf0] sm:$0xff] %vm1012_vm3, %v947_v52  ;;  %956 = vrot.lane.b32.xlu0 %v6568_v21, %s5760_s14 }
 0x15d   : > { %2077 = vrot.lane.b32.xlu1 %v6626_v30, %s5767_s28 }
 0x15e   : > { %v1106_v60 = vpop.permute.xlu0 %1105 }
 0x15f   : > { %v1104_v57 = vpop.permute.xlu1 %1103  ;;  %v2183_v58 = vld [vmem:[#allocation6 + $0xb0] sm:$0xff]  ;;  %1188 = vst.msk [vmem:[#allocation6 + $0xe0] sm:$0xff] %vm1173_vm4, %v1106_v60 }
 0x160   : > { %1187 = vst.msk [vmem:[#allocation6 + $0xd0] sm:$0xff] %vm1173_vm4, %v1104_v57  ;;  %v2209_v63 = vpack.c.bf16 %v2183_v58, %v2182_v56  ;;  %2079 = vrot.lane.b32.xlu0 %v838_v59, %s5767_s28  ;;  %v6801_v57 = vld [vmem:[#allocation3] ss:$2 sm:$0xff] }
 0x161   : > { %958 = vrot.lane.b32.xlu1 %v6610_v42, %s5760_s14  ;;  %2682 = vst.msk [vmem:[#allocation6] sm:$0xff] %vm2493_vm12, %v6801_v57 }
 0x162   : > { %5555 = vmatmul.mubr.msk.bf16.gmra.mrb[8].mxu0 %vm2247_vm11, %v2209_v63  ;;  %v1263_v3 = vpop.permute.xlu0 %1262 }
 0x163   : > { %v1108_v2 = vpop.permute.xlu1 %1107  ;;  %1347 = vst.msk [vmem:[#allocation6 + $0xc0] sm:$0xff] %vm1334_vm5, %v1263_v3  ;;  %v6826_v3 = vld [vmem:[%s8130_s2] ss:$0 sm:$0xff] }
 0x164   : > { %1189 = vst.msk [vmem:[#allocation6 + $0xf0] sm:$0xff] %vm1173_vm4, %v1108_v2  ;;  %960 = vrot.lane.b32.xlu0 %v6658_v45, %s5760_s14 }
 0x165   : > { %2081 = vrot.lane.b32.xlu1 %v839_v1, %s5767_s28 }
 0x166   : > { %v1267_v5 = vpop.permute.xlu0 %1266 }
 0x167   : > { %v1265_v4 = vpop.permute.xlu1 %1264  ;;  %1349 = vst.msk [vmem:[#allocation6 + $0xe0] sm:$0xff] %vm1334_vm5, %v1267_v5 }
 0x168   : > { %1348 = vst.msk [vmem:[#allocation6 + $0xd0] sm:$0xff] %vm1334_vm5, %v1265_v4  ;;  %1117 = vrot.lane.b32.xlu0 %v6618_v28, %s5761_s15 }
 0x169   : > { %962 = vrot.lane.b32.xlu1 %v6666_v48, %s5760_s14 }
 0x16a   : > { %v1424_v7 = vpop.permute.xlu0 %1423 }
 0x16b   : > { %v1269_v6 = vpop.permute.xlu1 %1268  ;;  %1508 = vst.msk [vmem:[#allocation6 + $0xc0] sm:$0xff] %vm1495_vm6, %v1424_v7 }
 0x16c   : > { %1350 = vst.msk [vmem:[#allocation6 + $0xf0] sm:$0xff] %vm1334_vm5, %v1269_v6  ;;  %1121 = vrot.lane.b32.xlu0 %v838_v59, %s5761_s15 }
 0x16d   : > { %1119 = vrot.lane.b32.xlu1 %v6626_v30, %s5761_s15 }
 0x16e   : > { %v1428_v10 = vpop.permute.xlu0 %1427 }
 0x16f   : > { %v1426_v9 = vpop.permute.xlu1 %1425  ;;  %1510 = vst.msk [vmem:[#allocation6 + $0xe0] sm:$0xff] %vm1495_vm6, %v1428_v10 }
 0x170   : > { %1509 = vst.msk [vmem:[#allocation6 + $0xd0] sm:$0xff] %vm1495_vm6, %v1426_v9  ;;  %1278 = vrot.lane.b32.xlu0 %v6266_v47, %s5762_s16 }
 0x171   : > { %1123 = vrot.lane.b32.xlu1 %v839_v1, %s5761_s15 }
 0x172   : > { %v1585_v13 = vpop.permute.xlu0 %1584 }
 0x173   : > { %v1430_v12 = vpop.permute.xlu1 %1429  ;;  %1669 = vst.msk [vmem:[#allocation6 + $0xc0] sm:$0xff] %vm1656_vm7, %v1585_v13 }
 0x174   : > { %1511 = vst.msk [vmem:[#allocation6 + $0xf0] sm:$0xff] %vm1495_vm6, %v1430_v12  ;;  %1282 = vrot.lane.b32.xlu0 %v6348_v20, %s5762_s16 }
 0x175   : > { %1280 = vrot.lane.b32.xlu1 %v6271_v49, %s5762_s16 }
 0x176   : > { %v1589_v15 = vpop.permute.xlu0 %1588 }
 0x177   : > { %v1587_v14 = vpop.permute.xlu1 %1586  ;;  %1671 = vst.msk [vmem:[#allocation6 + $0xe0] sm:$0xff] %vm1656_vm7, %v1589_v15 }
 0x178   : > { %1670 = vst.msk [vmem:[#allocation6 + $0xd0] sm:$0xff] %vm1656_vm7, %v1587_v14  ;;  %1439 = vrot.lane.b32.xlu0 %v6658_v45, %s5763_s17 }
 0x179   : > { %1284 = vrot.lane.b32.xlu1 %v6353_v22, %s5762_s16 }
 0x17a   : > { %v1746_v49 = vpop.permute.xlu0 %1745 }
 0x17b   : > { %v1591_v47 = vpop.permute.xlu1 %1590  ;;  %1830 = vst.msk [vmem:[#allocation6 + $0xc0] sm:$0xff] %vm1817_vm8, %v1746_v49  ;;  %v6846_v49 = vld [vmem:[#allocation2 + $0x151] sm:$0xff] }
 0x17c   : > { %1672 = vst.msk [vmem:[#allocation6 + $0xf0] sm:$0xff] %vm1656_vm7, %v1591_v47  ;;  %1443 = vrot.lane.b32.xlu0 %v713_v16, %s5763_s17 }
 0x17d   : > { %1441 = vrot.lane.b32.xlu1 %v6666_v48, %s5763_s17 }
 0x17e   : > { %v1750_v62 = vpop.permute.xlu0 %1749 }
 0x17f   : > { %v1748_v61 = vpop.permute.xlu1 %1747  ;;  %1832 = vst.msk [vmem:[#allocation6 + $0xe0] sm:$0xff] %vm1817_vm8, %v1750_v62 }
 0x180   : > { %1831 = vst.msk [vmem:[#allocation6 + $0xd0] sm:$0xff] %vm1817_vm8, %v1748_v61  ;;  %1600 = vrot.lane.b32.xlu0 %v838_v59, %s5764_s18  ;;  %v6856_v61 = vld [vmem:[#allocation2 + $0x159] sm:$0xff] }
 0x181   : > { %1445 = vrot.lane.b32.xlu1 %v6729_v18, %s5763_s17 }
 0x182   : > { %v1907_v42 = vpop.permute.xlu0 %1906 }
 0x183   : > { %v1752_v21 = vpop.permute.xlu1 %1751  ;;  %1991 = vst.msk [vmem:[#allocation6 + $0xc0] sm:$0xff] %vm1978_vm9, %v1907_v42  ;;  %v6864_v42 = vld [vmem:[#allocation2 + $0x152] sm:$0xff] }
 0x184   : > { %1833 = vst.msk [vmem:[#allocation6 + $0xf0] sm:$0xff] %vm1817_vm8, %v1752_v21  ;;  %1604 = vrot.lane.b32.xlu0 %v6736_v41, %s5764_s18 }
 0x185   : > { %1602 = vrot.lane.b32.xlu1 %v839_v1, %s5764_s18 }
 0x186   : > { %v1911_v27 = vpop.permute.xlu0 %1910 }
 0x187   : > { %v1909_v25 = vpop.permute.xlu1 %1908  ;;  %1993 = vst.msk [vmem:[#allocation6 + $0xe0] sm:$0xff] %vm1978_vm9, %v1911_v27  ;;  %v6876_v27 = vld [vmem:[#allocation2 + $0x15a] sm:$0xff] }
 0x188   : > { %1992 = vst.msk [vmem:[#allocation6 + $0xd0] sm:$0xff] %vm1978_vm9, %v1909_v25  ;;  %1761 = vrot.lane.b32.xlu0 %v6348_v20, %s5765_s19 }
 0x189   : > { %1606 = vrot.lane.b32.xlu1 %v6743_v24, %s5764_s18 }
 0x18a   : > { %v2068_v29 = vpop.permute.xlu0 %2067 }
 0x18b   : > { %v1913_v28 = vpop.permute.xlu1 %1912  ;;  %2152 = vst.msk [vmem:[#allocation6 + $0xc0] sm:$0xff] %vm2139_vm10, %v2068_v29 }
 0x18c   : > { %1994 = vst.msk [vmem:[#allocation6 + $0xf0] sm:$0xff] %vm1978_vm9, %v1913_v28  ;;  %1765 = vrot.lane.b32.xlu0 %v6404_v44, %s5765_s19 }
 0x18d   : > { %1763 = vrot.lane.b32.xlu1 %v6353_v22, %s5765_s19 }
 0x18e   : > { %v949_v31 = vpop.permute.xlu0 %948 }
 0x18f   : > { %v2070_v30 = vpop.permute.xlu1 %2069  ;;  %1029 = vst.msk [vmem:[#allocation6 + $0x100] sm:$0xff] %vm1012_vm3, %v949_v31 }
 0x190   : > { %2153 = vst.msk [vmem:[#allocation6 + $0xd0] sm:$0xff] %vm2139_vm10, %v2070_v30  ;;  %1922 = vrot.lane.b32.xlu0 %v713_v16, %s5766_s20 }
 0x191   : > { %1767 = vrot.lane.b32.xlu1 %v6409_v46, %s5765_s19 }
 0x192   : > { %v2072_v22 = vpop.permute.xlu0 %2071  ;;  %v2184_v35 = vld [vmem:[#allocation6 + $0xc0] sm:$0xff] }
 0x193   : > { %v951_v20 = vpop.permute.xlu1 %950  ;;  %2154 = vst.msk [vmem:[#allocation6 + $0xe0] sm:$0xff] %vm2139_vm10, %v2072_v22  ;;  %v6896_v22 = vld [vmem:[#allocation2 + $0x169] sm:$0xff] }
 0x194   : > { %1030 = vst.msk [vmem:[#allocation6 + $0x110] sm:$0xff] %vm1012_vm3, %v951_v20  ;;  %1926 = vrot.lane.b32.xlu0 %v6762_v32, %s5766_s20 }
 0x195   : > { %1924 = vrot.lane.b32.xlu1 %v6729_v18, %s5766_s20 }
 0x196   : > { %v953_v40 = vpop.permute.xlu0 %952 }
 0x197   : > { %v2074_v37 = vpop.permute.xlu1 %2073  ;;  %v2185_v38 = vld [vmem:[#allocation6 + $0xd0] sm:$0xff]  ;;  %1031 = vst.msk [vmem:[#allocation6 + $0x120] sm:$0xff] %vm1012_vm3, %v953_v40 }
 0x198   : > { %2155 = vst.msk [vmem:[#allocation6 + $0xf0] sm:$0xff] %vm2139_vm10, %v2074_v37  ;;  %v2210_v23 = vpack.c.bf16 %v2185_v38, %v2184_v35  ;;  %2083 = vrot.lane.b32.xlu0 %v6736_v41, %s5767_s28 }
 0x199   : > { %1928 = vrot.lane.b32.xlu1 %v6770_v36, %s5766_s20 }
 0x19a   : > { %5558 = vmatprep.mubr.msk.bf16.mxu0 %vm2247_vm11, %v2210_v23  ;;  %v1110_v45 = vpop.permute.xlu0 %1109  ;;  %v2186_v53 = vld [vmem:[#allocation6 + $0xe0] sm:$0xff] }
 0x19b   : > { %v955_v26 = vpop.permute.xlu1 %954  ;;  %1190 = vst.msk [vmem:[#allocation6 + $0x100] sm:$0xff] %vm1173_vm4, %v1110_v45 }
 0x19c   : > { %1032 = vst.msk [vmem:[#allocation6 + $0x130] sm:$0xff] %vm1012_vm3, %v955_v26  ;;  %964 = vrot.lane.b32.xlu0 %v713_v16, %s5760_s14 }
 0x19d   : > { %2085 = vrot.lane.b32.xlu1 %v6743_v24, %s5767_s28 }
 0x19e   : > { %v1114_v34 = vpop.permute.xlu0 %1113 }
 0x19f   : > { %v1112_v54 = vpop.permute.xlu1 %1111  ;;  %v2187_v48 = vld [vmem:[#allocation6 + $0xf0] sm:$0xff]  ;;  %1192 = vst.msk [vmem:[#allocation6 + $0x120] sm:$0xff] %vm1173_vm4, %v1114_v34 }
 0x1a0   : > { %1191 = vst.msk [vmem:[#allocation6 + $0x110] sm:$0xff] %vm1173_vm4, %v1112_v54  ;;  %v2211_v50 = vpack.c.bf16 %v2187_v48, %v2186_v53  ;;  %2087 = vrot.lane.b32.xlu0 %v6784_v33, %s5767_s28 }
 0x1a1   : > { %966 = vrot.lane.b32.xlu1 %v6729_v18, %s5760_s14 }
 0x1a2   : > { %5559 = vmatmul.mubr.msk.bf16.gmra.mrb[12].mxu0 %vm2247_vm11, %v2211_v50  ;;  %v1271_v55 = vpop.permute.xlu0 %1270 }
 0x1a3   : > { %v1116_v52 = vpop.permute.xlu1 %1115  ;;  %1351 = vst.msk [vmem:[#allocation6 + $0x100] sm:$0xff] %vm1334_vm5, %v1271_v55 }
 0x1a4   : > { %1193 = vst.msk [vmem:[#allocation6 + $0x130] sm:$0xff] %vm1173_vm4, %v1116_v52  ;;  %968 = vrot.lane.b32.xlu0 %v6762_v32, %s5760_s14 }
 0x1a5   : > { %2089 = vrot.lane.b32.xlu1 %v6793_v51, %s5767_s28 }
 0x1a6   : > { %v1275_v58 = vpop.permute.xlu0 %1274 }
 0x1a7   : > { %v1273_v56 = vpop.permute.xlu1 %1272  ;;  %1353 = vst.msk [vmem:[#allocation6 + $0x120] sm:$0xff] %vm1334_vm5, %v1275_v58 }
 0x1a8   : > { %1352 = vst.msk [vmem:[#allocation6 + $0x110] sm:$0xff] %vm1334_vm5, %v1273_v56  ;;  %1125 = vrot.lane.b32.xlu0 %v6736_v41, %s5761_s15 }
 0x1a9   : > { %970 = vrot.lane.b32.xlu1 %v6770_v36, %s5760_s14 }
 0x1aa   : > { %v1432_v60 = vpop.permute.xlu0 %1431 }
 0x1ab   : > { %v1277_v59 = vpop.permute.xlu1 %1276  ;;  %1512 = vst.msk [vmem:[#allocation6 + $0x100] sm:$0xff] %vm1495_vm6, %v1432_v60 }
 0x1ac   : > { %1354 = vst.msk [vmem:[#allocation6 + $0x130] sm:$0xff] %vm1334_vm5, %v1277_v59  ;;  %1129 = vrot.lane.b32.xlu0 %v6784_v33, %s5761_s15 }
 0x1ad   : > { %1127 = vrot.lane.b32.xlu1 %v6743_v24, %s5761_s15 }
 0x1ae   : > { %v1436_v1 = vpop.permute.xlu0 %1435 }
 0x1af   : > { %v1434_v63 = vpop.permute.xlu1 %1433  ;;  %1514 = vst.msk [vmem:[#allocation6 + $0x120] sm:$0xff] %vm1495_vm6, %v1436_v1 }
 0x1b0   : > { %1513 = vst.msk [vmem:[#allocation6 + $0x110] sm:$0xff] %vm1495_vm6, %v1434_v63  ;;  %1286 = vrot.lane.b32.xlu0 %v6404_v44, %s5762_s16 }
 0x1b1   : > { %1131 = vrot.lane.b32.xlu1 %v6793_v51, %s5761_s15 }
 0x1b2   : > { %v1593_v4 = vpop.permute.xlu0 %1592 }
 0x1b3   : > { %v1438_v2 = vpop.permute.xlu1 %1437  ;;  %1673 = vst.msk [vmem:[#allocation6 + $0x100] sm:$0xff] %vm1656_vm7, %v1593_v4  ;;  %v689_v4 = vld [vmem:[#allocation2 + $0x180] sm:$0xff] }
 0x1b4   : > { %1515 = vst.msk [vmem:[#allocation6 + $0x130] sm:$0xff] %vm1495_vm6, %v1438_v2  ;;  %1290 = vrot.lane.b32.xlu0 %v6486_v17, %s5762_s16 }
 0x1b5   : > { %1288 = vrot.lane.b32.xlu1 %v6409_v46, %s5762_s16  ;;  %v5548_v5 = vpop.f32.mrb[0].mxu0 }
 0x1b6   : > { %v2343_v6 = vadd.f32 %v5548_v5, %v6826_v3  ;;  %v2334_v7 = vpop.f32.mrb[1].mxu0  ;;  %v1597_v13 = vpop.permute.xlu0 %1596 }
 0x1b7   : > { %v2335_v44 = vadd.f32 %v6826_v3, %v2334_v7  ;;  %v1595_v8 = vpop.permute.xlu1 %1594  ;;  %v5549_v9 = vpop.f32.mrb[2].mxu0  ;;  %1675 = vst.msk [vmem:[#allocation6 + $0x120] sm:$0xff] %vm1656_vm7, %v1597_v13 }
 0x1b8   : > { %v2463_v10 = vmax.f32 %v2343_v6, 0.0  ;;  %1674 = vst.msk [vmem:[#allocation6 + $0x110] sm:$0xff] %vm1656_vm7, %v1595_v8  ;;  %v2346_v11 = vadd.f32 %v5549_v9, %v6826_v3  ;;  %v2337_v12 = vpop.f32.mrb[3].mxu0  ;;  %1447 = vrot.lane.b32.xlu0 %v6762_v32, %s5763_s17  ;;  %v690_v8 = vld [vmem:[#allocation2 + $0x188] sm:$0xff] }
 0x1b9   : > { %v2461_v14 = vmax.f32 %v2335_v44, 0.0  ;;  %v2338_v46 = vadd.f32 %v6826_v3, %v2337_v12  ;;  %1292 = vrot.lane.b32.xlu1 %v6491_v19, %s5762_s16 }
 0x1ba   : > { %2552 = vst.msk [vmem:[#allocation3 + $0x31] sm:$0xff] %vm2493_vm12, %v2463_v10  ;;  %v2464_v15 = vmax.f32 %v2346_v11, 0.0  ;;  %v1754_v18 = vpop.permute.xlu0 %1753 }
 0x1bb   : > { %2550 = vst.msk [vmem:[#allocation3 + $0x19] sm:$0xff] %vm2493_vm12, %v2461_v14  ;;  %v2462_v47 = vmax.f32 %v2338_v46, 0.0  ;;  %v1599_v16 = vpop.permute.xlu1 %1598 }
 0x1bc   : > { %2553 = vst.msk [vmem:[#allocation3 + $0x39] sm:$0xff] %vm2493_vm12, %v2464_v15  ;;  %1451 = vrot.lane.b32.xlu0 %v6846_v49, %s5763_s17 }
 0x1bd   : > { %1676 = vst.msk [vmem:[#allocation6 + $0x130] sm:$0xff] %vm1656_vm7, %v1599_v16  ;;  %1449 = vrot.lane.b32.xlu1 %v6770_v36, %s5763_s17  ;;  %v6904_v36 = vld [vmem:[#allocation2 + $0x171] sm:$0xff] }
 0x1be   : > { %2551 = vst.msk [vmem:[#allocation3 + $0x21] sm:$0xff] %vm2493_vm12, %v2462_v47  ;;  %v1758_v21 = vpop.permute.xlu0 %1757 }
 0x1bf   : > { %1834 = vst.msk [vmem:[#allocation6 + $0x100] sm:$0xff] %vm1817_vm8, %v1754_v18  ;;  %v1756_v62 = vpop.permute.xlu1 %1755  ;;  %1836 = vst.msk [vmem:[#allocation6 + $0x120] sm:$0xff] %vm1817_vm8, %v1758_v21 }
 0x1c0   : > { %1835 = vst.msk [vmem:[#allocation6 + $0x110] sm:$0xff] %vm1817_vm8, %v1756_v62  ;;  %1608 = vrot.lane.b32.xlu0 %v6784_v33, %s5764_s18  ;;  %v6919_v33 = vld [vmem:[#allocation2 + $0x16a] sm:$0xff] }
 0x1c1   : > { %1453 = vrot.lane.b32.xlu1 %v6856_v61, %s5763_s17 }
 0x1c2   : > { %v1915_v25 = vpop.permute.xlu0 %1914 }
 0x1c3   : > { %v1760_v41 = vpop.permute.xlu1 %1759  ;;  %v6866_v24 = vld [vmem:[#allocation3 + $0x30] ss:$2 sm:$0xff]  ;;  %1995 = vst.msk [vmem:[#allocation6 + $0x100] sm:$0xff] %vm1978_vm9, %v1915_v25 }
 0x1c4   : > { %1837 = vst.msk [vmem:[#allocation6 + $0x130] sm:$0xff] %vm1817_vm8, %v1760_v41  ;;  %1612 = vrot.lane.b32.xlu0 %v6864_v42, %s5764_s18 }
 0x1c5   : > { %2683 = vst.msk [vmem:[#allocation6 + $0x10] sm:$0xff] %vm2493_vm12, %v6866_v24  ;;  %1610 = vrot.lane.b32.xlu1 %v6793_v51, %s5764_s18  ;;  %v6928_v51 = vld [vmem:[#allocation2 + $0x172] sm:$0xff] }
 0x1c6   : > { %v1919_v29 = vpop.permute.xlu0 %1918 }
 0x1c7   : > { %v1917_v28 = vpop.permute.xlu1 %1916  ;;  %1997 = vst.msk [vmem:[#allocation6 + $0x120] sm:$0xff] %vm1978_vm9, %v1919_v29 }
 0x1c8   : > { %1996 = vst.msk [vmem:[#allocation6 + $0x110] sm:$0xff] %vm1978_vm9, %v1917_v28  ;;  %1769 = vrot.lane.b32.xlu0 %v6486_v17, %s5765_s19  ;;  %v754_v28 = vld [vmem:[#allocation2 + $0x18a] sm:$0xff] }
 0x1c9   : > { %1614 = vrot.lane.b32.xlu1 %v6876_v27, %s5764_s18 }
 0x1ca   : > { %v2076_v31 = vpop.permute.xlu0 %2075 }
 0x1cb   : > { %v1921_v30 = vpop.permute.xlu1 %1920  ;;  %2156 = vst.msk [vmem:[#allocation6 + $0x100] sm:$0xff] %vm2139_vm10, %v2076_v31 }
 0x1cc   : > { %1998 = vst.msk [vmem:[#allocation6 + $0x130] sm:$0xff] %vm1978_vm9, %v1921_v30  ;;  %1773 = vrot.lane.b32.xlu0 %v6644_v39, %s5765_s19 }
 0x1cd   : > { %1771 = vrot.lane.b32.xlu1 %v6491_v19, %s5765_s19 }
 0x1ce   : > { %v957_v32 = vpop.permute.xlu0 %956 }
 0x1cf   : > { %v2078_v20 = vpop.permute.xlu1 %2077  ;;  %1033 = vst.msk [vmem:[#allocation6 + $0x140] sm:$0xff] %vm1012_vm3, %v957_v32 }
 0x1d0   : > { %2157 = vst.msk [vmem:[#allocation6 + $0x110] sm:$0xff] %vm2139_vm10, %v2078_v20  ;;  %1930 = vrot.lane.b32.xlu0 %v6846_v49, %s5766_s20  ;;  %v786_v20 = vld [vmem:[#allocation2 + $0x198] sm:$0xff] }
 0x1d1   : > { %1775 = vrot.lane.b32.xlu1 %v6649_v43, %s5765_s19 }
 0x1d2   : > { %v2080_v19 = vpop.permute.xlu0 %2079  ;;  %v2188_v35 = vld [vmem:[#allocation6 + $0x100] sm:$0xff] }
 0x1d3   : > { %v959_v17 = vpop.permute.xlu1 %958  ;;  %2158 = vst.msk [vmem:[#allocation6 + $0x120] sm:$0xff] %vm2139_vm10, %v2080_v19 }
 0x1d4   : > { %1034 = vst.msk [vmem:[#allocation6 + $0x150] sm:$0xff] %vm1012_vm3, %v959_v17  ;;  %1934 = vrot.lane.b32.xlu0 %v6896_v22, %s5766_s20  ;;  %v787_v17 = vld [vmem:[#allocation2 + $0x1a0] sm:$0xff] }
 0x1d5   : > { %1932 = vrot.lane.b32.xlu1 %v6856_v61, %s5766_s20 }
 0x1d6   : > { %v961_v40 = vpop.permute.xlu0 %960 }
 0x1d7   : > { %v2082_v37 = vpop.permute.xlu1 %2081  ;;  %v2189_v38 = vld [vmem:[#allocation6 + $0x110] sm:$0xff]  ;;  %1035 = vst.msk [vmem:[#allocation6 + $0x160] sm:$0xff] %vm1012_vm3, %v961_v40 }
 0x1d8   : > { %2159 = vst.msk [vmem:[#allocation6 + $0x130] sm:$0xff] %vm2139_vm10, %v2082_v37  ;;  %v2212_v23 = vpack.c.bf16 %v2189_v38, %v2188_v35  ;;  %2091 = vrot.lane.b32.xlu0 %v6864_v42, %s5767_s28  ;;  %v819_v40 = vld [vmem:[#allocation2 + $0x1a1] sm:$0xff] }
 0x1d9   : > { %1936 = vrot.lane.b32.xlu1 %v6904_v36, %s5766_s20 }
 0x1da   : > { %5562 = vmatprep.mubr.msk.bf16.mxu0 %vm2247_vm11, %v2212_v23  ;;  %v1118_v45 = vpop.permute.xlu0 %1117  ;;  %v2190_v53 = vld [vmem:[#allocation6 + $0x120] sm:$0xff] }
 0x1db   : > { %v963_v26 = vpop.permute.xlu1 %962  ;;  %1194 = vst.msk [vmem:[#allocation6 + $0x140] sm:$0xff] %vm1173_vm4, %v1118_v45 }
 0x1dc   : > { %1036 = vst.msk [vmem:[#allocation6 + $0x170] sm:$0xff] %vm1012_vm3, %v963_v26  ;;  %972 = vrot.lane.b32.xlu0 %v6846_v49, %s5760_s14  ;;  %v721_v49 = vld [vmem:[#allocation2 + $0x181] sm:$0xff] }
 0x1dd   : > { %2093 = vrot.lane.b32.xlu1 %v6876_v27, %s5767_s28 }
 0x1de   : > { %v1122_v34 = vpop.permute.xlu0 %1121 }
 0x1df   : > { %v1120_v54 = vpop.permute.xlu1 %1119  ;;  %v2191_v48 = vld [vmem:[#allocation6 + $0x130] sm:$0xff]  ;;  %1196 = vst.msk [vmem:[#allocation6 + $0x160] sm:$0xff] %vm1173_vm4, %v1122_v34 }
 0x1e0   : > { %1195 = vst.msk [vmem:[#allocation6 + $0x150] sm:$0xff] %vm1173_vm4, %v1120_v54  ;;  %v2213_v50 = vpack.c.bf16 %v2191_v48, %v2190_v53  ;;  %2095 = vrot.lane.b32.xlu0 %v6919_v33, %s5767_s28  ;;  %v850_v48 = vld [vmem:[#allocation2 + $0x19a] sm:$0xff] }
 0x1e1   : > { %974 = vrot.lane.b32.xlu1 %v6856_v61, %s5760_s14  ;;  %v722_v61 = vld [vmem:[#allocation2 + $0x189] sm:$0xff] }
 0x1e2   : > { %5563 = vmatmul.mubr.msk.bf16.gmra.mrb[16].mxu0 %vm2247_vm11, %v2213_v50  ;;  %v1279_v55 = vpop.permute.xlu0 %1278  ;;  %v851_v50 = vld [vmem:[#allocation2 + $0x1a2] sm:$0xff] }
 0x1e3   : > { %v1124_v52 = vpop.permute.xlu1 %1123  ;;  %1355 = vst.msk [vmem:[#allocation6 + $0x140] sm:$0xff] %vm1334_vm5, %v1279_v55  ;;  %v2618_v55 = vld [vmem:[#allocation3 + $0x1] ss:$2 sm:$0xff] }
 0x1e4   : > { %1197 = vst.msk [vmem:[#allocation6 + $0x170] sm:$0xff] %vm1173_vm4, %v1124_v52  ;;  %976 = vrot.lane.b32.xlu0 %v6896_v22, %s5760_s14 }
 0x1e5   : > { %2097 = vrot.lane.b32.xlu1 %v6928_v51, %s5767_s28 }
 0x1e6   : > { %v1283_v58 = vpop.permute.xlu0 %1282 }
 0x1e7   : > { %v1281_v56 = vpop.permute.xlu1 %1280  ;;  %1357 = vst.msk [vmem:[#allocation6 + $0x160] sm:$0xff] %vm1334_vm5, %v1283_v58 }
 0x1e8   : > { %1356 = vst.msk [vmem:[#allocation6 + $0x150] sm:$0xff] %vm1334_vm5, %v1281_v56  ;;  %1133 = vrot.lane.b32.xlu0 %v6864_v42, %s5761_s15  ;;  %v753_v42 = vld [vmem:[#allocation2 + $0x182] sm:$0xff] }
 0x1e9   : > { %978 = vrot.lane.b32.xlu1 %v6904_v36, %s5760_s14  ;;  %s5768_s14 = smov 40  }
 0x1ea   : > { %v1440_v60 = vpop.permute.xlu0 %1439 }
 0x1eb   : > { %v1285_v59 = vpop.permute.xlu1 %1284  ;;  %1516 = vst.msk [vmem:[#allocation6 + $0x140] sm:$0xff] %vm1495_vm6, %v1440_v60 }
 0x1ec   : > { %1358 = vst.msk [vmem:[#allocation6 + $0x170] sm:$0xff] %vm1334_vm5, %v1285_v59  ;;  %1137 = vrot.lane.b32.xlu0 %v6919_v33, %s5761_s15  ;;  %v2584_v59 = vld [vmem:[#allocation3 + $0x10] ss:$2 sm:$0x1] }
 0x1ed   : > { %1135 = vrot.lane.b32.xlu1 %v6876_v27, %s5761_s15 }
 0x1ee   : > { %v1444_v1 = vpop.permute.xlu0 %1443 }
 0x1ef   : > { %v1442_v63 = vpop.permute.xlu1 %1441  ;;  %1518 = vst.msk [vmem:[#allocation6 + $0x160] sm:$0xff] %vm1495_vm6, %v1444_v1  ;;  %v2749_v1 = vrot.slane %v2584_v59, 1 }
 0x1f0   : > { %1517 = vst.msk [vmem:[#allocation6 + $0x150] sm:$0xff] %vm1495_vm6, %v1442_v63  ;;  %1294 = vrot.lane.b32.xlu0 %v6644_v39, %s5762_s16  ;;  %v2748_v63 = vrot.slane %v6801_v57, 1 }
 0x1f1   : > { %1139 = vrot.lane.b32.xlu1 %v6928_v51, %s5761_s15 }
 0x1f2   : > { %v1601_v5 = vpop.permute.xlu0 %1600  ;;  %v2750_v57 = vsel %vm2747_vm14, %v2748_v63, %v2749_v1 }
 0x1f3   : > { %v1446_v2 = vpop.permute.xlu1 %1445  ;;  %1677 = vst.msk [vmem:[#allocation6 + $0x140] sm:$0xff] %vm1656_vm7, %v1601_v5 }
 0x1f4   : > { %1519 = vst.msk [vmem:[#allocation6 + $0x170] sm:$0xff] %vm1495_vm6, %v1446_v2  ;;  %1298 = vrot.lane.b32.xlu0 %v689_v4, %s5762_s16 }
 0x1f5   : > { %1296 = vrot.lane.b32.xlu1 %v6649_v43, %s5762_s16  ;;  %v5552_v6 = vpop.f32.mrb[4].mxu0 }
 0x1f6   : > { %v2359_v7 = vadd.f32 %v5552_v6, %v6826_v3  ;;  %v2350_v44 = vpop.f32.mrb[5].mxu0  ;;  %v1605_v14 = vpop.permute.xlu0 %1604 }
 0x1f7   : > { %v2351_v9 = vadd.f32 %v6826_v3, %v2350_v44  ;;  %v1603_v39 = vpop.permute.xlu1 %1602  ;;  %v5553_v10 = vpop.f32.mrb[6].mxu0  ;;  %1679 = vst.msk [vmem:[#allocation6 + $0x160] sm:$0xff] %vm1656_vm7, %v1605_v14  ;;  %v7046_v14 = vld [vmem:[#allocation3 + $0x18] ss:$2 sm:$0xff] }
 0x1f8   : > { %v2467_v11 = vmax.f32 %v2359_v7, 0.0  ;;  %1678 = vst.msk [vmem:[#allocation6 + $0x150] sm:$0xff] %vm1656_vm7, %v1603_v39  ;;  %v2362_v12 = vadd.f32 %v5553_v10, %v6826_v3  ;;  %v2353_v13 = vpop.f32.mrb[7].mxu0  ;;  %1455 = vrot.lane.b32.xlu0 %v6896_v22, %s5763_s17 }
 0x1f9   : > { %v2465_v46 = vmax.f32 %v2351_v9, 0.0  ;;  %v2354_v43 = vadd.f32 %v6826_v3, %v2353_v13  ;;  %1300 = vrot.lane.b32.xlu1 %v690_v8, %s5762_s16  ;;  %s5769_s16 = smov 48  }
 0x1fa   : > { %2556 = vst.msk [vmem:[#allocation3 + $0x61] sm:$0xff] %vm2493_vm12, %v2467_v11  ;;  %v2468_v15 = vmax.f32 %v2362_v12, 0.0  ;;  %v1762_v18 = vpop.permute.xlu0 %1761 }
 0x1fb   : > { %2554 = vst.msk [vmem:[#allocation3 + $0x49] sm:$0xff] %vm2493_vm12, %v2465_v46  ;;  %v2466_v47 = vmax.f32 %v2354_v43, 0.0  ;;  %v1607_v16 = vpop.permute.xlu1 %1606 }
 0x1fc   : > { %2557 = vst.msk [vmem:[#allocation3 + $0x69] sm:$0xff] %vm2493_vm12, %v2468_v15  ;;  %1459 = vrot.lane.b32.xlu0 %v721_v49, %s5763_s17 }
 0x1fd   : > { %1680 = vst.msk [vmem:[#allocation6 + $0x170] sm:$0xff] %vm1656_vm7, %v1607_v16  ;;  %1457 = vrot.lane.b32.xlu1 %v6904_v36, %s5763_s17  ;;  %v818_v36 = vld [vmem:[#allocation2 + $0x199] sm:$0xff] }
 0x1fe   : > { %2555 = vst.msk [vmem:[#allocation3 + $0x51] sm:$0xff] %vm2493_vm12, %v2466_v47  ;;  %v1766_v21 = vpop.permute.xlu0 %1765 }
 0x1ff   : > { %1838 = vst.msk [vmem:[#allocation6 + $0x140] sm:$0xff] %vm1817_vm8, %v1762_v18  ;;  %v1764_v62 = vpop.permute.xlu1 %1763  ;;  %1840 = vst.msk [vmem:[#allocation6 + $0x160] sm:$0xff] %vm1817_vm8, %v1766_v21 }
 0x200   : > { %1839 = vst.msk [vmem:[#allocation6 + $0x150] sm:$0xff] %vm1817_vm8, %v1764_v62  ;;  %1616 = vrot.lane.b32.xlu0 %v6919_v33, %s5764_s18 }
 0x201   : > { %1461 = vrot.lane.b32.xlu1 %v722_v61, %s5763_s17 }
 0x202   : > { %v1923_v27 = vpop.permute.xlu0 %1922 }
 0x203   : > { %v1768_v41 = vpop.permute.xlu1 %1767  ;;  %v6982_v25 = vld [vmem:[#allocation3 + $0x60] ss:$2 sm:$0xff]  ;;  %1999 = vst.msk [vmem:[#allocation6 + $0x140] sm:$0xff] %vm1978_vm9, %v1923_v27  ;;  %v7028_v5 = vld [vmem:[#allocation3 + $0x61] ss:$2 sm:$0xff] }
 0x204   : > { %1841 = vst.msk [vmem:[#allocation6 + $0x170] sm:$0xff] %vm1817_vm8, %v1768_v41  ;;  %1620 = vrot.lane.b32.xlu0 %v753_v42, %s5764_s18  ;;  %v2592_v6 = vld [vmem:[#allocation3 + $0x70] ss:$2 sm:$0x1] }
 0x205   : > { %2684 = vst.msk [vmem:[#allocation6 + $0x20] sm:$0xff] %vm2493_vm12, %v6982_v25  ;;  %1618 = vrot.lane.b32.xlu1 %v6928_v51, %s5764_s18  ;;  %v2755_v9 = vrot.slane %v2592_v6, 1  ;;  %v7092_v1 = vld [vmem:[#allocation3 + $0x48] ss:$2 sm:$0xff] }
 0x206   : > { %v1927_v30 = vpop.permute.xlu0 %1926 }
 0x207   : > { %v1925_v29 = vpop.permute.xlu1 %1924  ;;  %2001 = vst.msk [vmem:[#allocation6 + $0x160] sm:$0xff] %vm1978_vm9, %v1927_v30 }
 0x208   : > { %2000 = vst.msk [vmem:[#allocation6 + $0x150] sm:$0xff] %vm1978_vm9, %v1925_v29  ;;  %1777 = vrot.lane.b32.xlu0 %v689_v4, %s5765_s19  ;;  %v7023_v4 = vld [vmem:[#allocation3 + $0x31] ss:$2 sm:$0xff] }
 0x209   : > { %1622 = vrot.lane.b32.xlu1 %v754_v28, %s5764_s18  ;;  %s5770_s18 = smov 56  }
 0x20a   : > { %v2084_v32 = vpop.permute.xlu0 %2083 }
 0x20b   : > { %v1929_v31 = vpop.permute.xlu1 %1928  ;;  %2160 = vst.msk [vmem:[#allocation6 + $0x140] sm:$0xff] %vm2139_vm10, %v2084_v32 }
 0x20c   : > { %2002 = vst.msk [vmem:[#allocation6 + $0x170] sm:$0xff] %vm1978_vm9, %v1929_v31  ;;  %1781 = vrot.lane.b32.xlu0 %v786_v20, %s5765_s19 }
 0x20d   : > { %1779 = vrot.lane.b32.xlu1 %v690_v8, %s5765_s19  ;;  %v2754_v8 = vrot.slane %v6982_v25, 1 }
 0x20e   : > { %v965_v19 = vpop.permute.xlu0 %964 }
 0x20f   : > { %v2086_v22 = vpop.permute.xlu1 %2085  ;;  %1037 = vst.msk [vmem:[#allocation6 + $0x180] sm:$0xff] %vm1012_vm3, %v965_v19  ;;  %v7040_v11 = vsel %vm2747_vm14, %v2754_v8, %v2755_v9 }
 0x210   : > { %2161 = vst.msk [vmem:[#allocation6 + $0x150] sm:$0xff] %vm2139_vm10, %v2086_v22  ;;  %1938 = vrot.lane.b32.xlu0 %v721_v49, %s5766_s20  ;;  %v2588_v22 = vld [vmem:[#allocation3 + $0x40] ss:$2 sm:$0x1] }
 0x211   : > { %1783 = vrot.lane.b32.xlu1 %v787_v17, %s5765_s19 }
 0x212   : > { %v2088_v37 = vpop.permute.xlu0 %2087  ;;  %v2192_v38 = vld [vmem:[#allocation6 + $0x140] sm:$0xff] }
 0x213   : > { %v967_v35 = vpop.permute.xlu1 %966  ;;  %2162 = vst.msk [vmem:[#allocation6 + $0x160] sm:$0xff] %vm2139_vm10, %v2088_v37  ;;  %v2752_v37 = vrot.slane %v2588_v22, 1 }
 0x214   : > { %1038 = vst.msk [vmem:[#allocation6 + $0x190] sm:$0xff] %vm1012_vm3, %v967_v35  ;;  %1942 = vrot.lane.b32.xlu0 %v818_v36, %s5766_s20  ;;  %v2751_v36 = vrot.slane %v6866_v24, 1 }
 0x215   : > { %1940 = vrot.lane.b32.xlu1 %v722_v61, %s5766_s20 }
 0x216   : > { %v969_v45 = vpop.permute.xlu0 %968 }
 0x217   : > { %v2090_v23 = vpop.permute.xlu1 %2089  ;;  %v2193_v26 = vld [vmem:[#allocation6 + $0x150] sm:$0xff]  ;;  %1039 = vst.msk [vmem:[#allocation6 + $0x1a0] sm:$0xff] %vm1012_vm3, %v969_v45 }
 0x218   : > { %2163 = vst.msk [vmem:[#allocation6 + $0x170] sm:$0xff] %vm2139_vm10, %v2090_v23  ;;  %v2214_v53 = vpack.c.bf16 %v2193_v26, %v2192_v38  ;;  %2099 = vrot.lane.b32.xlu0 %v753_v42, %s5767_s28 }
 0x219   : > { %1944 = vrot.lane.b32.xlu1 %v819_v40, %s5766_s20  ;;  %s5771_s20 = smov 64  }
 0x21a   : > { %5566 = vmatprep.mubr.msk.bf16.mxu0 %vm2247_vm11, %v2214_v53  ;;  %v1126_v33 = vpop.permute.xlu0 %1125  ;;  %v2194_v34 = vld [vmem:[#allocation6 + $0x160] sm:$0xff]  ;;  %v7076_v53 = vsel %vm2747_vm14, %v2751_v36, %v2752_v37 }
 0x21b   : > { %v971_v54 = vpop.permute.xlu1 %970  ;;  %1198 = vst.msk [vmem:[#allocation6 + $0x180] sm:$0xff] %vm1173_vm4, %v1126_v33 }
 0x21c   : > { %1040 = vst.msk [vmem:[#allocation6 + $0x1b0] sm:$0xff] %vm1012_vm3, %v971_v54  ;;  %2103 = vrot.lane.b32.xlu0 %v850_v48, %s5767_s28 }
 0x21d   : > { %2101 = vrot.lane.b32.xlu1 %v754_v28, %s5767_s28 }
 0x21e   : > { %v1130_v56 = vpop.permute.xlu0 %1129 }
 0x21f   : > { %v1128_v51 = vpop.permute.xlu1 %1127  ;;  %v2195_v52 = vld [vmem:[#allocation6 + $0x170] sm:$0xff]  ;;  %1200 = vst.msk [vmem:[#allocation6 + $0x1a0] sm:$0xff] %vm1173_vm4, %v1130_v56 }
 0x220   : > { %1199 = vst.msk [vmem:[#allocation6 + $0x190] sm:$0xff] %vm1173_vm4, %v1128_v51  ;;  %v2215_v58 = vpack.c.bf16 %v2195_v52, %v2194_v34  ;;  %2698 = vrot.lane.b32.xlu0 %v2618_v55, %s5761_s15  ;;  %v2667_v34 = vld [vmem:[#allocation3 + $0x19] ss:$2 sm:$0xff]  ;;  %v2895_v55 = vrot.slane %v7046_v14, 1 }
 0x221   : > { %2105 = vrot.lane.b32.xlu1 %v851_v50, %s5767_s28  ;;  %v2637_v50 = vld [vmem:[#allocation3 + $0x28] ss:$2 sm:$0x1] }
 0x222   : > { %5567 = vmatmul.mubr.msk.bf16.gmra.mrb[20].mxu0 %vm2247_vm11, %v2215_v58  ;;  %v1287_v2 = vpop.permute.xlu0 %1286  ;;  %v2896_v59 = vrot.slane %v2637_v50, 1 }
 0x223   : > { %v1132_v60 = vpop.permute.xlu1 %1131  ;;  %1359 = vst.msk [vmem:[#allocation6 + $0x180] sm:$0xff] %vm1334_vm5, %v1287_v2 }
 0x224   : > { %1201 = vst.msk [vmem:[#allocation6 + $0x1b0] sm:$0xff] %vm1173_vm4, %v1132_v60  ;;  %2702 = vrot.lane.b32.xlu0 %v7028_v5, %s5761_s15 }
 0x225   : > { %2700 = vrot.lane.b32.xlu1 %v7023_v4, %s5761_s15 }
 0x226   : > { %v1291_v44 = vpop.permute.xlu0 %1290 }
 0x227   : > { %v1289_v7 = vpop.permute.xlu1 %1288  ;;  %1361 = vst.msk [vmem:[#allocation6 + $0x1a0] sm:$0xff] %vm1334_vm5, %v1291_v44 }
 0x228   : > { %1360 = vst.msk [vmem:[#allocation6 + $0x190] sm:$0xff] %vm1334_vm5, %v1289_v7  ;;  %2772 = vrot.lane.b32.xlu0 %v2750_v57, %s5763_s17  ;;  %v2897_v7 = vsel %vm2747_vm14, %v2895_v55, %v2896_v59 }
 0x22a   : > { %v1448_v10 = vpop.permute.xlu0 %1447 }
 0x22b   : > { %v1293_v39 = vpop.permute.xlu1 %1292  ;;  %1520 = vst.msk [vmem:[#allocation6 + $0x180] sm:$0xff] %vm1495_vm6, %v1448_v10 }
 0x22c   : > { %1362 = vst.msk [vmem:[#allocation6 + $0x1b0] sm:$0xff] %vm1334_vm5, %v1293_v39  ;;  %2776 = vrot.lane.b32.xlu0 %v7040_v11, %s5763_s17 }
 0x22e   : > { %v1452_v13 = vpop.permute.xlu0 %1451 }
 0x22f   : > { %v1450_v12 = vpop.permute.xlu1 %1449  ;;  %1522 = vst.msk [vmem:[#allocation6 + $0x1a0] sm:$0xff] %vm1495_vm6, %v1452_v13 }
 0x230   : > { %1521 = vst.msk [vmem:[#allocation6 + $0x190] sm:$0xff] %vm1495_vm6, %v1450_v12  ;;  %2813 = vrot.lane.b32.xlu0 %v7046_v14, %s5765_s19 }
 0x232   : > { %v1609_v43 = vpop.permute.xlu0 %1608 }
 0x233   : > { %v1454_v46 = vpop.permute.xlu1 %1453  ;;  %1681 = vst.msk [vmem:[#allocation6 + $0x180] sm:$0xff] %vm1656_vm7, %v1609_v43 }
 0x234   : > { %1523 = vst.msk [vmem:[#allocation6 + $0x1b0] sm:$0xff] %vm1495_vm6, %v1454_v46 }
 0x235   : > { %v5556_v15 = vpop.f32.mrb[8].mxu0 }
 0x236   : > { %v2375_v47 = vadd.f32 %v5556_v15, %v6826_v3  ;;  %v2366_v16 = vpop.f32.mrb[9].mxu0  ;;  %v1613_v42 = vpop.permute.xlu0 %1612 }
 0x237   : > { %v2367_v49 = vadd.f32 %v6826_v3, %v2366_v16  ;;  %v1611_v18 = vpop.permute.xlu1 %1610  ;;  %v5557_v61 = vpop.f32.mrb[10].mxu0  ;;  %1683 = vst.msk [vmem:[#allocation6 + $0x1a0] sm:$0xff] %vm1656_vm7, %v1613_v42 }
 0x238   : > { %v2471_v62 = vmax.f32 %v2375_v47, 0.0  ;;  %1682 = vst.msk [vmem:[#allocation6 + $0x190] sm:$0xff] %vm1656_vm7, %v1611_v18  ;;  %v2378_v21 = vadd.f32 %v5557_v61, %v6826_v3  ;;  %v2369_v41 = vpop.f32.mrb[11].mxu0 }
 0x239   : > { %v2469_v27 = vmax.f32 %v2367_v49, 0.0  ;;  %v2370_v28 = vadd.f32 %v6826_v3, %v2369_v41 }
 0x23a   : > { %2560 = vst.msk [vmem:[#allocation3 + $0x91] sm:$0xff] %vm2493_vm12, %v2471_v62  ;;  %v2472_v29 = vmax.f32 %v2378_v21, 0.0  ;;  %v1770_v20 = vpop.permute.xlu0 %1769 }
 0x23b   : > { %2558 = vst.msk [vmem:[#allocation3 + $0x79] sm:$0xff] %vm2493_vm12, %v2469_v27  ;;  %v2470_v30 = vmax.f32 %v2370_v28, 0.0  ;;  %v1615_v31 = vpop.permute.xlu1 %1614 }
 0x23c   : > { %2561 = vst.msk [vmem:[#allocation3 + $0x99] sm:$0xff] %vm2493_vm12, %v2472_v29 }
 0x23d   : > { %1684 = vst.msk [vmem:[#allocation6 + $0x1b0] sm:$0xff] %vm1656_vm7, %v1615_v31 }
 0x23e   : > { %2559 = vst.msk [vmem:[#allocation3 + $0x81] sm:$0xff] %vm2493_vm12, %v2470_v30  ;;  %v1774_v17 = vpop.permute.xlu0 %1773 }
 0x23f   : > { %1842 = vst.msk [vmem:[#allocation6 + $0x180] sm:$0xff] %vm1817_vm8, %v1770_v20  ;;  %v1772_v32 = vpop.permute.xlu1 %1771  ;;  %1844 = vst.msk [vmem:[#allocation6 + $0x1a0] sm:$0xff] %vm1817_vm8, %v1774_v17 }
 0x240   : > { %1843 = vst.msk [vmem:[#allocation6 + $0x190] sm:$0xff] %vm1817_vm8, %v1772_v32 }
 0x242   : > { %v1931_v40 = vpop.permute.xlu0 %1930 }
 0x243   : > { %v1776_v19 = vpop.permute.xlu1 %1775  ;;  %v7066_v35 = vld [vmem:[#allocation3 + $0x91] ss:$2 sm:$0xff]  ;;  %v2594_v38 = vld [vmem:[#allocation3 + $0x90] ss:$2 sm:$0xff]  ;;  %2003 = vst.msk [vmem:[#allocation6 + $0x180] sm:$0xff] %vm1978_vm9, %v1931_v40 }
 0x244   : > { %1845 = vst.msk [vmem:[#allocation6 + $0x1b0] sm:$0xff] %vm1817_vm8, %v1776_v19  ;;  %2704 = vrot.lane.b32.xlu1 %v7066_v35, %s5761_s15  ;;  %v2596_v26 = vld [vmem:[#allocation3 + $0xa0] ss:$2 sm:$0x1]  ;;  %v2757_v54 = vrot.slane %v2594_v38, 1 }
 0x245   : > { %v2643_v23 = vld [vmem:[#allocation3 + $0x78] ss:$2 sm:$0xff]  ;;  %2685 = vst.msk [vmem:[#allocation6 + $0x30] sm:$0xff] %vm2493_vm12, %v2594_v38  ;;  %v2758_v48 = vrot.slane %v2596_v26, 1  ;;  %v2671_v58 = vld [vmem:[#allocation3 + $0x79] ss:$2 sm:$0xff] }
 0x246   : > { %2817 = vrot.lane.b32.xlu0 %v2643_v23, %s5765_s19  ;;  %v1935_v33 = vpop.permute.xlu0 %1934  ;;  %v2645_v60 = vld [vmem:[#allocation3 + $0x88] ss:$2 sm:$0x1]  ;;  %v2901_v2 = vrot.slane %v2643_v23, 1 }
 0x247   : > { %v1933_v45 = vpop.permute.xlu1 %1932  ;;  %2005 = vst.msk [vmem:[#allocation6 + $0x1a0] sm:$0xff] %vm1978_vm9, %v1935_v33  ;;  %v7084_v52 = vsel %vm2747_vm14, %v2757_v54, %v2758_v48  ;;  %v2902_v57 = vrot.slane %v2645_v60, 1  ;;  %v2898_v60 = vrot.slane %v7092_v1, 1 }
 0x248   : > { %2004 = vst.msk [vmem:[#allocation6 + $0x190] sm:$0xff] %vm1978_vm9, %v1933_v45  ;;  %2774 = vrot.lane.b32.xlu1 %v7076_v53, %s5763_s17 }
 0x249   : > { %v2903_v9 = vsel %vm2747_vm14, %v2901_v2, %v2902_v57 }
 0x24a   : > { %2854 = vrot.lane.b32.xlu0 %v2667_v34, %s5767_s28  ;;  %v2092_v56 = vpop.permute.xlu0 %2091 }
 0x24b   : > { %v1937_v51 = vpop.permute.xlu1 %1936  ;;  %2164 = vst.msk [vmem:[#allocation6 + $0x180] sm:$0xff] %vm2139_vm10, %v2092_v56  ;;  %v2669_v56 = vld [vmem:[#allocation3 + $0x49] ss:$2 sm:$0xff] }
 0x24c   : > { %2006 = vst.msk [vmem:[#allocation6 + $0x1b0] sm:$0xff] %vm1978_vm9, %v1937_v51  ;;  %2778 = vrot.lane.b32.xlu1 %v7084_v52, %s5763_s17 }
 0x24e   : > { %2858 = vrot.lane.b32.xlu0 %v2671_v58, %s5767_s28  ;;  %v973_v6 = vpop.permute.xlu0 %972  ;;  %v2641_v58 = vld [vmem:[#allocation3 + $0x58] ss:$2 sm:$0x1] }
 0x24f   : > { %v2094_v63 = vpop.permute.xlu1 %2093  ;;  %1041 = vst.msk [vmem:[#allocation6 + $0x1c0] sm:$0xff] %vm1012_vm3, %v973_v6  ;;  %v2899_v6 = vrot.slane %v2641_v58, 1 }
 0x250   : > { %2165 = vst.msk [vmem:[#allocation6 + $0x190] sm:$0xff] %vm2139_vm10, %v2094_v63  ;;  %2815 = vrot.lane.b32.xlu1 %v7092_v1, %s5765_s19 }
 0x252   : > { %2919 = vrot.lane.b32.xlu0 %v2897_v7, %s5768_s14  ;;  %v2096_v8 = vpop.permute.xlu0 %2095  ;;  %v2196_v39 = vld [vmem:[#allocation6 + $0x180] sm:$0xff] }
 0x253   : > { %v975_v44 = vpop.permute.xlu1 %974  ;;  %2166 = vst.msk [vmem:[#allocation6 + $0x1a0] sm:$0xff] %vm2139_vm10, %v2096_v8 }
 0x254   : > { %1042 = vst.msk [vmem:[#allocation6 + $0x1d0] sm:$0xff] %vm1012_vm3, %v975_v44 }
 0x256   : > { %2923 = vrot.lane.b32.xlu0 %v2903_v9, %s5768_s14  ;;  %v977_v13 = vpop.permute.xlu0 %976  ;;  %v2900_v9 = vsel %vm2747_vm14, %v2898_v60, %v2899_v6 }
 0x257   : > { %v2098_v10 = vpop.permute.xlu1 %2097  ;;  %v2197_v12 = vld [vmem:[#allocation6 + $0x190] sm:$0xff]  ;;  %1043 = vst.msk [vmem:[#allocation6 + $0x1e0] sm:$0xff] %vm1012_vm3, %v977_v13 }
 0x258   : > { %2167 = vst.msk [vmem:[#allocation6 + $0x1b0] sm:$0xff] %vm2139_vm10, %v2098_v10  ;;  %v2216_v14 = vpack.c.bf16 %v2197_v12, %v2196_v39  ;;  %v5732_v13 = vld [vmem:[%s8131_s3] sm:$0xff]  }
 0x259   : > { %5578 = vmatprep.subr.bf16.mxu1 %v5732_v13 }
 0x25a   : > { %2953 = vrot.lane.b32.xlu0 %v6866_v24, %s5769_s16  ;;  %5570 = vmatprep.mubr.msk.bf16.mxu0 %vm2247_vm11, %v2216_v14  ;;  %v1134_v43 = vpop.permute.xlu0 %1133  ;;  %v2198_v15 = vld [vmem:[#allocation6 + $0x1a0] sm:$0xff] }
 0x25b   : > { %v979_v46 = vpop.permute.xlu1 %978  ;;  %1202 = vst.msk [vmem:[#allocation6 + $0x1c0] sm:$0xff] %vm1173_vm4, %v1134_v43  ;;  %5579 = vmatpush3.bf16.msra.mxu1 %v5732_v13 }
 0x25c   : > { %1044 = vst.msk [vmem:[#allocation6 + $0x1f0] sm:$0xff] %vm1012_vm3, %v979_v46  ;;  %vm2878_vm3 = vcmask 326912  }
 0x25e   : > { %2957 = vrot.lane.b32.xlu0 %v2594_v38, %s5769_s16  ;;  %v1138_v49 = vpop.permute.xlu0 %1137 }
 0x25f   : > { %v1136_v47 = vpop.permute.xlu1 %1135  ;;  %v2199_v16 = vld [vmem:[#allocation6 + $0x1b0] sm:$0xff]  ;;  %1204 = vst.msk [vmem:[#allocation6 + $0x1e0] sm:$0xff] %vm1173_vm4, %v1138_v49 }
 0x260   : > { %1203 = vst.msk [vmem:[#allocation6 + $0x1d0] sm:$0xff] %vm1173_vm4, %v1136_v47  ;;  %v2217_v18 = vpack.c.bf16 %v2199_v16, %v2198_v15  ;;  %v5733_v16 = vld [vmem:[%s8131_s3 + $0x8] sm:$0xff]  }
 0x261   : > { %5580 = vmatprep.subr.bf16.mxu1 %v5733_v16 }
 0x262   : > { %2987 = vrot.lane.b32.xlu0 %v7023_v4, %s5770_s18  ;;  %5571 = vmatmul.mubr.msk.bf16.gmra.mrb[24].mxu0 %vm2247_vm11, %v2217_v18  ;;  %v1295_v61 = vpop.permute.xlu0 %1294 }
 0x263   : > { %v1140_v24 = vpop.permute.xlu1 %1139  ;;  %1363 = vst.msk [vmem:[#allocation6 + $0x1c0] sm:$0xff] %vm1334_vm5, %v1295_v61  ;;  %5581 = vmatpush3.bf16.msra.mxu1 %v5733_v16 }
 0x264   : > { %1205 = vst.msk [vmem:[#allocation6 + $0x1f0] sm:$0xff] %vm1173_vm4, %v1140_v24  ;;  %vm2943_vm4 = vcmask 392512  }
 0x266   : > { %2991 = vrot.lane.b32.xlu0 %v7066_v35, %s5770_s18  ;;  %v1299_v21 = vpop.permute.xlu0 %1298 }
 0x267   : > { %v1297_v62 = vpop.permute.xlu1 %1296  ;;  %1365 = vst.msk [vmem:[#allocation6 + $0x1e0] sm:$0xff] %vm1334_vm5, %v1299_v21  ;;  %v5735_v21 = vld [vmem:[%s8131_s3 + $0x18] sm:$0xff]  }
 0x268   : > { %1364 = vst.msk [vmem:[#allocation6 + $0x1d0] sm:$0xff] %vm1334_vm5, %v1297_v62  ;;  %v5734_v62 = vld [vmem:[%s8131_s3 + $0x10] sm:$0xff]  }
 0x269   : > { %5582 = vmatprep.subr.bf16.mxu1 %v5734_v62 }
 0x26a   : > { %3024 = vrot.lane.b32.xlu0 %v7076_v53, %s5771_s20  ;;  %v1456_v41 = vpop.permute.xlu0 %1455  ;;  %5583 = vmatpush3.bf16.msra.mxu1 %v5734_v62 }
 0x26b   : > { %v1301_v4 = vpop.permute.xlu1 %1300  ;;  %1524 = vst.msk [vmem:[#allocation6 + $0x1c0] sm:$0xff] %vm1495_vm6, %v1456_v41  ;;  %5584 = vmatprep.subr.bf16.mxu1 %v5735_v21 }
 0x26c   : > { %1366 = vst.msk [vmem:[#allocation6 + $0x1f0] sm:$0xff] %vm1334_vm5, %v1301_v4  ;;  %v5736_v4 = vld [vmem:[%s8131_s3 + $0x20] ss:$0 sps:$4 sm:$0xff]   ;;  %vm2977_vm5 = vcmask 458112  }
 0x26e   : > { %3028 = vrot.lane.b32.xlu0 %v7084_v52, %s5771_s20  ;;  %v1460_v27 = vpop.permute.xlu0 %1459  ;;  %5585 = vmatpush3.bf16.msra.mxu1 %v5735_v21 }
 0x26f   : > { %v1458_v42 = vpop.permute.xlu1 %1457  ;;  %1526 = vst.msk [vmem:[#allocation6 + $0x1e0] sm:$0xff] %vm1495_vm6, %v1460_v27  ;;  %5693 = vmatprep.subr.msk.bf16.mxu1 %vm3125_vm1, %v5736_v4  ;;  %v3127_v27 = vsel %vm3125_vm1, %v5736_v4, 0 }
 0x270   : > { %1525 = vst.msk [vmem:[#allocation6 + $0x1d0] sm:$0xff] %vm1495_vm6, %v1458_v42 }
 0x272   : > { %v1617_v29 = vpop.permute.xlu0 %1616  ;;  %5587 = vmatpush3.bf16.msra.mxu1 %v3127_v27 }
 0x273   : > { %v1462_v28 = vpop.permute.xlu1 %1461  ;;  %1685 = vst.msk [vmem:[#allocation6 + $0x1c0] sm:$0xff] %vm1656_vm7, %v1617_v29 }
 0x274   : > { %1527 = vst.msk [vmem:[#allocation6 + $0x1f0] sm:$0xff] %vm1495_vm6, %v1462_v28  ;;  %vm3011_vm6 = vcmask 523712  }
 0x275   : > { %v5560_v30 = vpop.f32.mrb[12].mxu0 }
 0x276   : > { %v2391_v31 = vadd.f32 %v5560_v30, %v6826_v3  ;;  %v2382_v20 = vpop.f32.mrb[13].mxu0  ;;  %v1621_v37 = vpop.permute.xlu0 %1620 }
 0x277   : > { %v2383_v32 = vadd.f32 %v6826_v3, %v2382_v20  ;;  %v1619_v17 = vpop.permute.xlu1 %1618  ;;  %v5561_v22 = vpop.f32.mrb[14].mxu0  ;;  %1687 = vst.msk [vmem:[#allocation6 + $0x1e0] sm:$0xff] %vm1656_vm7, %v1621_v37 }
 0x278   : > { %v2475_v19 = vmax.f32 %v2391_v31, 0.0  ;;  %1686 = vst.msk [vmem:[#allocation6 + $0x1d0] sm:$0xff] %vm1656_vm7, %v1619_v17  ;;  %v2394_v35 = vadd.f32 %v5561_v22, %v6826_v3  ;;  %v2385_v36 = vpop.f32.mrb[15].mxu0  ;;  %v7216_v31 = vld [vmem:[%s8130_s2] ss:$0 sm:$0xff] }
 0x279   : > { %v2473_v38 = vmax.f32 %v2383_v32, 0.0  ;;  %v2386_v40 = vadd.f32 %v6826_v3, %v2385_v36 }
 0x27a   : > { %2564 = vst.msk [vmem:[#allocation3 + $0xc1] sm:$0xff] %vm2493_vm12, %v2475_v19  ;;  %v2476_v23 = vmax.f32 %v2394_v35, 0.0  ;;  %v1778_v53 = vpop.permute.xlu0 %1777 }
 0x27b   : > { %2562 = vst.msk [vmem:[#allocation3 + $0xa9] sm:$0xff] %vm2493_vm12, %v2473_v38  ;;  %v2474_v26 = vmax.f32 %v2386_v40, 0.0  ;;  %v1623_v45 = vpop.permute.xlu1 %1622 }
 0x27c   : > { %2565 = vst.msk [vmem:[#allocation3 + $0xc9] sm:$0xff] %vm2493_vm12, %v2476_v23 }
 0x27d   : > { %1688 = vst.msk [vmem:[#allocation6 + $0x1f0] sm:$0xff] %vm1656_vm7, %v1623_v45  ;;  %vm3048_vm7 = vcmask 589312  }
 0x27e   : > { %2563 = vst.msk [vmem:[#allocation3 + $0xb1] sm:$0xff] %vm2493_vm12, %v2474_v26  ;;  %v1782_v3 = vpop.permute.xlu0 %1781 }
 0x27f   : > { %1846 = vst.msk [vmem:[#allocation6 + $0x1c0] sm:$0xff] %vm1817_vm8, %v1778_v53  ;;  %v1780_v54 = vpop.permute.xlu1 %1779  ;;  %1848 = vst.msk [vmem:[#allocation6 + $0x1e0] sm:$0xff] %vm1817_vm8, %v1782_v3 }
 0x280   : > { %1847 = vst.msk [vmem:[#allocation6 + $0x1d0] sm:$0xff] %vm1817_vm8, %v1780_v54 }
 0x282   : > { %v1939_v50 = vpop.permute.xlu0 %1938 }
 0x283   : > { %v1784_v48 = vpop.permute.xlu1 %1783  ;;  %v7147_v33 = vld [vmem:[#allocation3 + $0xc1] ss:$2 sm:$0xff]  ;;  %v7149_v34 = vld [vmem:[#allocation3 + $0xc0] ss:$2 sm:$0xff]  ;;  %2007 = vst.msk [vmem:[#allocation6 + $0x1c0] sm:$0xff] %vm1978_vm9, %v1939_v50 }
 0x284   : > { %1849 = vst.msk [vmem:[#allocation6 + $0x1f0] sm:$0xff] %vm1817_vm8, %v1784_v48  ;;  %2706 = vrot.lane.b32.xlu0 %v7147_v33, %s5761_s15  ;;  %v2600_v42 = vld [vmem:[#allocation3 + $0xd0] ss:$2 sm:$0x1]  ;;  %v2760_v28 = vrot.slane %v7149_v34, 1  ;;  %vm3112_vm8 = vcmask 588800  }
 0x285   : > { %v2647_v51 = vld [vmem:[#allocation3 + $0xa8] ss:$2 sm:$0xff]  ;;  %2686 = vst.msk [vmem:[#allocation6 + $0x40] sm:$0xff] %vm2493_vm12, %v7149_v34  ;;  %v2673_v2 = vld [vmem:[#allocation3 + $0xa9] ss:$2 sm:$0xff]  ;;  %v2761_v29 = vrot.slane %v2600_v42, 1 }
 0x286   : > { %2819 = vrot.lane.b32.xlu1 %v2647_v51, %s5765_s19  ;;  %v1943_v55 = vpop.permute.xlu0 %1942  ;;  %v2649_v7 = vld [vmem:[#allocation3 + $0xb8] ss:$2 sm:$0x1]  ;;  %v2904_v44 = vrot.slane %v2647_v51, 1 }
 0x287   : > { %v1941_v52 = vpop.permute.xlu1 %1940  ;;  %2009 = vst.msk [vmem:[#allocation6 + $0x1e0] sm:$0xff] %vm1978_vm9, %v1943_v55  ;;  %v2905_v39 = vrot.slane %v2649_v7, 1 }
 0x288   : > { %2008 = vst.msk [vmem:[#allocation6 + $0x1d0] sm:$0xff] %vm1978_vm9, %v1941_v52 }
 0x289   : > { %v2906_v12 = vsel %vm2747_vm14, %v2904_v44, %v2905_v39 }
 0x28a   : > { %2856 = vrot.lane.b32.xlu1 %v2669_v56, %s5767_s28  ;;  %v2100_v63 = vpop.permute.xlu0 %2099 }
 0x28b   : > { %v1945_v59 = vpop.permute.xlu1 %1944  ;;  %2168 = vst.msk [vmem:[#allocation6 + $0x1c0] sm:$0xff] %vm2139_vm10, %v2100_v63 }
 0x28c   : > { %2010 = vst.msk [vmem:[#allocation6 + $0x1f0] sm:$0xff] %vm1978_vm9, %v1945_v59  ;;  %vm3202_vm9 = vcmask 130048  }
 0x28d   : > { %3210 = vst.msk [vmem:[#allocation4 + $0x30] sm:$0xff] %vm3202_vm9, %v5759_v0  ;;  %3203 = vst.msk [vmem:[#allocation4] sm:$0xff] %vm3202_vm9, %v5759_v0 }
 0x28e   : > { %2860 = vrot.lane.b32.xlu1 %v2673_v2, %s5767_s28  ;;  %v2104_v8 = vpop.permute.xlu0 %2103  ;;  %3206 = vst.msk [vmem:[#allocation4 + $0x10] sm:$0xff] %vm3202_vm9, %v5759_v0  ;;  %3208 = vst.msk [vmem:[#allocation4 + $0x20] sm:$0xff] %vm3202_vm9, %v5759_v0 }
 0x28f   : > { %v2102_v57 = vpop.permute.xlu1 %2101  ;;  %2170 = vst.msk [vmem:[#allocation6 + $0x1e0] sm:$0xff] %vm2139_vm10, %v2104_v8 }
 0x290   : > { %2169 = vst.msk [vmem:[#allocation6 + $0x1d0] sm:$0xff] %vm2139_vm10, %v2102_v57 }
 0x291   : > { %3212 = vst.msk [vmem:[#allocation4 + $0x40] sm:$0xff] %vm3202_vm9, %v5759_v0  ;;  %3214 = vst.msk [vmem:[#allocation4 + $0x50] sm:$0xff] %vm3202_vm9, %v5759_v0 }
 0x292   : > { %2921 = vrot.lane.b32.xlu1 %v2900_v9, %s5768_s14  ;;  %v2699_v10 = vpop.permute.xlu0 %2698  ;;  %v2200_v14 = vld [vmem:[#allocation6 + $0x1c0] sm:$0xff]  ;;  %3216 = vst.msk [vmem:[#allocation4 + $0x60] sm:$0xff] %vm3202_vm9, %v5759_v0  ;;  %3218 = vst.msk [vmem:[#allocation4 + $0x70] sm:$0xff] %vm3202_vm9, %v5759_v0 }
 0x293   : > { %v2106_v1 = vpop.permute.xlu1 %2105  ;;  %2723 = vst.msk [vmem:[#allocation6] sm:$0xff] %vm2722_vm15, %v2699_v10 }
 0x294   : > { %2171 = vst.msk [vmem:[#allocation6 + $0x1f0] sm:$0xff] %vm2139_vm10, %v2106_v1  ;;  %vm3204_vm10 = vcmask 123904  }
 0x295   : > { %3211 = vst.msk [vmem:[#allocation4 + $0x38] sm:$0x3] %vm3204_vm10, %v5759_v0  ;;  %3205 = vst.msk [vmem:[#allocation4 + $0x8] sm:$0x3] %vm3204_vm10, %v5759_v0 }
 0x296   : > { %2925 = vrot.lane.b32.xlu1 %v2906_v12, %s5768_s14  ;;  %v2703_v15 = vpop.permute.xlu0 %2702  ;;  %v2202_v49 = vld [vmem:[#allocation6 + $0x1e0] sm:$0xff]  ;;  %3207 = vst.msk [vmem:[#allocation4 + $0x18] sm:$0x3] %vm3204_vm10, %v5759_v0  ;;  %3209 = vst.msk [vmem:[#allocation4 + $0x28] sm:$0x3] %vm3204_vm10, %v5759_v0 }
 0x297   : > { %v2701_v46 = vpop.permute.xlu1 %2700  ;;  %v2201_v43 = vld [vmem:[#allocation6 + $0x1d0] sm:$0xff]  ;;  %2725 = vst.msk [vmem:[#allocation6 + $0x20] sm:$0xff] %vm2722_vm15, %v2703_v15 }
 0x298   : > { %2724 = vst.msk [vmem:[#allocation6 + $0x10] sm:$0xff] %vm2722_vm15, %v2701_v46  ;;  %v2218_v47 = vpack.c.bf16 %v2201_v43, %v2200_v14 }
 0x299   : > { %3213 = vst.msk [vmem:[#allocation4 + $0x48] sm:$0x3] %vm3204_vm10, %v5759_v0  ;;  %3215 = vst.msk [vmem:[#allocation4 + $0x58] sm:$0x3] %vm3204_vm10, %v5759_v0 }
 0x29a   : > { %2955 = vrot.lane.b32.xlu1 %v6982_v25, %s5769_s16  ;;  %5574 = vmatprep.mubr.msk.bf16.mxu0 %vm2247_vm11, %v2218_v47  ;;  %v2773_v24 = vpop.permute.xlu0 %2772  ;;  %3217 = vst.msk [vmem:[#allocation4 + $0x68] sm:$0x3] %vm3204_vm10, %v5759_v0  ;;  %3219 = vst.msk [vmem:[#allocation4 + $0x78] sm:$0x3] %vm3204_vm10, %v5759_v0 }
 0x29b   : > { %v2203_v18 = vld [vmem:[#allocation6 + $0x1f0] sm:$0xff]  ;;  %2797 = vst.msk [vmem:[#allocation6] sm:$0xff] %vm2796_vm0, %v2773_v24 }
 0x29c   : > { %v2219_v61 = vpack.c.bf16 %v2203_v18, %v2202_v49  ;;  %3220 = vst.msk [vmem:[#allocation4 + $0x80] sm:$0xff] %vm3202_vm9, %v5759_v0  ;;  %3222 = vst.msk [vmem:[#allocation4 + $0x90] sm:$0xff] %vm3202_vm9, %v5759_v0 }
 0x29d   : > { %3221 = vst.msk [vmem:[#allocation4 + $0x88] sm:$0x3] %vm3204_vm10, %v5759_v0  ;;  %3223 = vst.msk [vmem:[#allocation4 + $0x98] sm:$0x3] %vm3204_vm10, %v5759_v0 }
 0x29e   : > { %2959 = vrot.lane.b32.xlu1 %v7149_v34, %s5769_s16  ;;  %5575 = vmatmul.mubr.msk.bf16.gmra.mrb[28].mxu0 %vm2247_vm11, %v2219_v61  ;;  %v2777_v25 = vpop.permute.xlu0 %2776  ;;  %3797 = vst.msk [vmem:[#allocation5] sm:$0xff] %vm3202_vm9, %v5759_v0  ;;  %3800 = vst.msk [vmem:[#allocation5 + $0x10] sm:$0xff] %vm3202_vm9, %v5759_v0  ;;  %vm3346_vm11 = vcmask 261248  }
 0x29f   : > { %2799 = vst.msk [vmem:[#allocation6 + $0x20] sm:$0xff] %vm2796_vm0, %v2777_v25 }
 0x2a0   : > { %3802 = vst.msk [vmem:[#allocation5 + $0x20] sm:$0xff] %vm3202_vm9, %v5759_v0  ;;  %3804 = vst.msk [vmem:[#allocation5 + $0x30] sm:$0xff] %vm3202_vm9, %v5759_v0 }
 0x2a1   : > { %3806 = vst.msk [vmem:[#allocation5 + $0x40] sm:$0xff] %vm3202_vm9, %v5759_v0  ;;  %3808 = vst.msk [vmem:[#allocation5 + $0x50] sm:$0xff] %vm3202_vm9, %v5759_v0 }
 0x2a2   : > { %2989 = vrot.lane.b32.xlu1 %v7028_v5, %s5770_s18  ;;  %v2814_v41 = vpop.permute.xlu0 %2813  ;;  %v7209_v5 = vsel %vm2747_vm14, %v2760_v28, %v2761_v29  ;;  %3810 = vst.msk [vmem:[#allocation5 + $0x60] sm:$0xff] %vm3202_vm9, %v5759_v0  ;;  %3812 = vst.msk [vmem:[#allocation5 + $0x70] sm:$0xff] %vm3202_vm9, %v5759_v0 }
 0x2a3   : > { %2838 = vst.msk [vmem:[#allocation6] sm:$0xff] %vm2837_vm2, %v2814_v41 }
 0x2a4   : > { %3814 = vst.msk [vmem:[#allocation5 + $0x80] sm:$0xff] %vm3202_vm9, %v5759_v0 }
 0x2a6   : > { %2993 = vrot.lane.b32.xlu1 %v7147_v33, %s5770_s18 }
 0x2aa   : > { %3026 = vrot.lane.b32.xlu1 %v7040_v11, %s5771_s20 }
 0x2ae   : > { %3030 = vrot.lane.b32.xlu1 %v7209_v5, %s5771_s20 }
 0x2b5   : > { %v5564_v30 = vpop.f32.mrb[16].mxu0 }
 0x2b6   : > { %v2407_v20 = vadd.f32 %v7216_v31, %v5564_v30  ;;  %v2705_v32 = vpop.permute.xlu1 %2704  ;;  %v2398_v17 = vpop.f32.mrb[17].mxu0 }
 0x2b7   : > { %2726 = vst.msk [vmem:[#allocation6 + $0x30] sm:$0xff] %vm2722_vm15, %v2705_v32  ;;  %v2399_v11 = vadd.f32 %v7216_v31, %v2398_v17  ;;  %v5565_v22 = vpop.f32.mrb[18].mxu0 }
 0x2b8   : > { %v2818_v19 = vpop.permute.xlu0 %2817  ;;  %v2479_v35 = vmax.f32 %v2407_v20, 0.0  ;;  %v2410_v36 = vadd.f32 %v7216_v31, %v5565_v22  ;;  %v2401_v37 = vpop.f32.mrb[19].mxu0 }
 0x2b9   : > { %2840 = vst.msk [vmem:[#allocation6 + $0x20] sm:$0xff] %vm2837_vm2, %v2818_v19  ;;  %v2477_v38 = vmax.f32 %v2399_v11, 0.0  ;;  %v2402_v40 = vadd.f32 %v7216_v31, %v2401_v37 }
 0x2ba   : > { %2568 = vst.msk [vmem:[#allocation3 + $0xf1] sm:$0xff] %vm2493_vm12, %v2479_v35  ;;  %v2480_v23 = vmax.f32 %v2410_v36, 0.0  ;;  %v2775_v26 = vpop.permute.xlu1 %2774 }
 0x2bb   : > { %2566 = vst.msk [vmem:[#allocation3 + $0xd9] sm:$0xff] %vm2493_vm12, %v2477_v38  ;;  %v2478_v45 = vmax.f32 %v2402_v40, 0.0 }
 0x2bc   : > { %2798 = vst.msk [vmem:[#allocation6 + $0x10] sm:$0xff] %vm2796_vm0, %v2775_v26  ;;  %v2855_v53 = vpop.permute.xlu0 %2854 }
 0x2bd   : > { %2569 = vst.msk [vmem:[#allocation3 + $0xf9] sm:$0xff] %vm2493_vm12, %v2480_v23  ;;  %2567 = vst.msk [vmem:[#allocation3 + $0xe1] sm:$0xff] %vm2493_vm12, %v2478_v45 }
 0x2be   : > { %2879 = vst.msk [vmem:[#allocation6] sm:$0xff] %vm2878_vm3, %v2855_v53  ;;  %v2779_v54 = vpop.permute.xlu1 %2778 }
 0x2bf   : > { %2800 = vst.msk [vmem:[#allocation6 + $0x30] sm:$0xff] %vm2796_vm0, %v2779_v54 }
 0x2c0   : > { %v2859_v3 = vpop.permute.xlu0 %2858 }
 0x2c1   : > { %2881 = vst.msk [vmem:[#allocation6 + $0x20] sm:$0xff] %vm2878_vm3, %v2859_v3 }
 0x2c2   : > { %v2816_v48 = vpop.permute.xlu1 %2815 }
 0x2c3   : > { %2839 = vst.msk [vmem:[#allocation6 + $0x10] sm:$0xff] %vm2837_vm2, %v2816_v48 }
 0x2c4   : > { %v2920_v33 = vpop.permute.xlu0 %2919  ;;  %v7233_v34 = vld [vmem:[#allocation3 + $0xf1] ss:$2 sm:$0xff]  ;;  %v7235_v50 = vld [vmem:[#allocation3 + $0xf0] ss:$2 sm:$0xff] }
 0x2c5   : > { %2944 = vst.msk [vmem:[#allocation6] sm:$0xff] %vm2943_vm4, %v2920_v33  ;;  %2708 = vrot.lane.b32.xlu1 %v7233_v34, %s5761_s15  ;;  %v7280_v4 = vld [vmem:[#allocation3 + $0xd8] ss:$2 sm:$0xff]  ;;  %v2763_v33 = vrot.slane %v7235_v50, 1 }
 0x2c6   : > { %2687 = vst.msk [vmem:[#allocation6 + $0x50] sm:$0xff] %vm2493_vm12, %v7235_v50  ;;  %v2604_v3 = vld [vmem:[#allocation3 + $0x100] ss:$2 sm:$0x1] }
 0x2c8   : > { %v2924_v51 = vpop.permute.xlu0 %2923 }
 0x2c9   : > { %2946 = vst.msk [vmem:[#allocation6 + $0x20] sm:$0xff] %vm2943_vm4, %v2924_v51  ;;  %v2764_v51 = vrot.slane %v2604_v3, 1  ;;  %v3233_v3 = vld [vmem:[#allocation4] sm:$0xff] }
 0x2cc   : > { %v2954_v52 = vpop.permute.xlu0 %2953 }
 0x2cd   : > { %2978 = vst.msk [vmem:[#allocation6] sm:$0xff] %vm2977_vm5, %v2954_v52 }
 0x2d0   : > { %v2958_v55 = vpop.permute.xlu0 %2957 }
 0x2d1   : > { %2980 = vst.msk [vmem:[#allocation6 + $0x20] sm:$0xff] %vm2977_vm5, %v2958_v55 }
 0x2d4   : > { %v2988_v56 = vpop.permute.xlu0 %2987 }
 0x2d5   : > { %3012 = vst.msk [vmem:[#allocation6] sm:$0xff] %vm3011_vm6, %v2988_v56 }
 0x2d8   : > { %v2992_v58 = vpop.permute.xlu0 %2991 }
 0x2d9   : > { %3014 = vst.msk [vmem:[#allocation6 + $0x20] sm:$0xff] %vm3011_vm6, %v2992_v58  ;;  %v2765_v58 = vsel %vm2747_vm14, %v2763_v33, %v2764_v51 }
 0x2dc   : > { %v3025_v59 = vpop.permute.xlu0 %3024 }
 0x2dd   : > { %3049 = vst.msk [vmem:[#allocation6] sm:$0xff] %vm3048_vm7, %v3025_v59 }
 0x2e0   : > { %v3029_v60 = vpop.permute.xlu0 %3028 }
 0x2e1   : > { %3051 = vst.msk [vmem:[#allocation6 + $0x20] sm:$0xff] %vm3048_vm7, %v3029_v60 }
 0x2e4   : > { %v3057_v29 = vld [vmem:[#allocation6] sm:$0xff] }
 0x2e5   : > { %3306 = vst.msk [vmem:[#allocation6] sm:$0xff] %vm3202_vm9, %v3233_v3 }
 0x2e8   : > { %v3059_v20 = vld [vmem:[#allocation6 + $0x20] sm:$0xff] }
 0x2f5   : > { %v5568_v63 = vpop.f32.mrb[20].mxu0 }
 0x2f6   : > { %v2423_v2 = vadd.f32 %v7216_v31, %v5568_v63  ;;  %v2414_v6 = vpop.f32.mrb[21].mxu0  ;;  %v2707_v7 = vpop.permute.xlu0 %2706  ;;  %v2675_v63 = vld [vmem:[#allocation3 + $0xd9] ss:$2 sm:$0xff] }
 0x2f7   : > { %v2415_v57 = vadd.f32 %v7216_v31, %v2414_v6  ;;  %2727 = vst.msk [vmem:[#allocation6 + $0x40] sm:$0xff] %vm2722_vm15, %v2707_v7  ;;  %v5569_v44 = vpop.f32.mrb[22].mxu0  ;;  %v2907_v7 = vrot.slane %v7280_v4, 1 }
 0x2f8   : > { %v2820_v8 = vpop.permute.xlu1 %2819  ;;  %v2483_v9 = vmax.f32 %v2423_v2, 0.0  ;;  %v2426_v39 = vadd.f32 %v7216_v31, %v5569_v44  ;;  %v2417_v1 = vpop.f32.mrb[23].mxu0  ;;  %v2653_v2 = vld [vmem:[#allocation3 + $0xe8] ss:$2 sm:$0x1] }
 0x2f9   : > { %2841 = vst.msk [vmem:[#allocation6 + $0x30] sm:$0xff] %vm2837_vm2, %v2820_v8  ;;  %v2481_v10 = vmax.f32 %v2415_v57, 0.0  ;;  %v2418_v12 = vadd.f32 %v7216_v31, %v2417_v1  ;;  %v2908_v44 = vrot.slane %v2653_v2, 1 }
 0x2fa   : > { %2572 = vst.msk [vmem:[#allocation3 + $0x121] sm:$0xff] %vm2493_vm12, %v2483_v9  ;;  %v2484_v13 = vmax.f32 %v2426_v39, 0.0 }
 0x2fb   : > { %2570 = vst.msk [vmem:[#allocation3 + $0x109] sm:$0xff] %vm2493_vm12, %v2481_v10  ;;  %v2482_v14 = vmax.f32 %v2418_v12, 0.0  ;;  %v2909_v1 = vsel %vm2747_vm14, %v2907_v7, %v2908_v44 }
 0x2fc   : > { %v2857_v46 = vpop.permute.xlu1 %2856  ;;  %2573 = vst.msk [vmem:[#allocation3 + $0x129] sm:$0xff] %vm2493_vm12, %v2484_v13 }
 0x2fd   : > { %2880 = vst.msk [vmem:[#allocation6 + $0x10] sm:$0xff] %vm2878_vm3, %v2857_v46 }
 0x2fe   : > { %2571 = vst.msk [vmem:[#allocation3 + $0x111] sm:$0xff] %vm2493_vm12, %v2482_v14 }
 0x300   : > { %v2861_v43 = vpop.permute.xlu1 %2860 }
 0x301   : > { %2882 = vst.msk [vmem:[#allocation6 + $0x30] sm:$0xff] %vm2878_vm3, %v2861_v43 }
 0x303   : > { %v7261_v47 = vld [vmem:[#allocation3 + $0x121] ss:$2 sm:$0xff]  ;;  %v7263_v16 = vld [vmem:[#allocation3 + $0x120] ss:$2 sm:$0xff] }
 0x304   : > { %v2922_v15 = vpop.permute.xlu1 %2921  ;;  %2710 = vrot.lane.b32.xlu0 %v7261_v47, %s5761_s15  ;;  %v2608_v49 = vld [vmem:[#allocation3 + $0x130] ss:$2 sm:$0x1]  ;;  %2688 = vst.msk [vmem:[#allocation6 + $0x60] sm:$0xff] %vm2493_vm12, %v7263_v16  ;;  %v2766_v24 = vrot.slane %v7263_v16, 1 }
 0x305   : > { %2945 = vst.msk [vmem:[#allocation6 + $0x10] sm:$0xff] %vm2943_vm4, %v2922_v15  ;;  %v2767_v61 = vrot.slane %v2608_v49, 1  ;;  %v7311_v9 = vld [vmem:[#allocation3 + $0x108] ss:$2 sm:$0xff] }
 0x307   : > { %v7275_v25 = vsel %vm2747_vm14, %v2766_v24, %v2767_v61 }
 0x308   : > { %v2926_v18 = vpop.permute.xlu1 %2925  ;;  %2780 = vrot.lane.b32.xlu0 %v7209_v5, %s5763_s17 }
 0x309   : > { %2947 = vst.msk [vmem:[#allocation6 + $0x30] sm:$0xff] %vm2943_vm4, %v2926_v18 }
 0x30c   : > { %v2956_v62 = vpop.permute.xlu1 %2955  ;;  %2784 = vrot.lane.b32.xlu0 %v7275_v25, %s5763_s17 }
 0x30d   : > { %2979 = vst.msk [vmem:[#allocation6 + $0x10] sm:$0xff] %vm2977_vm5, %v2956_v62 }
 0x310   : > { %v2960_v21 = vpop.permute.xlu1 %2959  ;;  %2821 = vrot.lane.b32.xlu0 %v7280_v4, %s5765_s19 }
 0x311   : > { %2981 = vst.msk [vmem:[#allocation6 + $0x30] sm:$0xff] %vm2977_vm5, %v2960_v21 }
 0x314   : > { %v2990_v41 = vpop.permute.xlu1 %2989 }
 0x315   : > { %3013 = vst.msk [vmem:[#allocation6 + $0x10] sm:$0xff] %vm3011_vm6, %v2990_v41 }
 0x318   : > { %v2994_v42 = vpop.permute.xlu1 %2993 }
 0x319   : > { %3015 = vst.msk [vmem:[#allocation6 + $0x30] sm:$0xff] %vm3011_vm6, %v2994_v42 }
 0x31c   : > { %v3027_v27 = vpop.permute.xlu1 %3026 }
 0x31d   : > { %3050 = vst.msk [vmem:[#allocation6 + $0x10] sm:$0xff] %vm3048_vm7, %v3027_v27  ;;  %v2677_v27 = vld [vmem:[#allocation3 + $0x109] ss:$2 sm:$0xff] }
 0x320   : > { %v3031_v28 = vpop.permute.xlu1 %3030 }
 0x321   : > { %3052 = vst.msk [vmem:[#allocation6 + $0x30] sm:$0xff] %vm3048_vm7, %v3031_v28  ;;  %v3241_v28 = vld [vmem:[#allocation4 + $0x1] sm:$0xff] }
 0x324   : > { %v3058_v5 = vld [vmem:[#allocation6 + $0x10] sm:$0xff] }
 0x325   : > { %v3065_v30 = vpack.c.bf16 %v3058_v5, %v3057_v29  ;;  %v2657_v29 = vld [vmem:[#allocation3 + $0x118] ss:$2 sm:$0x1]  ;;  %v2910_v5 = vrot.slane %v7311_v9, 1 }
 0x327   : > { %5588 = vmatprep.mubr.msk.bf16.mxu1 %vm3112_vm8, %v3065_v30 }
 0x328   : > { %v3060_v32 = vld [vmem:[#allocation6 + $0x30] sm:$0xff] }
 0x329   : > { %v3066_v17 = vpack.c.bf16 %v3060_v32, %v3059_v20  ;;  %v2911_v20 = vrot.slane %v2657_v29, 1  ;;  %v3249_v32 = vld [vmem:[#allocation4 + $0x2] sm:$0xff] }
 0x32b   : > { %5589 = vmatmul.mubr.msk.bf16.vlgmr.msra.gmra.mrb[0].mxu1 %vm3112_vm8, %v3066_v17 }
 0x335   : > { %v5572_v11 = vpop.f32.mrb[24].mxu0 }
 0x336   : > { %v2439_v22 = vadd.f32 %v7216_v31, %v5572_v11  ;;  %v2430_v19 = vpop.f32.mrb[25].mxu0 }
 0x337   : > { %v2709_v35 = vpop.permute.xlu1 %2708  ;;  %v2431_v36 = vadd.f32 %v7216_v31, %v2430_v19  ;;  %v5573_v37 = vpop.f32.mrb[26].mxu0 }
 0x338   : > { %2728 = vst.msk [vmem:[#allocation6 + $0x50] sm:$0xff] %vm2722_vm15, %v2709_v35  ;;  %v2487_v38 = vmax.f32 %v2439_v22, 0.0  ;;  %v2442_v40 = vadd.f32 %v7216_v31, %v5573_v37  ;;  %v2433_v23 = vpop.f32.mrb[27].mxu0  ;;  %v2912_v22 = vsel %vm2747_vm14, %v2910_v5, %v2911_v20  ;;  %v5737_v5 = vld [vmem:[%s8133_s5] sm:$0xff]   ;;  %v5775_v20 = vmov 0  }
 0x339   : > { %v2485_v26 = vmax.f32 %v2431_v36, 0.0  ;;  %v2434_v45 = vadd.f32 %v7216_v31, %v2433_v23  ;;  %3724 = vmatprep.subr.bf16.mxu1 %v5775_v20 }
 0x33a   : > { %2576 = vst.msk [vmem:[#allocation3 + $0x151] sm:$0xff] %vm2493_vm12, %v2487_v38  ;;  %v2488_v53 = vmax.f32 %v2442_v40, 0.0  ;;  %3725 = vmatpush1.bf16.msra.mxu1 %v5737_v5 }
 0x33b   : > { %2574 = vst.msk [vmem:[#allocation3 + $0x139] sm:$0xff] %vm2493_vm12, %v2485_v26  ;;  %v2486_v54 = vmax.f32 %v2434_v45, 0.0  ;;  %3726 = vmatprep.subr.bf16.mxu1 %v5775_v20 }
 0x33c   : > { %2577 = vst.msk [vmem:[#allocation3 + $0x159] sm:$0xff] %vm2493_vm12, %v2488_v53 }
 0x33d   : > { %2575 = vst.msk [vmem:[#allocation3 + $0x141] sm:$0xff] %vm2493_vm12, %v2486_v54 }
 0x343   : > { %v2632_v48 = vld [vmem:[#allocation3 + $0x151] ss:$2 sm:$0xff]  ;;  %v2610_v52 = vld [vmem:[#allocation3 + $0x150] ss:$2 sm:$0xff] }
 0x344   : > { %2712 = vrot.lane.b32.xlu1 %v2632_v48, %s5761_s15  ;;  %v2659_v55 = vld [vmem:[#allocation3 + $0x138] ss:$2 sm:$0xff]  ;;  %2689 = vst.msk [vmem:[#allocation6 + $0x70] sm:$0xff] %vm2493_vm12, %v2610_v52  ;;  %v2769_v59 = vrot.slane %v2610_v52, 1  ;;  %v2679_v57 = vld [vmem:[#allocation3 + $0x139] ss:$2 sm:$0xff] }
 0x345   : > { %v2612_v56 = vld [vmem:[#allocation3 + $0x160] ss:$2 sm:$0x1]  ;;  %2825 = vrot.lane.b32.xlu0 %v2659_v55, %s5765_s19  ;;  %v2661_v8 = vld [vmem:[#allocation3 + $0x148] ss:$2 sm:$0x1] }
 0x346   : > { %v2770_v60 = vrot.slane %v2612_v56, 1  ;;  %v2913_v39 = vrot.slane %v2659_v55, 1  ;;  %v2914_v10 = vrot.slane %v2661_v8, 1 }
 0x348   : > { %2782 = vrot.lane.b32.xlu1 %v2765_v58, %s5763_s17  ;;  %v2771_v6 = vsel %vm2747_vm14, %v2769_v59, %v2770_v60  ;;  %v2915_v12 = vsel %vm2747_vm14, %v2913_v39, %v2914_v10 }
 0x349   : > { %2862 = vrot.lane.b32.xlu0 %v2675_v63, %s5767_s28 }
 0x34c   : > { %2786 = vrot.lane.b32.xlu1 %v2771_v6, %s5763_s17 }
 0x34d   : > { %2866 = vrot.lane.b32.xlu0 %v2679_v57, %s5767_s28  ;;  %v7439_v57 = vld [vmem:[%s8132_s4] ss:$0 sm:$0xff] }
 0x350   : > { %2823 = vrot.lane.b32.xlu1 %v7311_v9, %s5765_s19 }
 0x351   : > { %2927 = vrot.lane.b32.xlu0 %v2909_v1, %s5768_s14 }
 0x355   : > { %2931 = vrot.lane.b32.xlu0 %v2915_v12, %s5768_s14 }
 0x359   : > { %2961 = vrot.lane.b32.xlu0 %v7235_v50, %s5769_s16 }
 0x35d   : > { %2965 = vrot.lane.b32.xlu0 %v2610_v52, %s5769_s16 }
 0x361   : > { %2995 = vrot.lane.b32.xlu0 %v7233_v34, %s5770_s18 }
 0x365   : > { %2999 = vrot.lane.b32.xlu0 %v2632_v48, %s5770_s18 }
 0x369   : > { %3032 = vrot.lane.b32.xlu0 %v2765_v58, %s5771_s20 }
 0x36d   : > { %3036 = vrot.lane.b32.xlu0 %v2771_v6, %s5771_s20 }
 0x371   : > { %v5576_v13 = vpop.f32.mrb[28].mxu0  ;;  %3322 = vrot.lane.b32.xlu0 %v3241_v28, %s5763_s17 }
 0x372   : > { %v2455_v14 = vadd.f32 %v7216_v31, %v5576_v13  ;;  %v2446_v46 = vpop.f32.mrb[29].mxu0 }
 0x373   : > { %v2447_v43 = vadd.f32 %v7216_v31, %v2446_v46  ;;  %v5577_v15 = vpop.f32.mrb[30].mxu0 }
 0x374   : > { %v2491_v49 = vmax.f32 %v2455_v14, 0.0  ;;  %v2458_v50 = vadd.f32 %v7216_v31, %v5577_v15  ;;  %v2449_v18 = vpop.f32.mrb[31].mxu0 }
 0x375   : > { %v2489_v24 = vmax.f32 %v2447_v43, 0.0  ;;  %v2450_v34 = vadd.f32 %v7216_v31, %v2449_v18  ;;  %3363 = vrot.lane.b32.xlu0 %v3249_v32, %s5767_s28  ;;  %v5738_v32 = vld [vmem:[%s8133_s5 + $0x8] sm:$0xff]  }
 0x376   : > { %2580 = vst.msk [vmem:[#allocation3 + $0x181] sm:$0xff] %vm2493_vm12, %v2491_v49  ;;  %v2492_v61 = vmax.f32 %v2458_v50, 0.0  ;;  %v2711_v62 = vpop.permute.xlu0 %2710  ;;  %3727 = vmatpush1.bf16.msra.mxu1 %v5738_v32 }
 0x377   : > { %2578 = vst.msk [vmem:[#allocation3 + $0x169] sm:$0xff] %vm2493_vm12, %v2489_v24  ;;  %v2490_v21 = vmax.f32 %v2450_v34, 0.0  ;;  %3728 = vmatprep.subr.bf16.mxu1 %v5775_v20 }
 0x378   : > { %2729 = vst.msk [vmem:[#allocation6 + $0x60] sm:$0xff] %vm2722_vm15, %v2711_v62 }
 0x379   : > { %2581 = vst.msk [vmem:[#allocation3 + $0x189] sm:$0xff] %vm2493_vm12, %v2492_v61  ;;  %2579 = vst.msk [vmem:[#allocation3 + $0x171] sm:$0xff] %vm2493_vm12, %v2490_v21 }
 0x37a   : > { %v2781_v4 = vpop.permute.xlu0 %2780 }
 0x37b   : > { %2801 = vst.msk [vmem:[#allocation6 + $0x40] sm:$0xff] %vm2796_vm0, %v2781_v4 }
 0x37e   : > { %v2785_v31 = vpop.permute.xlu0 %2784 }
 0x37f   : > { %2803 = vst.msk [vmem:[#allocation6 + $0x60] sm:$0xff] %vm2796_vm0, %v2785_v31 }
 0x380   : > { %v2663_v41 = vld [vmem:[#allocation3 + $0x168] ss:$2 sm:$0xff]  ;;  %v2681_v30 = vld [vmem:[#allocation3 + $0x169] ss:$2 sm:$0xff] }
 0x381   : > { %2827 = vrot.lane.b32.xlu1 %v2663_v41, %s5765_s19  ;;  %v2665_v17 = vld [vmem:[#allocation3 + $0x178] ss:$2 sm:$0x1]  ;;  %v2916_v11 = vrot.slane %v2663_v41, 1  ;;  %v2614_v36 = vld [vmem:[#allocation3 + $0x180] ss:$2 sm:$0xff] }
 0x382   : > { %v2822_v42 = vpop.permute.xlu0 %2821  ;;  %v2917_v19 = vrot.slane %v2665_v17, 1  ;;  %v2634_v37 = vld [vmem:[#allocation3 + $0x181] ss:$2 sm:$0xff]  ;;  %v2616_v38 = vld [vmem:[#allocation3 + $0x190] ss:$2 sm:$0x1] }
 0x383   : > { %2842 = vst.msk [vmem:[#allocation6 + $0x40] sm:$0xff] %vm2837_vm2, %v2822_v42  ;;  %v3021_v40 = vrot.slane %v2614_v36, 1  ;;  %v3022_v23 = vrot.slane %v2616_v38, 1 }
 0x384   : > { %v2918_v35 = vsel %vm2747_vm14, %v2916_v11, %v2917_v19 }
 0x385   : > { %2864 = vrot.lane.b32.xlu1 %v2677_v27, %s5767_s28  ;;  %v3023_v26 = vsel %vm2747_vm14, %v3021_v40, %v3022_v23  ;;  %v5741_v40 = vld [vmem:[%s8133_s5 + $0x20] sm:$0xff]   ;;  %vm3428_vm14 = vcmask 523648  }
 0x389   : > { %2868 = vrot.lane.b32.xlu1 %v2681_v30, %s5767_s28 }
 0x38d   : > { %2929 = vrot.lane.b32.xlu1 %v2912_v22, %s5768_s14  ;;  %v5739_v22 = vld [vmem:[%s8133_s5 + $0x10] sm:$0xff]  }
 0x38e   : > { %3729 = vmatpush1.bf16.msra.mxu1 %v5739_v22 }
 0x38f   : > { %3730 = vmatprep.subr.bf16.mxu1 %v5775_v20 }
 0x391   : > { %2933 = vrot.lane.b32.xlu1 %v2918_v35, %s5768_s14  ;;  %s5777_s14 = smov 104  }
 0x395   : > { %2963 = vrot.lane.b32.xlu1 %v7263_v16, %s5769_s16 }
 0x399   : > { %2967 = vrot.lane.b32.xlu1 %v2614_v36, %s5769_s16  ;;  %v5740_v36 = vld [vmem:[%s8133_s5 + $0x18] sm:$0xff]  }
 0x39a   : > { %3731 = vmatpush1.bf16.msra.mxu1 %v5740_v36 }
 0x39b   : > { %3732 = vmatprep.subr.bf16.mxu1 %v5775_v20 }
 0x39d   : > { %2997 = vrot.lane.b32.xlu1 %v7261_v47, %s5770_s18 }
 0x39e   : > { %3733 = vmatpush1.bf16.msra.mxu1 %v5741_v40 }
 0x39f   : > { %3734 = vmatprep.subr.bf16.mxu1 %v5775_v20 }
 0x3a1   : > { %3001 = vrot.lane.b32.xlu1 %v2634_v37, %s5770_s18 }
 0x3a5   : > { %3034 = vrot.lane.b32.xlu1 %v7275_v25, %s5771_s20 }
 0x3a9   : > { %3038 = vrot.lane.b32.xlu1 %v3023_v26, %s5771_s20 }
 0x3b6   : > { %v2713_v16 = vpop.permute.xlu1 %2712 }
 0x3b7   : > { %2730 = vst.msk [vmem:[#allocation6 + $0x70] sm:$0xff] %vm2722_vm15, %v2713_v16  ;;  %v2826_v45 = vpop.permute.xlu0 %2825  ;;  %vm3469_vm15 = vcmask 654848  }
 0x3b8   : > { %2844 = vst.msk [vmem:[#allocation6 + $0x60] sm:$0xff] %vm2837_vm2, %v2826_v45 }
 0x3ba   : > { %v2783_v47 = vpop.permute.xlu1 %2782 }
 0x3bb   : > { %2802 = vst.msk [vmem:[#allocation6 + $0x50] sm:$0xff] %vm2796_vm0, %v2783_v47  ;;  %v2863_v53 = vpop.permute.xlu0 %2862 }
 0x3bc   : > { %2883 = vst.msk [vmem:[#allocation6 + $0x40] sm:$0xff] %vm2878_vm3, %v2863_v53 }
 0x3be   : > { %v2787_v54 = vpop.permute.xlu1 %2786 }
 0x3bf   : > { %2804 = vst.msk [vmem:[#allocation6 + $0x70] sm:$0xff] %vm2796_vm0, %v2787_v54  ;;  %v2867_v25 = vpop.permute.xlu0 %2866  ;;  %v5742_v54 = vld [vmem:[%s8133_s5 + $0x28] sm:$0xff]   ;;  %vm3510_vm0 = vcmask 786048  }
 0x3c0   : > { %2885 = vst.msk [vmem:[#allocation6 + $0x60] sm:$0xff] %vm2878_vm3, %v2867_v25  ;;  %3735 = vmatpush1.bf16.msra.mxu1 %v5742_v54  ;;  %v5743_v25 = vld [vmem:[%s8133_s5 + $0x30] sm:$0xff]  }
 0x3c1   : > { %3736 = vmatprep.subr.bf16.mxu1 %v5775_v20  ;;  %v3297_v54 = vld [vmem:[#allocation4 + $0x91] sm:$0xff] }
 0x3c2   : > { %v2824_v48 = vpop.permute.xlu1 %2823 }
 0x3c3   : > { %2843 = vst.msk [vmem:[#allocation6 + $0x50] sm:$0xff] %vm2837_vm2, %v2824_v48  ;;  %v2928_v33 = vpop.permute.xlu0 %2927  ;;  %v5744_v48 = vld [vmem:[%s8133_s5 + $0x38] sm:$0xff]  }
 0x3c4   : > { %2948 = vst.msk [vmem:[#allocation6 + $0x40] sm:$0xff] %vm2943_vm4, %v2928_v33  ;;  %3737 = vmatpush1.bf16.msra.mxu1 %v5743_v25 }
 0x3c5   : > { %3738 = vmatprep.subr.bf16.mxu1 %v5775_v20 }
 0x3c7   : > { %v2932_v51 = vpop.permute.xlu0 %2931 }
 0x3c8   : > { %2950 = vst.msk [vmem:[#allocation6 + $0x60] sm:$0xff] %vm2943_vm4, %v2932_v51  ;;  %3739 = vmatpush1.bf16.msra.mxu1 %v5744_v48  ;;  %v5745_v51 = vld [vmem:[%s8133_s5 + $0x40] sm:$0xff]  }
 0x3c9   : > { %3740 = vmatprep.subr.bf16.mxu1 %v5775_v20  ;;  %v3848_v48 = vld [vmem:[#allocation5 + $0x80] sm:$0xff] }
 0x3cb   : > { %v2962_v52 = vpop.permute.xlu0 %2961 }
 0x3cc   : > { %2982 = vst.msk [vmem:[#allocation6 + $0x40] sm:$0xff] %vm2977_vm5, %v2962_v52  ;;  %3741 = vmatpush1.bf16.msra.mxu1 %v5745_v51 }
 0x3cf   : > { %v2966_v55 = vpop.permute.xlu0 %2965 }
 0x3d0   : > { %2984 = vst.msk [vmem:[#allocation6 + $0x60] sm:$0xff] %vm2977_vm5, %v2966_v55 }
 0x3d3   : > { %v2996_v56 = vpop.permute.xlu0 %2995 }
 0x3d4   : > { %3016 = vst.msk [vmem:[#allocation6 + $0x40] sm:$0xff] %vm3011_vm6, %v2996_v56 }
 0x3d7   : > { %v3000_v58 = vpop.permute.xlu0 %2999 }
 0x3d8   : > { %3018 = vst.msk [vmem:[#allocation6 + $0x60] sm:$0xff] %vm3011_vm6, %v3000_v58 }
 0x3db   : > { %v3033_v59 = vpop.permute.xlu0 %3032 }
 0x3dc   : > { %3053 = vst.msk [vmem:[#allocation6 + $0x40] sm:$0xff] %vm3048_vm7, %v3033_v59 }
 0x3df   : > { %v3037_v60 = vpop.permute.xlu0 %3036 }
 0x3e0   : > { %3055 = vst.msk [vmem:[#allocation6 + $0x60] sm:$0xff] %vm3048_vm7, %v3037_v60 }
 0x3e3   : > { %v3323_v6 = vpop.permute.xlu0 %3322  ;;  %v3061_v41 = vld [vmem:[#allocation6 + $0x40] sm:$0xff] }
 0x3e4   : > { %3347 = vst.msk [vmem:[#allocation6] sm:$0xff] %vm3346_vm11, %v3323_v6  ;;  %v3305_v6 = vld [vmem:[#allocation4 + $0x92] sm:$0xff] }
 0x3e5   : > { %3608 = vst.msk [vmem:[#allocation6 + $0x78] sm:$0xff] %vm3202_vm9, %v3305_v6 }
 0x3e7   : > { %v3364_v44 = vpop.permute.xlu0 %3363  ;;  %v3063_v23 = vld [vmem:[#allocation6 + $0x60] sm:$0xff] }
 0x3e8   : > { %3388 = vst.msk [vmem:[#allocation6] sm:$0xff] %vm3387_vm13, %v3364_v44 }
 0x3f3   : > { %v2828_v63 = vpop.permute.xlu1 %2827 }
 0x3f4   : > { %2845 = vst.msk [vmem:[#allocation6 + $0x70] sm:$0xff] %vm2837_vm2, %v2828_v63  ;;  %vm3551_vm2 = vcmask 917248  }
 0x3f7   : > { %v2865_v2 = vpop.permute.xlu1 %2864 }
 0x3f8   : > { %2884 = vst.msk [vmem:[#allocation6 + $0x50] sm:$0xff] %vm2878_vm3, %v2865_v2 }
 0x3fb   : > { %v2869_v7 = vpop.permute.xlu1 %2868 }
 0x3fc   : > { %2886 = vst.msk [vmem:[#allocation6 + $0x70] sm:$0xff] %vm2878_vm3, %v2869_v7  ;;  %vm3592_vm3 = vcmask 1048448  }
 0x3fe   : > { %v5590_v8 = vpop.f32.mrb[0].mxu1 }
 0x3ff   : > { %v3172_v9 = vadd.f32 %v5590_v8, %v7439_v57  ;;  %v3163_v39 = vpop.f32.mrb[1].mxu1  ;;  %v2930_v10 = vpop.permute.xlu1 %2929 }
 0x400   : > { %v3164_v1 = vadd.f32 %v7439_v57, %v3163_v39  ;;  %v5591_v12 = vpop.f32.mrb[2].mxu1  ;;  %2949 = vst.msk [vmem:[#allocation6 + $0x50] sm:$0xff] %vm2943_vm4, %v2930_v10 }
 0x401   : > { %v3196_v13 = vmax.f32 %v3172_v9, 0.0  ;;  %v3175_v14 = vadd.f32 %v5591_v12, %v7439_v57  ;;  %v3166_v46 = vpop.f32.mrb[3].mxu1 }
 0x402   : > { %v3194_v43 = vmax.f32 %v3164_v1, 0.0  ;;  %v3167_v15 = vadd.f32 %v7439_v57, %v3166_v46 }
 0x403   : > { %3227 = vst.msk [vmem:[#allocation4 + $0x31] sm:$0xff] %vm3202_vm9, %v3196_v13  ;;  %v3197_v49 = vmax.f32 %v3175_v14, 0.0  ;;  %v2934_v18 = vpop.permute.xlu1 %2933 }
 0x404   : > { %3225 = vst.msk [vmem:[#allocation4 + $0x11] sm:$0xff] %vm3202_vm9, %v3194_v43  ;;  %v3195_v50 = vmax.f32 %v3167_v15, 0.0 }
 0x405   : > { %3228 = vst.msk [vmem:[#allocation4 + $0x41] sm:$0xff] %vm3202_vm9, %v3197_v49 }
 0x406   : > { %2951 = vst.msk [vmem:[#allocation6 + $0x70] sm:$0xff] %vm2943_vm4, %v2934_v18  ;;  %vm3798_vm4 = vcmask 122880  }
 0x407   : > { %3226 = vst.msk [vmem:[#allocation4 + $0x21] sm:$0xff] %vm3202_vm9, %v3195_v50  ;;  %v2964_v24 = vpop.permute.xlu1 %2963 }
 0x408   : > { %2983 = vst.msk [vmem:[#allocation6 + $0x50] sm:$0xff] %vm2977_vm5, %v2964_v24 }
 0x409   : > { %3799 = vst.msk [vmem:[#allocation5 + $0x8] sm:$0x1] %vm3798_vm4, %v5759_v0  ;;  %3801 = vst.msk [vmem:[#allocation5 + $0x18] sm:$0x1] %vm3798_vm4, %v5759_v0 }
 0x40a   : > { %v3299_v34 = vld [vmem:[#allocation4 + $0x32] sm:$0xff]  ;;  %3803 = vst.msk [vmem:[#allocation5 + $0x28] sm:$0x1] %vm3798_vm4, %v5759_v0  ;;  %3805 = vst.msk [vmem:[#allocation5 + $0x38] sm:$0x1] %vm3798_vm4, %v5759_v0 }
 0x40b   : > { %v3283_v61 = vld [vmem:[#allocation4 + $0x30] sm:$0xff]  ;;  %3602 = vst.msk [vmem:[#allocation6 + $0x18] sm:$0xff] %vm3202_vm9, %v3299_v34  ;;  %v2968_v4 = vpop.permute.xlu1 %2967 }
 0x40c   : > { %3529 = vrot.lane.b32.xlu1 %v3283_v61, %s5772_s23  ;;  %3408 = vrot.lane.b32.xlu0 %v3283_v61, %s5769_s16  ;;  %v3257_v62 = vld [vmem:[#allocation4 + $0x10] sm:$0xff]  ;;  %3309 = vst.msk [vmem:[#allocation6 + $0x30] sm:$0xff] %vm3202_vm9, %v3283_v61  ;;  %v7458_v21 = vld [vmem:[#allocation4 + $0x42] sm:$0xff] }
 0x40d   : > { %v3284_v31 = vld [vmem:[#allocation4 + $0x40] sm:$0xff]  ;;  %3307 = vst.msk [vmem:[#allocation6 + $0x10] sm:$0xff] %vm3202_vm9, %v3257_v62  ;;  %3603 = vst.msk [vmem:[#allocation6 + $0x28] sm:$0xff] %vm3202_vm9, %v7458_v21  ;;  %v3291_v28 = vld [vmem:[#allocation4 + $0x31] sm:$0xff] }
 0x40e   : > { %v7463_v42 = vld [vmem:[#allocation4 + $0x22] sm:$0xff]  ;;  %2985 = vst.msk [vmem:[#allocation6 + $0x70] sm:$0xff] %vm2977_vm5, %v2968_v4  ;;  %v3265_v11 = vld [vmem:[#allocation4 + $0x11] sm:$0xff]  ;;  %vm4029_vm5 = vcmask 523264  }
 0x40f   : > { %v7466_v27 = vld [vmem:[#allocation4 + $0x20] sm:$0xff]  ;;  %3310 = vst.msk [vmem:[#allocation6 + $0x40] sm:$0xff] %vm3202_vm9, %v3284_v31  ;;  %3601 = vst.msk [vmem:[#allocation6 + $0x8] sm:$0xff] %vm3202_vm9, %v7463_v42  ;;  %v2998_v29 = vpop.permute.xlu1 %2997  ;;  %v3273_v35 = vld [vmem:[#allocation4 + $0x12] sm:$0xff] }
 0x410   : > { %3308 = vst.msk [vmem:[#allocation6 + $0x20] sm:$0xff] %vm3202_vm9, %v7466_v27  ;;  %3570 = vrot.lane.b32.xlu1 %v3291_v28, %s5773_s24  ;;  %3449 = vrot.lane.b32.xlu0 %v3291_v28, %s5771_s20  ;;  %v3292_v47 = vld [vmem:[#allocation4 + $0x41] sm:$0xff] }
 0x411   : > { %3017 = vst.msk [vmem:[#allocation6 + $0x50] sm:$0xff] %vm3011_vm6, %v2998_v29  ;;  %v3266_v33 = vld [vmem:[#allocation4 + $0x21] sm:$0xff] }
 0x412   : > { %v3612_v53 = vld [vmem:[#allocation6 + $0x18] sm:$0xff]  ;;  %3807 = vst.msk [vmem:[#allocation5 + $0x48] sm:$0x1] %vm3798_vm4, %v5759_v0  ;;  %3809 = vst.msk [vmem:[#allocation5 + $0x58] sm:$0x1] %vm3798_vm4, %v5759_v0 }
 0x413   : > { %v3002_v30 = vpop.permute.xlu1 %3001  ;;  %3811 = vst.msk [vmem:[#allocation5 + $0x68] sm:$0x1] %vm3798_vm4, %v5759_v0  ;;  %3813 = vst.msk [vmem:[#allocation5 + $0x78] sm:$0x1] %vm3798_vm4, %v5759_v0 }
 0x414   : > { %3490 = vrot.lane.b32.xlu0 %v3299_v34, %s5774_s30  ;;  %3328 = vrot.lane.b32.xlu1 %v3291_v28, %s5763_s17  ;;  %3019 = vst.msk [vmem:[#allocation6 + $0x70] sm:$0xff] %vm3011_vm6, %v3002_v30  ;;  %v3614_v40 = vld [vmem:[#allocation6 + $0x28] sm:$0xff] }
 0x415   : > { %3815 = vst.msk [vmem:[#allocation5 + $0x88] sm:$0x1] %vm3798_vm4, %v5759_v0 }
 0x416   : > { %v3610_v16 = vld [vmem:[#allocation6 + $0x8] sm:$0xff] }
 0x417   : > { %v3035_v17 = vpop.permute.xlu1 %3034  ;;  %v3626_v3 = vpack.c.bf16 %v3612_v53, %v3610_v16  ;;  %v3289_v53 = vld [vmem:[#allocation4 + $0x90] sm:$0xff] }
 0x418   : > { %3369 = vrot.lane.b32.xlu1 %v3299_v34, %s5767_s28  ;;  %3404 = vrot.lane.b32.xlu0 %v3257_v62, %s5769_s16  ;;  %3054 = vst.msk [vmem:[#allocation6 + $0x50] sm:$0xff] %vm3048_vm7, %v3035_v17 }
 0x41b   : > { %v3039_v19 = vpop.permute.xlu1 %3038 }
 0x41c   : > { %3445 = vrot.lane.b32.xlu0 %v3265_v11, %s5771_s20  ;;  %3324 = vrot.lane.b32.xlu1 %v3265_v11, %s5763_s17  ;;  %3056 = vst.msk [vmem:[#allocation6 + $0x70] sm:$0xff] %vm3048_vm7, %v3039_v19 }
 0x41f   : > { %v3062_v37 = vld [vmem:[#allocation6 + $0x50] sm:$0xff] }
 0x420   : > { %3486 = vrot.lane.b32.xlu0 %v3273_v35, %s5774_s30  ;;  %3365 = vrot.lane.b32.xlu1 %v3273_v35, %s5767_s28  ;;  %v3067_v38 = vpack.c.bf16 %v3062_v37, %v3061_v41 }
 0x422   : > { %5592 = vmatprep.mubr.msk.bf16.mxu1 %vm3112_vm8, %v3067_v38 }
 0x423   : > { %v3064_v26 = vld [vmem:[#allocation6 + $0x70] sm:$0xff] }
 0x424   : > { %3531 = vrot.lane.b32.xlu0 %v3284_v31, %s5772_s23  ;;  %3410 = vrot.lane.b32.xlu1 %v3284_v31, %s5769_s16  ;;  %v3068_v45 = vpack.c.bf16 %v3064_v26, %v3063_v23 }
 0x426   : > { %5593 = vmatmul.mubr.msk.bf16.gmra.mrb[4].mxu1 %vm3112_vm8, %v3068_v45 }
 0x427   : > { %5380 = vmatprep.mubr.msk.bf16.mxu1 %vm3202_vm9, %v3626_v3  ;;  %v4134_v3 = vld [vmem:[%s8137_s9] sm:$0xf] }
 0x428   : > { %3572 = vrot.lane.b32.xlu0 %v3292_v47, %s5773_s24  ;;  %3451 = vrot.lane.b32.xlu1 %v3292_v47, %s5771_s20  ;;  %v4155_v25 = vsel %vm3125_vm1, %v4134_v3, 0 }
 0x429   : > { %5694 = vmatprep.subr.msk.bf16.mxu1 %vm3125_vm1, %v4134_v3  ;;  %v4127_v3 = vld [vmem:[#allocation3 + $0x109] ss:$2 sm:$0xff] }
 0x42c   : > { %3330 = vrot.lane.b32.xlu0 %v3292_v47, %s5763_s17  ;;  %3492 = vrot.lane.b32.xlu1 %v7458_v21, %s5774_s30 }
 0x430   : > { %3371 = vrot.lane.b32.xlu0 %v7458_v21, %s5767_s28  ;;  %3406 = vrot.lane.b32.xlu1 %v7466_v27, %s5769_s16 }
 0x434   : > { %3527 = vrot.lane.b32.xlu0 %v7466_v27, %s5772_s23  ;;  %3447 = vrot.lane.b32.xlu1 %v3266_v33, %s5771_s20 }
 0x438   : > { %3568 = vrot.lane.b32.xlu0 %v3266_v33, %s5773_s24  ;;  %3488 = vrot.lane.b32.xlu1 %v7463_v42, %s5774_s30 }
 0x43c   : > { %3326 = vrot.lane.b32.xlu0 %v3266_v33, %s5763_s17  ;;  %v7626_v33 = vld [vmem:[%s8137_s9] sm:$0xf] }
 0x440   : > { %3367 = vrot.lane.b32.xlu0 %v7463_v42, %s5767_s28 }
 0x47e   : > { %v3530_v52 = vpop.permute.xlu1 %3529  ;;  %v3409_v55 = vpop.permute.xlu0 %3408 }
 0x482   : > { %v3571_v56 = vpop.permute.xlu1 %3570  ;;  %v3450_v58 = vpop.permute.xlu0 %3449 }
 0x486   : > { %v3329_v59 = vpop.permute.xlu1 %3328  ;;  %v3491_v60 = vpop.permute.xlu0 %3490 }
 0x487   : > { %3350 = vst.msk [vmem:[#allocation6 + $0x30] sm:$0xff] %vm3346_vm11, %v3329_v59 }
 0x48a   : > { %v3370_v63 = vpop.permute.xlu1 %3369  ;;  %v3405_v2 = vpop.permute.xlu0 %3404 }
 0x48b   : > { %3391 = vst.msk [vmem:[#allocation6 + $0x30] sm:$0xff] %vm3387_vm13, %v3370_v63 }
 0x48c   : > { %3429 = vst.msk [vmem:[#allocation6] sm:$0xff] %vm3428_vm14, %v3405_v2  ;;  %v7642_v2 = vld [vmem:[%s8134_s6] ss:$0 sm:$0xff] }
 0x48e   : > { %v3325_v7 = vpop.permute.xlu1 %3324  ;;  %v3446_v44 = vpop.permute.xlu0 %3445 }
 0x48f   : > { %3348 = vst.msk [vmem:[#allocation6 + $0x10] sm:$0xff] %vm3346_vm11, %v3325_v7 }
 0x490   : > { %3470 = vst.msk [vmem:[#allocation6] sm:$0xff] %vm3469_vm15, %v3446_v44 }
 0x492   : > { %v3366_v8 = vpop.permute.xlu1 %3365  ;;  %v3487_v9 = vpop.permute.xlu0 %3486 }
 0x493   : > { %3389 = vst.msk [vmem:[#allocation6 + $0x10] sm:$0xff] %vm3387_vm13, %v3366_v8 }
 0x494   : > { %3511 = vst.msk [vmem:[#allocation6] sm:$0xff] %vm3510_vm0, %v3487_v9 }
 0x496   : > { %v3411_v39 = vpop.permute.xlu1 %3410  ;;  %v3532_v1 = vpop.permute.xlu0 %3531 }
 0x497   : > { %3432 = vst.msk [vmem:[#allocation6 + $0x30] sm:$0xff] %vm3428_vm14, %v3411_v39 }
 0x49a   : > { %v3452_v10 = vpop.permute.xlu1 %3451  ;;  %v3573_v12 = vpop.permute.xlu0 %3572 }
 0x49b   : > { %3473 = vst.msk [vmem:[#allocation6 + $0x30] sm:$0xff] %vm3469_vm15, %v3452_v10 }
 0x49e   : > { %v3493_v13 = vpop.permute.xlu1 %3492  ;;  %v3331_v14 = vpop.permute.xlu0 %3330 }
 0x49f   : > { %3514 = vst.msk [vmem:[#allocation6 + $0x30] sm:$0xff] %vm3510_vm0, %v3493_v13 }
 0x4a0   : > { %3351 = vst.msk [vmem:[#allocation6 + $0x40] sm:$0xff] %vm3346_vm11, %v3331_v14 }
 0x4a2   : > { %v3407_v46 = vpop.permute.xlu1 %3406  ;;  %v3372_v43 = vpop.permute.xlu0 %3371 }
 0x4a3   : > { %3430 = vst.msk [vmem:[#allocation6 + $0x10] sm:$0xff] %vm3428_vm14, %v3407_v46 }
 0x4a4   : > { %3392 = vst.msk [vmem:[#allocation6 + $0x40] sm:$0xff] %vm3387_vm13, %v3372_v43 }
 0x4a6   : > { %v3448_v15 = vpop.permute.xlu1 %3447  ;;  %v3528_v49 = vpop.permute.xlu0 %3527 }
 0x4a7   : > { %3471 = vst.msk [vmem:[#allocation6 + $0x10] sm:$0xff] %vm3469_vm15, %v3448_v15 }
 0x4a8   : > { %3552 = vst.msk [vmem:[#allocation6] sm:$0xff] %vm3551_vm2, %v3528_v49 }
 0x4aa   : > { %v3489_v50 = vpop.permute.xlu1 %3488  ;;  %v3569_v18 = vpop.permute.xlu0 %3568 }
 0x4ab   : > { %3512 = vst.msk [vmem:[#allocation6 + $0x10] sm:$0xff] %vm3510_vm0, %v3489_v50 }
 0x4ac   : > { %3593 = vst.msk [vmem:[#allocation6] sm:$0xff] %vm3592_vm3, %v3569_v18 }
 0x4ad   : > { %3553 = vst.msk [vmem:[#allocation6 + $0x10] sm:$0xff] %vm3551_vm2, %v3530_v52 }
 0x4ae   : > { %3594 = vst.msk [vmem:[#allocation6 + $0x10] sm:$0xff] %vm3592_vm3, %v3571_v56  ;;  %v3327_v24 = vpop.permute.xlu0 %3326 }
 0x4af   : > { %3349 = vst.msk [vmem:[#allocation6 + $0x20] sm:$0xff] %vm3346_vm11, %v3327_v24 }
 0x4b2   : > { %v3368_v34 = vpop.permute.xlu0 %3367 }
 0x4b3   : > { %3390 = vst.msk [vmem:[#allocation6 + $0x20] sm:$0xff] %vm3387_vm13, %v3368_v34  ;;  %v3609_v61 = vld [vmem:[#allocation6] sm:$0xff] }
 0x4b4   : > { %3431 = vst.msk [vmem:[#allocation6 + $0x20] sm:$0xff] %vm3428_vm14, %v3409_v55 }
 0x4b5   : > { %v3611_v62 = vld [vmem:[#allocation6 + $0x10] sm:$0xff]  ;;  %3472 = vst.msk [vmem:[#allocation6 + $0x20] sm:$0xff] %vm3469_vm15, %v3450_v58 }
 0x4b6   : > { %v3625_v21 = vpack.c.bf16 %v3611_v62, %v3609_v61  ;;  %3513 = vst.msk [vmem:[#allocation6 + $0x20] sm:$0xff] %vm3510_vm0, %v3491_v60 }
 0x4b7   : > { %3554 = vst.msk [vmem:[#allocation6 + $0x20] sm:$0xff] %vm3551_vm2, %v3532_v1 }
 0x4b8   : > { %3757 = vmatmul.mubr.bf16.vlgmr.msra.gmra.mrb[8].mxu1 %v3625_v21  ;;  %3595 = vst.msk [vmem:[#allocation6 + $0x20] sm:$0xff] %vm3592_vm3, %v3573_v12 }
 0x4b9   : > { %5613 = vmatpush3.bf16.msra.mxu1 %v4155_v25  ;;  %v4124_v25 = vld [vmem:[#allocation3 + $0x79] ss:$2 sm:$0xff] }
 0x4ba   : > { %5696 = vmatprep.subr.msk.bf16.mxu1 %vm3125_vm1, %v7626_v33 }
 0x4bf   : > { %v3613_v61 = vld [vmem:[#allocation6 + $0x20] sm:$0xff] }
 0x4f9   : > { %v5594_v4 = vpop.f32.mrb[4].mxu1 }
 0x4fa   : > { %v3188_v31 = vadd.f32 %v5594_v4, %v7439_v57  ;;  %v3179_v41 = vpop.f32.mrb[5].mxu1 }
 0x4fb   : > { %v3180_v42 = vadd.f32 %v7439_v57, %v3179_v41  ;;  %v5595_v27 = vpop.f32.mrb[6].mxu1 }
 0x4fc   : > { %v3200_v28 = vmax.f32 %v3188_v31, 0.0  ;;  %v3191_v29 = vadd.f32 %v5595_v27, %v7439_v57  ;;  %v3182_v5 = vpop.f32.mrb[7].mxu1 }
 0x4fd   : > { %v3198_v30 = vmax.f32 %v3180_v42, 0.0  ;;  %v3183_v20 = vadd.f32 %v7439_v57, %v3182_v5 }
 0x4fe   : > { %3231 = vst.msk [vmem:[#allocation4 + $0x71] sm:$0xff] %vm3202_vm9, %v3200_v28  ;;  %v3201_v32 = vmax.f32 %v3191_v29, 0.0 }
 0x4ff   : > { %3229 = vst.msk [vmem:[#allocation4 + $0x51] sm:$0xff] %vm3202_vm9, %v3198_v30  ;;  %v3199_v17 = vmax.f32 %v3183_v20, 0.0 }
 0x500   : > { %3232 = vst.msk [vmem:[#allocation4 + $0x81] sm:$0xff] %vm3202_vm9, %v3201_v32 }
 0x501   : > { %3230 = vst.msk [vmem:[#allocation4 + $0x61] sm:$0xff] %vm3202_vm9, %v3199_v17 }
 0x505   : > { %v3303_v11 = vld [vmem:[#allocation4 + $0x72] sm:$0xff] }
 0x506   : > { %v3287_v22 = vld [vmem:[#allocation4 + $0x70] sm:$0xff]  ;;  %3606 = vst.msk [vmem:[#allocation6 + $0x58] sm:$0xff] %vm3202_vm9, %v3303_v11 }
 0x507   : > { %v3301_v19 = vld [vmem:[#allocation4 + $0x52] sm:$0xff]  ;;  %3537 = vrot.lane.b32.xlu1 %v3287_v22, %s5772_s23  ;;  %3416 = vrot.lane.b32.xlu0 %v3287_v22, %s5769_s16  ;;  %3313 = vst.msk [vmem:[#allocation6 + $0x70] sm:$0xff] %vm3202_vm9, %v3287_v22  ;;  %v3304_v35 = vld [vmem:[#allocation4 + $0x82] sm:$0xff] }
 0x508   : > { %v3261_v57 = vld [vmem:[#allocation4 + $0x50] sm:$0xff]  ;;  %3604 = vst.msk [vmem:[#allocation6 + $0x38] sm:$0xff] %vm3202_vm9, %v3301_v19  ;;  %3607 = vst.msk [vmem:[#allocation6 + $0x68] sm:$0xff] %vm3202_vm9, %v3304_v35  ;;  %v3302_v36 = vld [vmem:[#allocation4 + $0x62] sm:$0xff] }
 0x509   : > { %3311 = vst.msk [vmem:[#allocation6 + $0x50] sm:$0xff] %vm3202_vm9, %v3261_v57  ;;  %v3286_v37 = vld [vmem:[#allocation4 + $0x60] sm:$0xff]  ;;  %3605 = vst.msk [vmem:[#allocation6 + $0x48] sm:$0xff] %vm3202_vm9, %v3302_v36  ;;  %v3295_v38 = vld [vmem:[#allocation4 + $0x71] sm:$0xff] }
 0x50a   : > { %3312 = vst.msk [vmem:[#allocation6 + $0x60] sm:$0xff] %vm3202_vm9, %v3286_v37  ;;  %v3269_v16 = vld [vmem:[#allocation4 + $0x51] sm:$0xff]  ;;  %v3294_v0 = vld [vmem:[#allocation4 + $0x61] sm:$0xff] }
 0x50b   : > { %3578 = vrot.lane.b32.xlu1 %v3295_v38, %s5773_s24  ;;  %3457 = vrot.lane.b32.xlu0 %v3295_v38, %s5771_s20  ;;  %v3264_v45 = vld [vmem:[#allocation4 + $0x80] sm:$0xff] }
 0x50c   : > { %v3272_v47 = vld [vmem:[#allocation4 + $0x81] sm:$0xff] }
 0x50d   : > { %v3620_v4 = vld [vmem:[#allocation6 + $0x58] sm:$0xff] }
 0x50f   : > { %3498 = vrot.lane.b32.xlu0 %v3303_v11, %s5774_s30  ;;  %3336 = vrot.lane.b32.xlu1 %v3295_v38, %s5763_s17  ;;  %v3616_v23 = vld [vmem:[#allocation6 + $0x38] sm:$0xff] }
 0x510   : > { %v3628_v26 = vpack.c.bf16 %v3616_v23, %v3614_v40  ;;  %v3618_v50 = vld [vmem:[#allocation6 + $0x48] sm:$0xff] }
 0x511   : > { %v3630_v41 = vpack.c.bf16 %v3620_v4, %v3618_v50  ;;  %v4665_v50 = vld [vmem:[#allocation3 + $0xc1] ss:$2 sm:$0xff] }
 0x512   : > { %5381 = vmatprep.mubr.msk.bf16.mxu1 %vm3202_vm9, %v3628_v26  ;;  %v4123_v26 = vld [vmem:[#allocation3 + $0x49] ss:$2 sm:$0xff] }
 0x513   : > { %3377 = vrot.lane.b32.xlu1 %v3303_v11, %s5767_s28  ;;  %3412 = vrot.lane.b32.xlu0 %v3261_v57, %s5769_s16  ;;  %v4673_v4 = vld [vmem:[#allocation3 + $0x181] ss:$2 sm:$0xff] }
 0x517   : > { %3533 = vrot.lane.b32.xlu1 %v3261_v57, %s5772_s23  ;;  %3453 = vrot.lane.b32.xlu0 %v3269_v16, %s5771_s20  ;;  %v3622_v57 = vld [vmem:[#allocation6 + $0x68] sm:$0xff] }
 0x51b   : > { %3574 = vrot.lane.b32.xlu1 %v3269_v16, %s5773_s24  ;;  %3494 = vrot.lane.b32.xlu0 %v3301_v19, %s5774_s30 }
 0x51f   : > { %3535 = vrot.lane.b32.xlu0 %v3286_v37, %s5772_s23  ;;  %3332 = vrot.lane.b32.xlu1 %v3269_v16, %s5763_s17 }
 0x523   : > { %3576 = vrot.lane.b32.xlu0 %v3294_v0, %s5773_s24  ;;  %3373 = vrot.lane.b32.xlu1 %v3301_v19, %s5767_s28 }
 0x527   : > { %3334 = vrot.lane.b32.xlu0 %v3294_v0, %s5763_s17  ;;  %3418 = vrot.lane.b32.xlu1 %v3264_v45, %s5769_s16 }
 0x52b   : > { %3375 = vrot.lane.b32.xlu0 %v3302_v36, %s5767_s28  ;;  %3459 = vrot.lane.b32.xlu1 %v3272_v47, %s5771_s20 }
 0x52f   : > { %3539 = vrot.lane.b32.xlu0 %v3264_v45, %s5772_s23  ;;  %3414 = vrot.lane.b32.xlu1 %v3286_v37, %s5769_s16 }
 0x533   : > { %3580 = vrot.lane.b32.xlu0 %v3272_v47, %s5773_s24  ;;  %3455 = vrot.lane.b32.xlu1 %v3294_v0, %s5771_s20  ;;  %v4122_v47 = vld [vmem:[#allocation3 + $0x19] ss:$2 sm:$0xff] }
 0x537   : > { %3496 = vrot.lane.b32.xlu1 %v3302_v36, %s5774_s30 }
 0x53b   : > { %3500 = vrot.lane.b32.xlu1 %v3304_v35, %s5774_s30  ;;  %v3624_v35 = vld [vmem:[#allocation6 + $0x78] sm:$0xff] }
 0x53c   : > { %v3632_v23 = vpack.c.bf16 %v3624_v35, %v3622_v57 }
 0x53f   : > { %3541 = vrot.lane.b32.xlu1 %v3289_v53, %s5772_s23  ;;  %v4130_v53 = vpack.c.bf16 %v4123_v26, %v4122_v47 }
 0x543   : > { %3582 = vrot.lane.b32.xlu1 %v3297_v54, %s5773_s24  ;;  %v4125_v54 = vld [vmem:[#allocation3 + $0xa9] ss:$2 sm:$0xff] }
 0x547   : > { %3927 = vrot.lane.b32.xlu1 %v3848_v48, %s5767_s28  ;;  %v4131_v48 = vpack.c.bf16 %v4125_v54, %v4124_v25  ;;  %v5747_v54 = vld [vmem:[%s8135_s7 + $0x8] sm:$0xff]  }
 0x579   : > { %v7630_v51 = vpop.permute.xlu1 %3537  ;;  %v7632_v52 = vpop.permute.xlu0 %3416 }
 0x57d   : > { %v7634_v55 = vpop.permute.xlu1 %3578  ;;  %v3458_v56 = vpop.permute.xlu0 %3457 }
 0x581   : > { %v3337_v58 = vpop.permute.xlu1 %3336  ;;  %v3499_v59 = vpop.permute.xlu0 %3498 }
 0x582   : > { %3354 = vst.msk [vmem:[#allocation6 + $0x70] sm:$0xff] %vm3346_vm11, %v3337_v58  ;;  %v4129_v58 = vld [vmem:[#allocation3 + $0x169] ss:$2 sm:$0xff] }
 0x585   : > { %v3378_v60 = vpop.permute.xlu1 %3377  ;;  %v3413_v63 = vpop.permute.xlu0 %3412 }
 0x586   : > { %3395 = vst.msk [vmem:[#allocation6 + $0x70] sm:$0xff] %vm3387_vm13, %v3378_v60  ;;  %v4128_v60 = vld [vmem:[#allocation3 + $0x139] ss:$2 sm:$0xff] }
 0x587   : > { %3433 = vst.msk [vmem:[#allocation6 + $0x40] sm:$0xff] %vm3428_vm14, %v3413_v63  ;;  %v4133_v63 = vpack.c.bf16 %v4129_v58, %v4128_v60 }
 0x589   : > { %v3534_v7 = vpop.permute.xlu1 %3533  ;;  %v3454_v8 = vpop.permute.xlu0 %3453 }
 0x58a   : > { %3555 = vst.msk [vmem:[#allocation6 + $0x30] sm:$0xff] %vm3551_vm2, %v3534_v7 }
 0x58b   : > { %v3758_v6 = vpop.f32.mrb[8].mxu1  ;;  %3474 = vst.msk [vmem:[#allocation6 + $0x40] sm:$0xff] %vm3469_vm15, %v3454_v8  ;;  %v4368_v8 = vld [vmem:[#allocation3 + $0x7a] ss:$2 sm:$0xff] }
 0x58c   : > { %v3759_v44 = vadd.f32 %v7642_v2, %v3758_v6  ;;  %v3760_v9 = vpop.f32.mrb[9].mxu1  ;;  %v4364_v6 = vld [vmem:[#allocation3 + $0x1a] ss:$2 sm:$0xff] }
 0x58d   : > { %v3761_v1 = vpop.f32.mrb[10].mxu1  ;;  %v3575_v13 = vpop.permute.xlu1 %3574 }
 0x58e   : > { %v3789_v39 = vmax.f32 %v3759_v44, 0.0  ;;  %v3762_v10 = vadd.f32 %v7642_v2, %v3761_v1  ;;  %v3763_v12 = vpop.f32.mrb[11].mxu1  ;;  %v3495_v14 = vpop.permute.xlu0 %3494  ;;  %3596 = vst.msk [vmem:[#allocation6 + $0x30] sm:$0xff] %vm3592_vm3, %v3575_v13  ;;  %v4374_v44 = vld [vmem:[#allocation3 + $0x10a] ss:$2 sm:$0xff] }
 0x58f   : > { %3515 = vst.msk [vmem:[#allocation6 + $0x40] sm:$0xff] %vm3510_vm0, %v3495_v14  ;;  %v4972_v12 = vld [vmem:[%s8137_s9] sm:$0xf]  ;;  %v4661_v14 = vld [vmem:[#allocation3 + $0x61] ss:$2 sm:$0xff] }
 0x590   : > { %3816 = vst.msk [vmem:[#allocation5] sm:$0xff] %vm3202_vm9, %v3789_v39  ;;  %v3790_v46 = vmax.f32 %v3762_v10, 0.0  ;;  %v4372_v39 = vld [vmem:[#allocation3 + $0xda] ss:$2 sm:$0xff]  ;;  %v4378_v13 = vld [vmem:[#allocation3 + $0x16a] ss:$2 sm:$0xff] }
 0x591   : > { %v3333_v43 = vpop.permute.xlu1 %3332  ;;  %v4381_v10 = vpack.c.bf16 %v4374_v44, %v4372_v39  ;;  %v5749_v44 = vld [vmem:[%s8135_s7 + $0x18] sm:$0xff]  }
 0x592   : > { %3817 = vst.msk [vmem:[#allocation5 + $0x10] sm:$0xff] %vm3202_vm9, %v3790_v46  ;;  %v3536_v15 = vpop.permute.xlu0 %3535  ;;  %v4376_v46 = vld [vmem:[#allocation3 + $0x13a] ss:$2 sm:$0xff] }
 0x593   : > { %3352 = vst.msk [vmem:[#allocation6 + $0x50] sm:$0xff] %vm3346_vm11, %v3333_v43  ;;  %v4382_v43 = vpack.c.bf16 %v4378_v13, %v4376_v46 }
 0x594   : > { %3556 = vst.msk [vmem:[#allocation6 + $0x40] sm:$0xff] %vm3551_vm2, %v3536_v15  ;;  %v4659_v15 = vld [vmem:[#allocation3 + $0x31] ss:$2 sm:$0xff] }
 0x595   : > { %v3374_v24 = vpop.permute.xlu1 %3373  ;;  %v3615_v62 = vld [vmem:[#allocation6 + $0x30] sm:$0xff] }
 0x596   : > { %v3577_v34 = vpop.permute.xlu0 %3576  ;;  %3393 = vst.msk [vmem:[#allocation6 + $0x50] sm:$0xff] %vm3387_vm13, %v3374_v24  ;;  %v3627_v21 = vpack.c.bf16 %v3615_v62, %v3613_v61  ;;  %v4663_v24 = vld [vmem:[#allocation3 + $0x91] ss:$2 sm:$0xff]  ;;  %v4993_v62 = vsel %vm3125_vm1, %v4972_v12, 0 }
 0x597   : > { %v3832_v49 = vld [vmem:[#allocation5 + $0x1] sm:$0xff]  ;;  %3597 = vst.msk [vmem:[#allocation6 + $0x40] sm:$0xff] %vm3592_vm3, %v3577_v34  ;;  %v4675_v34 = vpack.c.bf16 %v4665_v50, %v4663_v24 }
 0x598   : > { %v3824_v18 = vld [vmem:[#allocation5] sm:$0xff]  ;;  %3873 = vrot.lane.b32.xlu0 %v3832_v49, %s5763_s17  ;;  %3765 = vmatmul.mubr.bf16.gmra.mrb[12].mxu1 %v3627_v21  ;;  %v4674_v49 = vpack.c.bf16 %v4661_v14, %v4659_v15 }
 0x599   : > { %3857 = vst.msk [vmem:[#allocation6] sm:$0xff] %vm3202_vm9, %v3824_v18  ;;  %v3833_v31 = vld [vmem:[#allocation5 + $0x11] sm:$0xff]  ;;  %v3419_v27 = vpop.permute.xlu1 %3418  ;;  %5382 = vmatprep.mubr.msk.bf16.mxu1 %vm3202_vm9, %v3630_v41  ;;  %v4667_v61 = vld [vmem:[#allocation3 + $0xf1] ss:$2 sm:$0xff] }
 0x59a   : > { %v3841_v42 = vld [vmem:[#allocation5 + $0x10] sm:$0xff]  ;;  %3875 = vrot.lane.b32.xlu1 %v3833_v31, %s5763_s17  ;;  %v3335_v28 = vpop.permute.xlu0 %3334  ;;  %3436 = vst.msk [vmem:[#allocation6 + $0x70] sm:$0xff] %vm3428_vm14, %v3419_v27  ;;  %v4671_v41 = vld [vmem:[#allocation3 + $0x151] ss:$2 sm:$0xff] }
 0x59b   : > { %3858 = vst.msk [vmem:[#allocation6 + $0x10] sm:$0xff] %vm3202_vm9, %v3841_v42  ;;  %v4669_v18 = vld [vmem:[#allocation3 + $0x121] ss:$2 sm:$0xff]  ;;  %v4953_v27 = vld [vmem:[#allocation3 + $0x32] ss:$2 sm:$0xff] }
 0x59c   : > { %3913 = vrot.lane.b32.xlu0 %v3841_v42, %s5767_s28  ;;  %3353 = vst.msk [vmem:[#allocation6 + $0x60] sm:$0xff] %vm3346_vm11, %v3335_v28  ;;  %v4676_v21 = vpack.c.bf16 %v4669_v18, %v4667_v61  ;;  %v4677_v42 = vpack.c.bf16 %v4673_v4, %v4671_v41 }
 0x59d   : > { %v3460_v29 = vpop.permute.xlu1 %3459 }
 0x59e   : > { %v3376_v5 = vpop.permute.xlu0 %3375  ;;  %3477 = vst.msk [vmem:[#allocation6 + $0x70] sm:$0xff] %vm3469_vm15, %v3460_v29  ;;  %v3617_v36 = vld [vmem:[#allocation6 + $0x40] sm:$0xff] }
 0x59f   : > { %3394 = vst.msk [vmem:[#allocation6 + $0x60] sm:$0xff] %vm3387_vm13, %v3376_v5  ;;  %v4959_v29 = vld [vmem:[#allocation3 + $0xc2] ss:$2 sm:$0xff] }
 0x5a0   : > { %3953 = vrot.lane.b32.xlu0 %v3833_v31, %s5769_s16  ;;  %3435 = vst.msk [vmem:[#allocation6 + $0x60] sm:$0xff] %vm3428_vm14, %v7632_v52  ;;  %v4404_v52 = vsel %vm3125_vm1, %v7626_v33, 0  ;;  %v4370_v33 = vld [vmem:[#allocation3 + $0xaa] ss:$2 sm:$0xff] }
 0x5a1   : > { %3476 = vst.msk [vmem:[#allocation6 + $0x60] sm:$0xff] %vm3469_vm15, %v3458_v56  ;;  %v3415_v30 = vpop.permute.xlu1 %3414  ;;  %v4678_v56 = vld [vmem:[%s8137_s9] sm:$0xf]  ;;  %v4380_v9 = vpack.c.bf16 %v4370_v33, %v4368_v8 }
 0x5a2   : > { %3517 = vst.msk [vmem:[#allocation6 + $0x60] sm:$0xff] %vm3510_vm0, %v3499_v59  ;;  %v3540_v20 = vpop.permute.xlu0 %3539  ;;  %v4366_v59 = vld [vmem:[#allocation3 + $0x4a] ss:$2 sm:$0xff]  ;;  %v4699_v1 = vsel %vm3125_vm1, %v4678_v56, 0 }
 0x5a3   : > { %3434 = vst.msk [vmem:[#allocation6 + $0x50] sm:$0xff] %vm3428_vm14, %v3415_v30  ;;  %v4379_v7 = vpack.c.bf16 %v4366_v59, %v4364_v6  ;;  %v4955_v31 = vld [vmem:[#allocation3 + $0x62] ss:$2 sm:$0xff]  ;;  %v4957_v30 = vld [vmem:[#allocation3 + $0x92] ss:$2 sm:$0xff] }
 0x5a4   : > { %3558 = vst.msk [vmem:[#allocation6 + $0x60] sm:$0xff] %vm3551_vm2, %v3540_v20  ;;  %v4968_v28 = vpack.c.bf16 %v4955_v31, %v4953_v27  ;;  %v4963_v5 = vld [vmem:[#allocation3 + $0x122] ss:$2 sm:$0xff]  ;;  %v4969_v20 = vpack.c.bf16 %v4959_v29, %v4957_v30 }
 0x5a5   : > { %v3456_v32 = vpop.permute.xlu1 %3455 }
 0x5a6   : > { %v3581_v17 = vpop.permute.xlu0 %3580  ;;  %3475 = vst.msk [vmem:[#allocation6 + $0x50] sm:$0xff] %vm3469_vm15, %v3456_v32  ;;  %v4961_v32 = vld [vmem:[#allocation3 + $0xf2] ss:$2 sm:$0xff] }
 0x5a7   : > { %3599 = vst.msk [vmem:[#allocation6 + $0x60] sm:$0xff] %vm3592_vm3, %v3581_v17  ;;  %v4970_v17 = vpack.c.bf16 %v4963_v5, %v4961_v32 }
 0x5a9   : > { %v3497_v11 = vpop.permute.xlu1 %3496 }
 0x5aa   : > { %3516 = vst.msk [vmem:[#allocation6 + $0x50] sm:$0xff] %vm3510_vm0, %v3497_v11  ;;  %v4967_v11 = vld [vmem:[#allocation3 + $0x182] ss:$2 sm:$0xff] }
 0x5ab   : > { %3557 = vst.msk [vmem:[#allocation6 + $0x50] sm:$0xff] %vm3551_vm2, %v7630_v51  ;;  %v4126_v51 = vld [vmem:[#allocation3 + $0xd9] ss:$2 sm:$0xff] }
 0x5ac   : > { %3598 = vst.msk [vmem:[#allocation6 + $0x50] sm:$0xff] %vm3592_vm3, %v7634_v55  ;;  %v4132_v55 = vpack.c.bf16 %v4127_v3, %v4126_v51 }
 0x5ad   : > { %v3501_v22 = vpop.permute.xlu1 %3500 }
 0x5ae   : > { %3518 = vst.msk [vmem:[#allocation6 + $0x70] sm:$0xff] %vm3510_vm0, %v3501_v22  ;;  %v3621_v16 = vld [vmem:[#allocation6 + $0x60] sm:$0xff] }
 0x5af   : > { %v4965_v22 = vld [vmem:[#allocation3 + $0x152] ss:$2 sm:$0xff] }
 0x5b1   : > { %v3542_v19 = vpop.permute.xlu1 %3541 }
 0x5b2   : > { %3559 = vst.msk [vmem:[#allocation6 + $0x70] sm:$0xff] %vm3551_vm2, %v3542_v19  ;;  %v4971_v19 = vpack.c.bf16 %v4967_v11, %v4965_v22 }
 0x5b3   : > { %v3619_v37 = vld [vmem:[#allocation6 + $0x50] sm:$0xff] }
 0x5b4   : > { %v3629_v38 = vpack.c.bf16 %v3619_v37, %v3617_v36 }
 0x5b5   : > { %v3583_v40 = vpop.permute.xlu1 %3582 }
 0x5b6   : > { %3600 = vst.msk [vmem:[#allocation6 + $0x70] sm:$0xff] %vm3592_vm3, %v3583_v40  ;;  %3773 = vmatmul.mubr.bf16.gmra.mrb[16].mxu1 %v3629_v38  ;;  %v5746_v40 = vld [vmem:[%s8135_s7] sm:$0xff]  }
 0x5b7   : > { %5383 = vmatprep.mubr.msk.bf16.mxu1 %vm3202_vm9, %v3632_v23  ;;  %5596 = vmatprep.subr.bf16.mxu0 %v5746_v40 }
 0x5b8   : > { %5597 = vmatpush3.bf16.msra.mxu0 %v5746_v40 }
 0x5b9   : > { %v7712_v57 = vpop.permute.xlu1 %3927  ;;  %5598 = vmatprep.subr.bf16.mxu0 %v5747_v54 }
 0x5bc   : > { %5599 = vmatpush3.bf16.msra.mxu0 %v5747_v54 }
 0x5bd   : > { %v3623_v0 = vld [vmem:[#allocation6 + $0x70] sm:$0xff] }
 0x5be   : > { %v3631_v45 = vpack.c.bf16 %v3623_v0, %v3621_v16 }
 0x5c0   : > { %3781 = vmatmul.mubr.bf16.gmra.mrb[20].mxu1 %v3631_v45 }
 0x5c1   : > { %5614 = vmatprep.mubr.msk.bf16.mxu1 %vm2493_vm12, %v4130_v53 }
 0x5c8   : > { %5615 = vmatmul.mubr.msk.bf16.vlgmr.msra.gmra.mrb[24].mxu1 %vm2493_vm12, %v4131_v48 }
 0x5c9   : > { %5618 = vmatprep.mubr.msk.bf16.mxu1 %vm2493_vm12, %v4132_v55  ;;  %5633 = vmatpush3.bf16.msra.mxu1 %v4404_v52  ;;  %v5748_v52 = vld [vmem:[%s8135_s7 + $0x10] sm:$0xff]  }
 0x5ca   : > { %5698 = vmatprep.subr.msk.bf16.mxu1 %vm3125_vm1, %v4678_v56  ;;  %5600 = vmatprep.subr.bf16.mxu0 %v5748_v52 }
 0x5cb   : > { %5601 = vmatpush3.bf16.msra.mxu0 %v5748_v52 }
 0x5cc   : > { %5602 = vmatprep.subr.bf16.mxu0 %v5749_v44 }
 0x5cf   : > { %5603 = vmatpush3.bf16.msra.mxu0 %v5749_v44 }
 0x5d0   : > { %5619 = vmatmul.mubr.msk.bf16.gmra.mrb[28].mxu1 %vm2493_vm12, %v4133_v63 }
 0x5d1   : > { %5634 = vmatprep.mubr.msk.bf16.mxu1 %vm2493_vm12, %v4379_v7 }
 0x5d8   : > { %5635 = vmatmul.mubr.msk.bf16.vlgmr.msra.gmra.mrb[32].mxu1 %vm2493_vm12, %v4380_v9 }
 0x5d9   : > { %5638 = vmatprep.mubr.msk.bf16.mxu1 %vm2493_vm12, %v4381_v10  ;;  %5653 = vmatpush3.bf16.msra.mxu1 %v4699_v1 }
 0x5da   : > { %5700 = vmatprep.subr.msk.bf16.mxu1 %vm3125_vm1, %v4972_v12 }
 0x5e0   : > { %5639 = vmatmul.mubr.msk.bf16.gmra.mrb[36].mxu1 %vm2493_vm12, %v4382_v43 }
 0x5e1   : > { %5654 = vmatprep.mubr.msk.bf16.mxu1 %vm2493_vm12, %v4674_v49  ;;  %v7756_v49 = vld [vmem:[%s8138_s10] ss:$0 sm:$0xff] }
 0x5e8   : > { %5655 = vmatmul.mubr.msk.bf16.vlgmr.msra.gmra.mrb[40].mxu1 %vm2493_vm12, %v4675_v34 }
 0x5e9   : > { %5658 = vmatprep.mubr.msk.bf16.mxu1 %vm2493_vm12, %v4676_v21  ;;  %5673 = vmatpush3.bf16.msra.mxu1 %v4993_v62 }
 0x5f0   : > { %5659 = vmatmul.mubr.msk.bf16.gmra.mrb[44].mxu1 %vm2493_vm12, %v4677_v42 }
 0x5f1   : > { %5674 = vmatprep.mubr.msk.bf16.mxu1 %vm2493_vm12, %v4968_v28 }
 0x5f8   : > { %5675 = vmatmul.mubr.msk.bf16.vlgmr.msra.gmra.mrb[48].mxu1 %vm2493_vm12, %v4969_v20 }
 0x5f9   : > { %5678 = vmatprep.mubr.msk.bf16.mxu1 %vm2493_vm12, %v4970_v17 }
 0x600   : > { %5679 = vmatmul.mubr.msk.bf16.gmra.mrb[52].mxu1 %vm2493_vm12, %v4971_v19  ;;  %v3856_v19 = vld [vmem:[#allocation5 + $0x81] sm:$0xff] }
 0x60a   : > { %v3874_v35 = vpop.permute.xlu0 %3873 }
 0x60b   : > { %3897 = vst.msk [vmem:[#allocation6] sm:$0xff] %vm3346_vm11, %v3874_v35  ;;  %v7798_v35 = vld [vmem:[%s8136_s8] ss:$0 sm:$0xff] }
 0x60c   : > { %v3876_v36 = vpop.permute.xlu1 %3875 }
 0x60d   : > { %3898 = vst.msk [vmem:[#allocation6 + $0x10] sm:$0xff] %vm3346_vm11, %v3876_v36 }
 0x60e   : > { %v3914_v37 = vpop.permute.xlu0 %3913 }
 0x60f   : > { %3937 = vst.msk [vmem:[#allocation6] sm:$0xff] %vm3387_vm13, %v3914_v37 }
 0x612   : > { %v3954_v38 = vpop.permute.xlu0 %3953 }
 0x613   : > { %3977 = vst.msk [vmem:[#allocation6] sm:$0xff] %vm3428_vm14, %v3954_v38 }
 0x66b   : > { %v3766_v23 = vpop.f32.mrb[12].mxu1 }
 0x66c   : > { %v3767_v26 = vadd.f32 %v7642_v2, %v3766_v23  ;;  %v3768_v16 = vpop.f32.mrb[13].mxu1 }
 0x66d   : > { %v3769_v0 = vpop.f32.mrb[14].mxu1 }
 0x66e   : > { %v3791_v45 = vmax.f32 %v3767_v26, 0.0  ;;  %v3770_v47 = vadd.f32 %v7642_v2, %v3769_v0  ;;  %v3771_v53 = vpop.f32.mrb[15].mxu1 }
 0x670   : > { %3818 = vst.msk [vmem:[#allocation5 + $0x20] sm:$0xff] %vm3202_vm9, %v3791_v45  ;;  %v3792_v3 = vmax.f32 %v3770_v47, 0.0 }
 0x672   : > { %3819 = vst.msk [vmem:[#allocation5 + $0x30] sm:$0xff] %vm3202_vm9, %v3792_v3 }
 0x677   : > { %v3842_v25 = vld [vmem:[#allocation5 + $0x20] sm:$0xff] }
 0x678   : > { %v3834_v48 = vld [vmem:[#allocation5 + $0x21] sm:$0xff]  ;;  %3915 = vrot.lane.b32.xlu1 %v3842_v25, %s5767_s28  ;;  %3859 = vst.msk [vmem:[#allocation6 + $0x20] sm:$0xff] %vm3202_vm9, %v3842_v25 }
 0x679   : > { %3877 = vrot.lane.b32.xlu0 %v3834_v48, %s5763_s17  ;;  %v3843_v51 = vld [vmem:[#allocation5 + $0x30] sm:$0xff] }
 0x67a   : > { %3860 = vst.msk [vmem:[#allocation6 + $0x30] sm:$0xff] %vm3202_vm9, %v3843_v51  ;;  %v3835_v55 = vld [vmem:[#allocation5 + $0x31] sm:$0xff] }
 0x67c   : > { %3955 = vrot.lane.b32.xlu1 %v3834_v48, %s5769_s16 }
 0x67d   : > { %3917 = vrot.lane.b32.xlu0 %v3843_v51, %s5767_s28 }
 0x680   : > { %3879 = vrot.lane.b32.xlu1 %v3835_v55, %s5763_s17 }
 0x681   : > { %3957 = vrot.lane.b32.xlu0 %v3835_v55, %s5769_s16 }
 0x689   : > { %v3774_v56 = vpop.f32.mrb[16].mxu1 }
 0x68a   : > { %v3775_v58 = vadd.f32 %v7642_v2, %v3774_v56  ;;  %v3776_v59 = vpop.f32.mrb[17].mxu1 }
 0x68b   : > { %v3777_v60 = vpop.f32.mrb[18].mxu1 }
 0x68c   : > { %v3793_v63 = vmax.f32 %v3775_v58, 0.0  ;;  %v3778_v6 = vadd.f32 %v7642_v2, %v3777_v60  ;;  %v3779_v7 = vpop.f32.mrb[19].mxu1 }
 0x68e   : > { %3820 = vst.msk [vmem:[#allocation5 + $0x40] sm:$0xff] %vm3202_vm9, %v3793_v63  ;;  %v3794_v33 = vmax.f32 %v3778_v6, 0.0 }
 0x690   : > { %3821 = vst.msk [vmem:[#allocation5 + $0x50] sm:$0xff] %vm3202_vm9, %v3794_v33 }
 0x693   : > { %v3782_v8 = vpop.f32.mrb[20].mxu1 }
 0x694   : > { %v3783_v9 = vadd.f32 %v7642_v2, %v3782_v8  ;;  %v3784_v39 = vpop.f32.mrb[21].mxu1 }
 0x695   : > { %v3785_v1 = vpop.f32.mrb[22].mxu1  ;;  %v3844_v10 = vld [vmem:[#allocation5 + $0x40] sm:$0xff] }
 0x696   : > { %v3836_v12 = vld [vmem:[#allocation5 + $0x41] sm:$0xff]  ;;  %v3795_v13 = vmax.f32 %v3783_v9, 0.0  ;;  %v3786_v14 = vadd.f32 %v7642_v2, %v3785_v1  ;;  %3919 = vrot.lane.b32.xlu1 %v3844_v10, %s5767_s28  ;;  %v3787_v46 = vpop.f32.mrb[23].mxu1  ;;  %3861 = vst.msk [vmem:[#allocation6 + $0x40] sm:$0xff] %vm3202_vm9, %v3844_v10 }
 0x697   : > { %3881 = vrot.lane.b32.xlu0 %v3836_v12, %s5763_s17  ;;  %v3845_v43 = vld [vmem:[#allocation5 + $0x50] sm:$0xff] }
 0x698   : > { %3822 = vst.msk [vmem:[#allocation5 + $0x60] sm:$0xff] %vm3202_vm9, %v3795_v13  ;;  %v3796_v15 = vmax.f32 %v3786_v14, 0.0  ;;  %3862 = vst.msk [vmem:[#allocation6 + $0x50] sm:$0xff] %vm3202_vm9, %v3845_v43  ;;  %v3837_v61 = vld [vmem:[#allocation5 + $0x51] sm:$0xff] }
 0x69a   : > { %3823 = vst.msk [vmem:[#allocation5 + $0x70] sm:$0xff] %vm3202_vm9, %v3796_v15  ;;  %3959 = vrot.lane.b32.xlu1 %v3836_v12, %s5769_s16 }
 0x69b   : > { %3921 = vrot.lane.b32.xlu0 %v3845_v43, %s5767_s28  ;;  %v5616_v2 = vpop.f32.mrb[24].mxu1 }
 0x69c   : > { %v7762_v50 = vadd.f32 %v5616_v2, %v7756_v49  ;;  %v4191_v18 = vpop.f32.mrb[25].mxu1 }
 0x69d   : > { %v7765_v24 = vadd.f32 %v7756_v49, %v4191_v18  ;;  %v5617_v34 = vpop.f32.mrb[26].mxu1 }
 0x69e   : > { %v7768_v62 = vadd.f32 %v5617_v34, %v7756_v49  ;;  %3883 = vrot.lane.b32.xlu1 %v3837_v61, %s5763_s17  ;;  %v4194_v21 = vpop.f32.mrb[27].mxu1 }
 0x69f   : > { %3961 = vrot.lane.b32.xlu0 %v3837_v61, %s5769_s16  ;;  %v7773_v4 = vadd.f32 %v7756_v49, %v4194_v21  ;;  %v3846_v31 = vld [vmem:[#allocation5 + $0x60] sm:$0xff] }
 0x6a0   : > { %3863 = vst.msk [vmem:[#allocation6 + $0x60] sm:$0xff] %vm3202_vm9, %v3846_v31  ;;  %v3838_v41 = vld [vmem:[#allocation5 + $0x61] sm:$0xff] }
 0x6a1   : > { %v3847_v42 = vld [vmem:[#allocation5 + $0x70] sm:$0xff] }
 0x6a2   : > { %3923 = vrot.lane.b32.xlu1 %v3846_v31, %s5767_s28  ;;  %3864 = vst.msk [vmem:[#allocation6 + $0x70] sm:$0xff] %vm3202_vm9, %v3847_v42  ;;  %v3839_v11 = vld [vmem:[#allocation5 + $0x71] sm:$0xff] }
 0x6a3   : > { %3885 = vrot.lane.b32.xlu0 %v3838_v41, %s5763_s17  ;;  %v5620_v27 = vpop.f32.mrb[28].mxu1 }
 0x6a4   : > { %v7780_v28 = vadd.f32 %v5620_v27, %v7756_v49  ;;  %v4207_v29 = vpop.f32.mrb[29].mxu1 }
 0x6a5   : > { %v7783_v5 = vadd.f32 %v7756_v49, %v4207_v29  ;;  %v5621_v30 = vpop.f32.mrb[30].mxu1 }
 0x6a6   : > { %v7786_v20 = vadd.f32 %v5621_v30, %v7756_v49  ;;  %v4210_v32 = vpop.f32.mrb[31].mxu1  ;;  %3963 = vrot.lane.b32.xlu1 %v3838_v41, %s5769_s16 }
 0x6a7   : > { %3925 = vrot.lane.b32.xlu0 %v3847_v42, %s5767_s28  ;;  %v7791_v17 = vadd.f32 %v7756_v49, %v4210_v32 }
 0x6aa   : > { %3887 = vrot.lane.b32.xlu1 %v3839_v11, %s5763_s17 }
 0x6ab   : > { %3965 = vrot.lane.b32.xlu0 %v3839_v11, %s5769_s16  ;;  %v5636_v22 = vpop.f32.mrb[32].mxu1 }
 0x6ac   : > { %v4449_v36 = vadd.f32 %v5636_v22, %v7756_v49  ;;  %v4440_v37 = vpop.f32.mrb[33].mxu1 }
 0x6ad   : > { %v5637_v38 = vpop.f32.mrb[34].mxu1  ;;  %v4441_v16 = vadd.f32 %v7756_v49, %v4440_v37 }
 0x6ae   : > { %v4452_v40 = vadd.f32 %v5637_v38, %v7756_v49  ;;  %v4443_v23 = vpop.f32.mrb[35].mxu1  ;;  %3967 = vrot.lane.b32.xlu1 %v3856_v19, %s5769_s16  ;;  %v4473_v26 = vmax.f32 %v4449_v36, 0.0  ;;  %s5776_s16 = smov 120  }
 0x6af   : > { %4352 = vrot.lane.b32.xlu0 %v7798_v35, %s5761_s15  ;;  %v4444_v45 = vadd.f32 %v7756_v49, %v4443_v23  ;;  %v4471_v53 = vmax.f32 %v4441_v16, 0.0 }
 0x6b0   : > { %v4474_v0 = vmax.f32 %v4452_v40, 0.0 }
 0x6b1   : > { %v4472_v54 = vmax.f32 %v4444_v45, 0.0 }
 0x6b2   : > { %4491 = vrot.lane.b32.xlu1 %v4473_v26, %s5761_s15 }
 0x6b3   : > { %4493 = vrot.lane.b32.xlu0 %v4474_v0, %s5761_s15  ;;  %v5640_v47 = vpop.f32.mrb[36].mxu1 }
 0x6b4   : > { %v4465_v3 = vadd.f32 %v5640_v47, %v7756_v49  ;;  %v4456_v25 = vpop.f32.mrb[37].mxu1 }
 0x6b5   : > { %v5641_v48 = vpop.f32.mrb[38].mxu1  ;;  %v4457_v56 = vadd.f32 %v7756_v49, %v4456_v25 }
 0x6b6   : > { %v4468_v51 = vadd.f32 %v5641_v48, %v7756_v49  ;;  %v4459_v52 = vpop.f32.mrb[39].mxu1  ;;  %4487 = vrot.lane.b32.xlu1 %v4471_v53, %s5761_s15  ;;  %v4477_v55 = vmax.f32 %v4465_v3, 0.0 }
 0x6b7   : > { %4489 = vrot.lane.b32.xlu0 %v4472_v54, %s5761_s15  ;;  %v4460_v59 = vadd.f32 %v7756_v49, %v4459_v52  ;;  %v4475_v63 = vmax.f32 %v4457_v56, 0.0 }
 0x6b8   : > { %v4478_v58 = vmax.f32 %v4468_v51, 0.0 }
 0x6b9   : > { %v4476_v6 = vmax.f32 %v4460_v59, 0.0 }
 0x6ba   : > { %4499 = vrot.lane.b32.xlu1 %v4477_v55, %s5761_s15 }
 0x6bb   : > { %4501 = vrot.lane.b32.xlu0 %v4478_v58, %s5761_s15  ;;  %v5656_v60 = vpop.f32.mrb[40].mxu1 }
 0x6bc   : > { %v4744_v7 = vadd.f32 %v5656_v60, %v7756_v49  ;;  %v4735_v33 = vpop.f32.mrb[41].mxu1 }
 0x6bd   : > { %v5657_v44 = vpop.f32.mrb[42].mxu1  ;;  %v4736_v39 = vadd.f32 %v7756_v49, %v4735_v33 }
 0x6be   : > { %v4738_v8 = vpop.f32.mrb[43].mxu1  ;;  %4495 = vrot.lane.b32.xlu1 %v4475_v63, %s5761_s15  ;;  %v4768_v9 = vmax.f32 %v4744_v7, 0.0  ;;  %v4747_v13 = vadd.f32 %v5657_v44, %v7756_v49 }
 0x6bf   : > { %4497 = vrot.lane.b32.xlu0 %v4476_v6, %s5761_s15  ;;  %v4739_v1 = vadd.f32 %v7756_v49, %v4738_v8  ;;  %v4766_v12 = vmax.f32 %v4736_v39, 0.0  ;;  %v3985_v6 = vld [vmem:[#allocation6] sm:$0xff]  ;;  %s8027_s15 = scalar_lea.vmem %s8141_s13, %s5462_s27 }
 0x6c0   : > { %v4769_v18 = vmax.f32 %v4747_v13, 0.0 }
 0x6c1   : > { %v4767_v14 = vmax.f32 %v4739_v1, 0.0 }
 0x6c2   : > { %4646 = vrot.lane.b32.xlu1 %v7798_v35, %s5763_s17 }
 0x6c3   : > { %4786 = vrot.lane.b32.xlu0 %v4768_v9, %s5763_s17  ;;  %v5660_v10 = vpop.f32.mrb[44].mxu1 }
 0x6c4   : > { %v4760_v46 = vadd.f32 %v5660_v10, %v7756_v49  ;;  %v4751_v43 = vpop.f32.mrb[45].mxu1 }
 0x6c5   : > { %v5661_v15 = vpop.f32.mrb[46].mxu1  ;;  %v4752_v61 = vadd.f32 %v7756_v49, %v4751_v43 }
 0x6c6   : > { %v4754_v2 = vpop.f32.mrb[47].mxu1  ;;  %4784 = vrot.lane.b32.xlu1 %v4767_v14, %s5763_s17  ;;  %v4772_v34 = vmax.f32 %v4760_v46, 0.0  ;;  %v4763_v42 = vadd.f32 %v5661_v15, %v7756_v49 }
 0x6c7   : > { %4782 = vrot.lane.b32.xlu0 %v4766_v12, %s5763_s17  ;;  %v4755_v21 = vadd.f32 %v7756_v49, %v4754_v2  ;;  %v4770_v41 = vmax.f32 %v4752_v61, 0.0 }
 0x6c8   : > { %v4773_v11 = vmax.f32 %v4763_v42, 0.0 }
 0x6c9   : > { %v4771_v27 = vmax.f32 %v4755_v21, 0.0 }
 0x6ca   : > { %4788 = vrot.lane.b32.xlu1 %v4769_v18, %s5763_s17 }
 0x6cb   : > { %4794 = vrot.lane.b32.xlu0 %v4772_v34, %s5763_s17  ;;  %v5676_v31 = vpop.f32.mrb[48].mxu1 }
 0x6cc   : > { %v5029_v29 = vpop.f32.mrb[49].mxu1  ;;  %v5038_v37 = vadd.f32 %v5676_v31, %v7756_v49 }
 0x6cd   : > { %v5677_v30 = vpop.f32.mrb[50].mxu1  ;;  %v5030_v22 = vadd.f32 %v7756_v49, %v5029_v29 }
 0x6ce   : > { %v5032_v32 = vpop.f32.mrb[51].mxu1  ;;  %4792 = vrot.lane.b32.xlu1 %v4771_v27, %s5763_s17  ;;  %v5041_v40 = vadd.f32 %v5677_v30, %v7756_v49  ;;  %v5062_v45 = vmax.f32 %v5038_v37, 0.0  ;;  %v4250_v30 = vld [vmem:[%s8139_s11] sm:$0xf] }
 0x6cf   : > { %4790 = vrot.lane.b32.xlu0 %v4770_v41, %s5763_s17  ;;  %v5033_v19 = vadd.f32 %v7756_v49, %v5032_v32  ;;  %v5060_v38 = vmax.f32 %v5030_v22, 0.0  ;;  %5695 = vmatprep.subr.msk.bf16.mxu0 %vm3125_vm1, %v4250_v30  ;;  %v7888_v32 = vld [vmem:[%s8139_s11] sm:$0xf] }
 0x6d0   : > { %v5063_v47 = vmax.f32 %v5041_v40, 0.0 }
 0x6d1   : > { %v5061_v23 = vmax.f32 %v5033_v19, 0.0 }
 0x6d2   : > { %4796 = vrot.lane.b32.xlu1 %v4773_v11, %s5763_s17 }
 0x6d3   : > { %4941 = vrot.lane.b32.xlu0 %v7798_v35, %s5765_s19  ;;  %v5680_v36 = vpop.f32.mrb[52].mxu1 }
 0x6d4   : > { %v5045_v26 = vpop.f32.mrb[53].mxu1  ;;  %v5054_v3 = vadd.f32 %v5680_v36, %v7756_v49 }
 0x6d5   : > { %v5681_v16 = vpop.f32.mrb[54].mxu1  ;;  %v5046_v53 = vadd.f32 %v7756_v49, %v5045_v26 }
 0x6d6   : > { %v5048_v0 = vpop.f32.mrb[55].mxu1  ;;  %5076 = vrot.lane.b32.xlu1 %v5060_v38, %s5765_s19  ;;  %v5057_v48 = vadd.f32 %v5681_v16, %v7756_v49  ;;  %v5066_v52 = vmax.f32 %v5054_v3, 0.0 }
 0x6d7   : > { %5078 = vrot.lane.b32.xlu0 %v5061_v23, %s5765_s19  ;;  %v5049_v54 = vadd.f32 %v7756_v49, %v5048_v0  ;;  %v5064_v25 = vmax.f32 %v5046_v53, 0.0 }
 0x6d8   : > { %v5067_v55 = vmax.f32 %v5057_v48, 0.0 }
 0x6d9   : > { %v5065_v51 = vmax.f32 %v5049_v54, 0.0 }
 0x6da   : > { %5080 = vrot.lane.b32.xlu1 %v5062_v45, %s5765_s19 }
 0x6db   : > { %5082 = vrot.lane.b32.xlu0 %v5063_v47, %s5765_s19 }
 0x6de   : > { %5084 = vrot.lane.b32.xlu1 %v5064_v25, %s5765_s19 }
 0x6df   : > { %5086 = vrot.lane.b32.xlu0 %v5065_v51, %s5765_s19 }
 0x6e2   : > { %5088 = vrot.lane.b32.xlu1 %v5066_v52, %s5765_s19 }
 0x6e3   : > { %5090 = vrot.lane.b32.xlu0 %v5067_v55, %s5765_s19  ;;  %v4224_v55 = vmax.f32 %v7762_v50, 0.0 }
 0x6ea   : > { %v3916_v56 = vpop.permute.xlu1 %3915 }
 0x6eb   : > { %v3878_v58 = vpop.permute.xlu0 %3877  ;;  %3938 = vst.msk [vmem:[#allocation6 + $0x10] sm:$0xff] %vm3387_vm13, %v3916_v56  ;;  %v4222_v56 = vmax.f32 %v7765_v24, 0.0 }
 0x6ec   : > { %3899 = vst.msk [vmem:[#allocation6 + $0x20] sm:$0xff] %vm3346_vm11, %v3878_v58  ;;  %v4225_v58 = vmax.f32 %v7768_v62, 0.0 }
 0x6ee   : > { %v3956_v59 = vpop.permute.xlu1 %3955 }
 0x6ef   : > { %v3918_v60 = vpop.permute.xlu0 %3917  ;;  %3978 = vst.msk [vmem:[#allocation6 + $0x10] sm:$0xff] %vm3428_vm14, %v3956_v59  ;;  %v4223_v59 = vmax.f32 %v7773_v4, 0.0 }
 0x6f0   : > { %3939 = vst.msk [vmem:[#allocation6 + $0x20] sm:$0xff] %vm3387_vm13, %v3918_v60 }
 0x6f2   : > { %v3880_v49 = vpop.permute.xlu1 %3879 }
 0x6f3   : > { %v3958_v63 = vpop.permute.xlu0 %3957  ;;  %3900 = vst.msk [vmem:[#allocation6 + $0x30] sm:$0xff] %vm3346_vm11, %v3880_v49 }
 0x6f4   : > { %3979 = vst.msk [vmem:[#allocation6 + $0x20] sm:$0xff] %vm3428_vm14, %v3958_v63 }
 0x6f6   : > { %v3986_v7 = vld [vmem:[#allocation6 + $0x10] sm:$0xff] }
 0x6f7   : > { %v3993_v33 = vpack.c.bf16 %v3986_v7, %v3985_v6 }
 0x6f9   : > { %5604 = vmatprep.mubr.msk.bf16.mxu0 %vm4029_vm5, %v3993_v33 }
 0x6fb   : > { %v3987_v14 = vld [vmem:[#allocation6 + $0x20] sm:$0xff] }
 0x708   : > { %v3920_v44 = vpop.permute.xlu1 %3919 }
 0x709   : > { %v3882_v8 = vpop.permute.xlu0 %3881  ;;  %3940 = vst.msk [vmem:[#allocation6 + $0x30] sm:$0xff] %vm3387_vm13, %v3920_v44 }
 0x70a   : > { %3901 = vst.msk [vmem:[#allocation6 + $0x40] sm:$0xff] %vm3346_vm11, %v3882_v8 }
 0x70c   : > { %v3960_v9 = vpop.permute.xlu1 %3959 }
 0x70d   : > { %v3922_v39 = vpop.permute.xlu0 %3921  ;;  %3980 = vst.msk [vmem:[#allocation6 + $0x30] sm:$0xff] %vm3428_vm14, %v3960_v9 }
 0x70e   : > { %3941 = vst.msk [vmem:[#allocation6 + $0x40] sm:$0xff] %vm3387_vm13, %v3922_v39 }
 0x710   : > { %v3884_v1 = vpop.permute.xlu1 %3883 }
 0x711   : > { %v3962_v10 = vpop.permute.xlu0 %3961  ;;  %3902 = vst.msk [vmem:[#allocation6 + $0x50] sm:$0xff] %vm3346_vm11, %v3884_v1 }
 0x712   : > { %3981 = vst.msk [vmem:[#allocation6 + $0x40] sm:$0xff] %vm3428_vm14, %v3962_v10 }
 0x714   : > { %v3924_v12 = vpop.permute.xlu1 %3923  ;;  %v3988_v46 = vld [vmem:[#allocation6 + $0x30] sm:$0xff] }
 0x715   : > { %v3886_v13 = vpop.permute.xlu0 %3885  ;;  %3942 = vst.msk [vmem:[#allocation6 + $0x50] sm:$0xff] %vm3387_vm13, %v3924_v12  ;;  %v3994_v43 = vpack.c.bf16 %v3988_v46, %v3987_v14 }
 0x716   : > { %3903 = vst.msk [vmem:[#allocation6 + $0x60] sm:$0xff] %vm3346_vm11, %v3886_v13 }
 0x717   : > { %5605 = vmatmul.mubr.msk.bf16.vlgmr.msra.gmra.mrb[32].mxu0 %vm4029_vm5, %v3994_v43 }
 0x718   : > { %v3964_v15 = vpop.permute.xlu1 %3963 }
 0x719   : > { %v3926_v2 = vpop.permute.xlu0 %3925  ;;  %3982 = vst.msk [vmem:[#allocation6 + $0x50] sm:$0xff] %vm3428_vm14, %v3964_v15  ;;  %v3989_v21 = vld [vmem:[#allocation6 + $0x40] sm:$0xff] }
 0x71a   : > { %3943 = vst.msk [vmem:[#allocation6 + $0x60] sm:$0xff] %vm3387_vm13, %v3926_v2 }
 0x71c   : > { %v3888_v18 = vpop.permute.xlu1 %3887 }
 0x71d   : > { %v3966_v34 = vpop.permute.xlu0 %3965  ;;  %3904 = vst.msk [vmem:[#allocation6 + $0x70] sm:$0xff] %vm3346_vm11, %v3888_v18 }
 0x71e   : > { %3983 = vst.msk [vmem:[#allocation6 + $0x60] sm:$0xff] %vm3428_vm14, %v3966_v34 }
 0x71f   : > { %3944 = vst.msk [vmem:[#allocation6 + $0x70] sm:$0xff] %vm3387_vm13, %v7712_v57  ;;  %v4271_v57 = vsel %vm3125_vm1, %v4250_v30, 0 }
 0x720   : > { %v3968_v61 = vpop.permute.xlu1 %3967  ;;  %v3990_v31 = vld [vmem:[#allocation6 + $0x50] sm:$0xff]  ;;  %5623 = vmatpush3.bf16.msra.mxu0 %v4271_v57 }
 0x721   : > { %3984 = vst.msk [vmem:[#allocation6 + $0x70] sm:$0xff] %vm3428_vm14, %v3968_v61  ;;  %v3995_v41 = vpack.c.bf16 %v3990_v31, %v3989_v21  ;;  %5697 = vmatprep.subr.msk.bf16.mxu0 %vm3125_vm1, %v7888_v32  ;;  %v7892_v11 = vpop.permute.xlu0 %4352 }
 0x723   : > { %5608 = vmatprep.mubr.msk.bf16.mxu0 %vm4029_vm5, %v3995_v41 }
 0x724   : > { %v4492_v22 = vpop.permute.xlu1 %4491 }
 0x725   : > { %v3991_v42 = vld [vmem:[#allocation6 + $0x60] sm:$0xff]  ;;  %v4494_v19 = vpop.permute.xlu0 %4493 }
 0x728   : > { %v3992_v27 = vld [vmem:[#allocation6 + $0x70] sm:$0xff]  ;;  %v4488_v36 = vpop.permute.xlu1 %4487 }
 0x729   : > { %v3996_v29 = vpack.c.bf16 %v3992_v27, %v3991_v42  ;;  %v7894_v37 = vpop.permute.xlu0 %4489 }
 0x72b   : > { %5609 = vmatmul.mubr.msk.bf16.gmra.mrb[36].mxu0 %vm4029_vm5, %v3996_v29 }
 0x72c   : > { %v7896_v38 = vpop.permute.xlu1 %4499 }
 0x72d   : > { %v7898_v40 = vpop.permute.xlu0 %4501 }
 0x730   : > { %v7900_v23 = vpop.permute.xlu1 %4495 }
 0x731   : > { %v7902_v26 = vpop.permute.xlu0 %4497 }
 0x734   : > { %v7904_v16 = vpop.permute.xlu1 %4646 }
 0x735   : > { %v4787_v0 = vpop.permute.xlu0 %4786 }
 0x738   : > { %v4785_v45 = vpop.permute.xlu1 %4784 }
 0x739   : > { %v4783_v47 = vpop.permute.xlu0 %4782 }
 0x73c   : > { %v4789_v53 = vpop.permute.xlu1 %4788 }
 0x73d   : > { %v7906_v54 = vpop.permute.xlu0 %4794 }
 0x740   : > { %v7908_v3 = vpop.permute.xlu1 %4792 }
 0x741   : > { %v7910_v25 = vpop.permute.xlu0 %4790 }
 0x744   : > { %v7912_v48 = vpop.permute.xlu1 %4796 }
 0x745   : > { %v7914_v51 = vpop.permute.xlu0 %4941 }
 0x748   : > { %v5077_v52 = vpop.permute.xlu1 %5076 }
 0x749   : > { %v5079_v49 = vpop.permute.xlu0 %5078 }
 0x74c   : > { %v5081_v8 = vpop.permute.xlu1 %5080 }
 0x7ea   : > { %v5606_v60 = vpop.f32.mrb[32].mxu0 }
 0x7eb   : > { %v4116_v63 = vadd.f32 %v5606_v60, %v7798_v35  ;;  %v4357_v6 = vadd.f32 %v5606_v60, %v7892_v11  ;;  %v4651_v7 = vadd.f32 %v5606_v60, %v7904_v16  ;;  %v4946_v33 = vadd.f32 %v5606_v60, %v7914_v51  ;;  %v4076_v44 = vpop.f32.mrb[33].mxu0 }
 0x7ec   : > { %v4114_v50 = vadd.f32 %v7798_v35, %v4076_v44  ;;  %v4355_v24 = vadd.f32 %v7892_v11, %v4076_v44  ;;  %v4649_v62 = vadd.f32 %v7904_v16, %v4076_v44  ;;  %v4944_v4 = vadd.f32 %v7914_v51, %v4076_v44  ;;  %v5607_v9 = vpop.f32.mrb[34].mxu0 }
 0x7ed   : > { %v4232_v39 = vadd.f32 %v4224_v55, %v4116_v63  ;;  %v4513_v1 = vadd.f32 %v4492_v22, %v4357_v6  ;;  %v4808_v10 = vadd.f32 %v4787_v0, %v4651_v7  ;;  %v5102_v12 = vadd.f32 %v5081_v8, %v4946_v33  ;;  %v4079_v13 = vpop.f32.mrb[35].mxu0  ;;  %v5083_v22 = vpop.permute.xlu0 %5082 }
 0x7ee   : > { %v4230_v14 = vadd.f32 %v4222_v56, %v4114_v50  ;;  %v4511_v46 = vadd.f32 %v4488_v36, %v4355_v24  ;;  %v4806_v43 = vadd.f32 %v4783_v47, %v4649_v62  ;;  %v5100_v15 = vadd.f32 %v5077_v52, %v4944_v4 }
 0x7ef   : > { %v4240_v2 = vmax.f32 %v4232_v39, 0.0  ;;  %v4521_v18 = vmax.f32 %v4513_v1, 0.0  ;;  %v4816_v34 = vmax.f32 %v4808_v10, 0.0  ;;  %v5110_v61 = vmax.f32 %v5102_v12, 0.0 }
 0x7f0   : > { %v4238_v21 = vmax.f32 %v4230_v14, 0.0  ;;  %v4519_v31 = vmax.f32 %v4511_v46, 0.0  ;;  %v4814_v41 = vmax.f32 %v4806_v43, 0.0  ;;  %v5108_v42 = vmax.f32 %v5100_v15, 0.0  ;;  %v7953_v14 = vld [vmem:[%s8139_s11] sm:$0xf] }
 0x7f1   : > { %v4117_v27 = vadd.f32 %v5607_v9, %v7798_v35  ;;  %v4358_v29 = vadd.f32 %v5607_v9, %v7892_v11  ;;  %v4652_v30 = vadd.f32 %v5607_v9, %v7904_v16  ;;  %v4947_v57 = vadd.f32 %v5607_v9, %v7914_v51 }
 0x7f2   : > { %v4115_v36 = vadd.f32 %v7798_v35, %v4079_v13  ;;  %v4356_v0 = vadd.f32 %v7892_v11, %v4079_v13  ;;  %v4650_v47 = vadd.f32 %v7904_v16, %v4079_v13  ;;  %v4945_v52 = vadd.f32 %v7914_v51, %v4079_v13 }
 0x7f3   : > { %v4233_v55 = vadd.f32 %v4225_v58, %v4117_v27  ;;  %v4514_v56 = vadd.f32 %v4494_v19, %v4358_v29  ;;  %v4809_v60 = vadd.f32 %v4789_v53, %v4652_v30  ;;  %v5103_v63 = vadd.f32 %v5083_v22, %v4947_v57 }
 0x7f4   : > { %v4231_v6 = vadd.f32 %v4223_v59, %v4115_v36  ;;  %v4512_v7 = vadd.f32 %v7894_v37, %v4356_v0  ;;  %v4807_v33 = vadd.f32 %v4785_v45, %v4650_v47  ;;  %v5101_v44 = vadd.f32 %v5079_v49, %v4945_v52  ;;  %v5085_v49 = vpop.permute.xlu1 %5084 }
 0x7f5   : > { %v4241_v8 = vmax.f32 %v4233_v55, 0.0  ;;  %v4522_v50 = vmax.f32 %v4514_v56, 0.0  ;;  %v4817_v24 = vmax.f32 %v4809_v60, 0.0  ;;  %v5111_v62 = vmax.f32 %v5103_v63, 0.0 }
 0x7f6   : > { %v4239_v4 = vmax.f32 %v4231_v6, 0.0  ;;  %v4520_v9 = vmax.f32 %v4512_v7, 0.0  ;;  %v4815_v39 = vmax.f32 %v4807_v33, 0.0  ;;  %v5109_v1 = vmax.f32 %v5101_v44, 0.0 }
 0x7f7   : > { %v4247_v10 = vpack.c.bf16 %v4241_v8, %v4240_v2  ;;  %v4528_v12 = vpack.c.bf16 %v4522_v50, %v4521_v18  ;;  %v7937_v13 = vpack.c.bf16 %v4817_v24, %v4816_v34  ;;  %v7939_v19 = vpack.c.bf16 %v5111_v62, %v5110_v61  ;;  %v5087_v18 = vpop.permute.xlu0 %5086 }
 0x7f8   : > { %v4246_v53 = vpack.c.bf16 %v4239_v4, %v4238_v21  ;;  %v4527_v58 = vpack.c.bf16 %v4520_v9, %v4519_v31  ;;  %v7941_v59 = vpack.c.bf16 %v4815_v39, %v4814_v41  ;;  %v7943_v37 = vpack.c.bf16 %v5109_v1, %v5108_v42  ;;  %v5089_v42 = vpop.permute.xlu1 %5088 }
 0x7f9   : > { %4545 = vrot.lane.b32.xlu0 %v4528_v12, %s5776_s16  ;;  %v4564_v45 = vsel %vm3125_vm1, %v7888_v32, 0  ;;  %v4228_v46 = vmax.f32 %v7780_v28, 0.0  ;;  %v4226_v32 = vmax.f32 %v7783_v5, 0.0  ;;  %v4229_v43 = vmax.f32 %v7786_v20, 0.0 }
 0x7fa   : > { %5624 = vmatprep.mubr.msk.bf16.mxu0 %vm2493_vm12, %v4246_v53  ;;  %4543 = vrot.lane.b32.xlu1 %v4527_v58, %s5776_s16  ;;  %v4227_v15 = vmax.f32 %v7791_v17, 0.0 }
 0x7fb   : > { %5625 = vmatmul.mubr.msk.bf16.vlgmr.msra.gmra.mrb[40].mxu0 %vm2493_vm12, %v4247_v10 }
 0x7fc   : > { %5643 = vmatpush3.bf16.msra.mxu0 %v4564_v45 }
 0x7fd   : > { %5699 = vmatprep.subr.msk.bf16.mxu0 %vm3125_vm1, %v7953_v14 }
 0x7fe   : > { %v5610_v2 = vpop.f32.mrb[36].mxu0 }
 0x7ff   : > { %v4120_v34 = vadd.f32 %v5610_v2, %v7798_v35  ;;  %v4361_v61 = vadd.f32 %v5610_v2, %v7892_v11  ;;  %v4655_v21 = vadd.f32 %v5610_v2, %v7904_v16  ;;  %v4950_v31 = vadd.f32 %v5610_v2, %v7914_v51  ;;  %v4092_v41 = vpop.f32.mrb[37].mxu0 }
 0x800   : > { %v4118_v28 = vadd.f32 %v7798_v35, %v4092_v41  ;;  %v4359_v5 = vadd.f32 %v7892_v11, %v4092_v41  ;;  %v4653_v20 = vadd.f32 %v7904_v16, %v4092_v41  ;;  %v4948_v17 = vadd.f32 %v7914_v51, %v4092_v41  ;;  %v5611_v27 = vpop.f32.mrb[38].mxu0 }
 0x801   : > { %v4236_v29 = vadd.f32 %v4228_v46, %v4120_v34  ;;  %v4517_v30 = vadd.f32 %v7896_v38, %v4361_v61  ;;  %v4812_v57 = vadd.f32 %v7906_v54, %v4655_v21  ;;  %v5106_v22 = vadd.f32 %v5089_v42, %v4950_v31  ;;  %v4095_v36 = vpop.f32.mrb[39].mxu0 }
 0x802   : > { %v4234_v0 = vadd.f32 %v4226_v32, %v4118_v28  ;;  %v4515_v47 = vadd.f32 %v7900_v23, %v4359_v5  ;;  %v4810_v52 = vadd.f32 %v7910_v25, %v4653_v20  ;;  %v5104_v55 = vadd.f32 %v5085_v49, %v4948_v17  ;;  %v5091_v23 = vpop.permute.xlu0 %5090 }
 0x803   : > { %v4244_v56 = vmax.f32 %v4236_v29, 0.0  ;;  %v4525_v60 = vmax.f32 %v4517_v30, 0.0  ;;  %v4820_v63 = vmax.f32 %v4812_v57, 0.0  ;;  %v5114_v6 = vmax.f32 %v5106_v22, 0.0  ;;  %v8020_v30 = vld [vmem:[%s8140_s12] ss:$0 sm:$0xff] }
 0x804   : > { %v4242_v7 = vmax.f32 %v4234_v0, 0.0  ;;  %v4523_v33 = vmax.f32 %v4515_v47, 0.0  ;;  %v4818_v44 = vmax.f32 %v4810_v52, 0.0  ;;  %v5112_v8 = vmax.f32 %v5104_v55, 0.0 }
 0x805   : > { %v4121_v38 = vadd.f32 %v5611_v27, %v7798_v35  ;;  %v4362_v54 = vadd.f32 %v5611_v27, %v7892_v11  ;;  %v4656_v50 = vadd.f32 %v5611_v27, %v7904_v16  ;;  %v4951_v24 = vadd.f32 %v5611_v27, %v7914_v51 }
 0x806   : > { %v4119_v25 = vadd.f32 %v7798_v35, %v4095_v36  ;;  %v4360_v62 = vadd.f32 %v7892_v11, %v4095_v36  ;;  %v4654_v4 = vadd.f32 %v7904_v16, %v4095_v36  ;;  %v4949_v9 = vadd.f32 %v7914_v51, %v4095_v36 }
 0x807   : > { %v4237_v39 = vadd.f32 %v4229_v43, %v4121_v38  ;;  %v4518_v1 = vadd.f32 %v7898_v40, %v4362_v54  ;;  %v4813_v10 = vadd.f32 %v7912_v48, %v4656_v50  ;;  %v5107_v12 = vadd.f32 %v5091_v23, %v4951_v24 }
 0x808   : > { %v4235_v53 = vadd.f32 %v4227_v15, %v4119_v25  ;;  %v4516_v58 = vadd.f32 %v7902_v26, %v4360_v62  ;;  %v4811_v45 = vadd.f32 %v7908_v3, %v4654_v4  ;;  %v5105_v49 = vadd.f32 %v5087_v18, %v4949_v9 }
 0x809   : > { %v4245_v46 = vmax.f32 %v4237_v39, 0.0  ;;  %v4526_v35 = vmax.f32 %v4518_v1, 0.0  ;;  %v4821_v32 = vmax.f32 %v4813_v10, 0.0  ;;  %v5115_v11 = vmax.f32 %v5107_v12, 0.0 }
 0x80a   : > { %v4243_v2 = vmax.f32 %v4235_v53, 0.0  ;;  %v4524_v16 = vmax.f32 %v4516_v58, 0.0  ;;  %v4819_v34 = vmax.f32 %v4811_v45, 0.0  ;;  %v5113_v51 = vmax.f32 %v5105_v49, 0.0 }
 0x80b   : > { %v4530_v43 = vpack.c.bf16 %v4526_v35, %v4525_v60  ;;  %v4249_v61 = vpack.c.bf16 %v4245_v46, %v4244_v56  ;;  %v4825_v40 = vpack.c.bf16 %v4821_v32, %v4820_v63  ;;  %v5119_v21 = vpack.c.bf16 %v5115_v11, %v5114_v6 }
 0x80c   : > { %v4248_v48 = vpack.c.bf16 %v4243_v2, %v4242_v7  ;;  %v4529_v31 = vpack.c.bf16 %v4524_v16, %v4523_v33  ;;  %v4824_v15 = vpack.c.bf16 %v4819_v34, %v4818_v44  ;;  %v5118_v41 = vpack.c.bf16 %v5113_v51, %v5112_v8 }
 0x80d   : > { %4549 = vrot.lane.b32.xlu0 %v4530_v43, %s5776_s16  ;;  %v4859_v3 = vsel %vm3125_vm1, %v7953_v14, 0 }
 0x80e   : > { %5628 = vmatprep.mubr.msk.bf16.mxu0 %vm2493_vm12, %v4248_v48  ;;  %4547 = vrot.lane.b32.xlu1 %v4529_v31, %s5776_s16 }
 0x80f   : > { %5629 = vmatmul.mubr.msk.bf16.gmra.mrb[44].mxu0 %vm2493_vm12, %v4249_v61 }
 0x811   : > { %4840 = vrot.lane.b32.xlu0 %v7937_v13, %s5773_s24  ;;  %v5120_v13 = vld [vmem:[%s8139_s11] sm:$0xf] }
 0x812   : > { %4838 = vrot.lane.b32.xlu1 %v7941_v59, %s5773_s24  ;;  %v5153_v14 = vsel %vm3125_vm1, %v5120_v13, 0 }
 0x815   : > { %4844 = vrot.lane.b32.xlu0 %v4825_v40, %s5773_s24 }
 0x816   : > { %4842 = vrot.lane.b32.xlu1 %v4824_v15, %s5773_s24 }
 0x819   : > { %5134 = vrot.lane.b32.xlu0 %v7939_v19, %s5777_s14 }
 0x81a   : > { %5132 = vrot.lane.b32.xlu1 %v7943_v37, %s5777_s14 }
 0x81d   : > { %5138 = vrot.lane.b32.xlu0 %v5119_v21, %s5777_s14 }
 0x81e   : > { %5136 = vrot.lane.b32.xlu1 %v5118_v41, %s5777_s14 }
 0x86b   : > { %v4546_v18 = vpop.permute.xlu0 %4545 }
 0x86c   : > { %v4544_v26 = vpop.permute.xlu1 %4543 }
 0x86d   : > { %5644 = vmatprep.mubr.msk.bf16.mxu0 %vm2493_vm12, %v4544_v26 }
 0x86e   : > { %5645 = vmatmul.mubr.msk.bf16.vlgmr.msra.gmra.mrb[48].mxu0 %vm2493_vm12, %v4546_v18 }
 0x86f   : > { %5663 = vmatpush3.bf16.msra.mxu0 %v4859_v3 }
 0x870   : > { %5701 = vmatprep.subr.msk.bf16.mxu0 %vm3125_vm1, %v5120_v13 }
 0x87f   : > { %v4550_v59 = vpop.permute.xlu0 %4549 }
 0x880   : > { %v4548_v19 = vpop.permute.xlu1 %4547 }
 0x881   : > { %5648 = vmatprep.mubr.msk.bf16.mxu0 %vm2493_vm12, %v4548_v19 }
 0x882   : > { %5649 = vmatmul.mubr.msk.bf16.gmra.mrb[52].mxu0 %vm2493_vm12, %v4550_v59 }
 0x883   : > { %v4841_v42 = vpop.permute.xlu0 %4840 }
 0x884   : > { %v4839_v37 = vpop.permute.xlu1 %4838 }
 0x885   : > { %5664 = vmatprep.mubr.msk.bf16.mxu0 %vm2493_vm12, %v4839_v37 }
 0x887   : > { %v4845_v5 = vpop.permute.xlu0 %4844 }
 0x888   : > { %v4843_v28 = vpop.permute.xlu1 %4842 }
 0x88a   : > { %5665 = vmatmul.mubr.msk.bf16.vlgmr.msra.gmra.mrb[56].mxu0 %vm2493_vm12, %v4841_v42 }
 0x88b   : > { %5683 = vmatpush3.bf16.msra.mxu0 %v5153_v14  ;;  %5668 = vmatprep.mubr.msk.bf16.mxu0 %vm2493_vm12, %v4843_v28  ;;  %v5135_v17 = vpop.permute.xlu0 %5134 }
 0x88c   : > { %v5133_v20 = vpop.permute.xlu1 %5132 }
 0x88f   : > { %v5139_v29 = vpop.permute.xlu0 %5138 }
 0x890   : > { %v5137_v27 = vpop.permute.xlu1 %5136 }
 0x892   : > { %5669 = vmatmul.mubr.msk.bf16.gmra.mrb[60].mxu0 %vm2493_vm12, %v4845_v5 }
 0x893   : > { %5684 = vmatprep.mubr.msk.bf16.mxu0 %vm2493_vm12, %v5133_v20 }
 0x89a   : > { %5685 = vmatmul.mubr.msk.bf16.vlgmr.msra.gmra.mrb[64].mxu0 %vm2493_vm12, %v5135_v17 }
 0x89b   : > { %5688 = vmatprep.mubr.msk.bf16.mxu0 %vm2493_vm12, %v5137_v27 }
 0x8a2   : > { %5689 = vmatmul.mubr.msk.bf16.gmra.mrb[68].mxu0 %vm2493_vm12, %v5139_v29 }
 0x8ce   : > { %v5626_v57 = vpop.f32.mrb[40].mxu0 }
 0x8cf   : > { %v4316_v22 = vadd.f32 %v5626_v57, %v8020_v30  ;;  %v4307_v36 = vpop.f32.mrb[41].mxu0 }
 0x8d0   : > { %v4308_v0 = vadd.f32 %v8020_v30, %v4307_v36  ;;  %v5627_v47 = vpop.f32.mrb[42].mxu0 }
 0x8d1   : > { %4340 = vst.msk [vmem:[%s8027_s15 + $0x10] sm:$0xff] %vm2493_vm12, %v4316_v22  ;;  %v4319_v52 = vadd.f32 %v5627_v47, %v8020_v30  ;;  %v4310_v55 = vpop.f32.mrb[43].mxu0 }
 0x8d2   : > { %4338 = vst.msk [vmem:[%s8027_s15] sm:$0xff] %vm2493_vm12, %v4308_v0  ;;  %v4311_v56 = vadd.f32 %v8020_v30, %v4310_v55 }
 0x8d3   : > { %4341 = vst.msk [vmem:[%s8027_s15 + $0x18] sm:$0xff] %vm2493_vm12, %v4319_v52 }
 0x8d4   : > { %4339 = vst.msk [vmem:[%s8027_s15 + $0x8] sm:$0xff] %vm2493_vm12, %v4311_v56 }
 0x8e2   : > { %v5630_v60 = vpop.f32.mrb[44].mxu0 }
 0x8e3   : > { %v4332_v63 = vadd.f32 %v5630_v60, %v8020_v30  ;;  %v4323_v6 = vpop.f32.mrb[45].mxu0 }
 0x8e4   : > { %v4324_v7 = vadd.f32 %v8020_v30, %v4323_v6  ;;  %v5631_v33 = vpop.f32.mrb[46].mxu0 }
 0x8e5   : > { %4344 = vst.msk [vmem:[%s8027_s15 + $0x30] sm:$0xff] %vm2493_vm12, %v4332_v63  ;;  %v4335_v44 = vadd.f32 %v5631_v33, %v8020_v30  ;;  %v4326_v8 = vpop.f32.mrb[47].mxu0 }
 0x8e6   : > { %4342 = vst.msk [vmem:[%s8027_s15 + $0x20] sm:$0xff] %vm2493_vm12, %v4324_v7  ;;  %v4327_v38 = vadd.f32 %v8020_v30, %v4326_v8 }
 0x8e7   : > { %4345 = vst.msk [vmem:[%s8027_s15 + $0x38] sm:$0xff] %vm2493_vm12, %v4335_v44 }
 0x8e8   : > { %4343 = vst.msk [vmem:[%s8027_s15 + $0x28] sm:$0xff] %vm2493_vm12, %v4327_v38 }
 0x941   : > { %v5646_v54 = vpop.f32.mrb[48].mxu0 }
 0x942   : > { %v4609_v50 = vadd.f32 %v5646_v54, %v8020_v30  ;;  %v4600_v24 = vpop.f32.mrb[49].mxu0 }
 0x943   : > { %v4601_v23 = vadd.f32 %v8020_v30, %v4600_v24  ;;  %v5647_v25 = vpop.f32.mrb[50].mxu0 }
 0x944   : > { %5416 = vst.msk [vmem:[%s8027_s15 + $0x50] sm:$0xff] %vm2493_vm12, %v4609_v50  ;;  %v4612_v62 = vadd.f32 %v5647_v25, %v8020_v30  ;;  %v4603_v4 = vpop.f32.mrb[51].mxu0 }
 0x945   : > { %5414 = vst.msk [vmem:[%s8027_s15 + $0x40] sm:$0xff] %vm2493_vm12, %v4601_v23  ;;  %v4604_v9 = vadd.f32 %v8020_v30, %v4603_v4 }
 0x946   : > { %5417 = vst.msk [vmem:[%s8027_s15 + $0x58] sm:$0xff] %vm2493_vm12, %v4612_v62 }
 0x947   : > { %5415 = vst.msk [vmem:[%s8027_s15 + $0x48] sm:$0xff] %vm2493_vm12, %v4604_v9 }
 0x955   : > { %v5650_v39 = vpop.f32.mrb[52].mxu0 }
 0x956   : > { %v4625_v1 = vadd.f32 %v5650_v39, %v8020_v30  ;;  %v4616_v10 = vpop.f32.mrb[53].mxu0 }
 0x957   : > { %v4617_v12 = vadd.f32 %v8020_v30, %v4616_v10  ;;  %v5651_v53 = vpop.f32.mrb[54].mxu0 }
 0x958   : > { %5420 = vst.msk [vmem:[%s8027_s15 + $0x70] sm:$0xff] %vm2493_vm12, %v4625_v1  ;;  %v4628_v58 = vadd.f32 %v5651_v53, %v8020_v30  ;;  %v4619_v45 = vpop.f32.mrb[55].mxu0 }
 0x959   : > { %5418 = vst.msk [vmem:[%s8027_s15 + $0x60] sm:$0xff] %vm2493_vm12, %v4617_v12  ;;  %v4620_v49 = vadd.f32 %v8020_v30, %v4619_v45 }
 0x95a   : > { %5421 = vst.msk [vmem:[%s8027_s15 + $0x78] sm:$0xff] %vm2493_vm12, %v4628_v58 }
 0x95b   : > { %5419 = vst.msk [vmem:[%s8027_s15 + $0x68] sm:$0xff] %vm2493_vm12, %v4620_v49 }
 0x95d   : > { %v5666_v46 = vpop.f32.mrb[56].mxu0 }
 0x95e   : > { %v4904_v35 = vadd.f32 %v5666_v46, %v8020_v30  ;;  %v4895_v32 = vpop.f32.mrb[57].mxu0 }
 0x95f   : > { %v4896_v11 = vadd.f32 %v8020_v30, %v4895_v32  ;;  %v5667_v2 = vpop.f32.mrb[58].mxu0 }
 0x960   : > { %5435 = vst.msk [vmem:[%s8027_s15 + $0x90] sm:$0xff] %vm2493_vm12, %v4904_v35  ;;  %v4907_v16 = vadd.f32 %v5667_v2, %v8020_v30  ;;  %v4898_v34 = vpop.f32.mrb[59].mxu0 }
 0x961   : > { %5433 = vst.msk [vmem:[%s8027_s15 + $0x80] sm:$0xff] %vm2493_vm12, %v4896_v11  ;;  %v4899_v51 = vadd.f32 %v8020_v30, %v4898_v34 }
 0x962   : > { %5436 = vst.msk [vmem:[%s8027_s15 + $0x98] sm:$0xff] %vm2493_vm12, %v4907_v16 }
 0x963   : > { %5434 = vst.msk [vmem:[%s8027_s15 + $0x88] sm:$0xff] %vm2493_vm12, %v4899_v51 }
 0x965   : > { %v5670_v43 = vpop.f32.mrb[60].mxu0 }
 0x966   : > { %v4920_v61 = vadd.f32 %v5670_v43, %v8020_v30  ;;  %v4911_v40 = vpop.f32.mrb[61].mxu0 }
 0x967   : > { %v4912_v21 = vadd.f32 %v8020_v30, %v4911_v40  ;;  %v5671_v48 = vpop.f32.mrb[62].mxu0 }
 0x968   : > { %5439 = vst.msk [vmem:[%s8027_s15 + $0xb0] sm:$0xff] %vm2493_vm12, %v4920_v61  ;;  %v4923_v31 = vadd.f32 %v5671_v48, %v8020_v30  ;;  %v4914_v15 = vpop.f32.mrb[63].mxu0 }
 0x969   : > { %5437 = vst.msk [vmem:[%s8027_s15 + $0xa0] sm:$0xff] %vm2493_vm12, %v4912_v21  ;;  %v4915_v41 = vadd.f32 %v8020_v30, %v4914_v15 }
 0x96a   : > { %5440 = vst.msk [vmem:[%s8027_s15 + $0xb8] sm:$0xff] %vm2493_vm12, %v4923_v31 }
 0x96b   : > { %5438 = vst.msk [vmem:[%s8027_s15 + $0xa8] sm:$0xff] %vm2493_vm12, %v4915_v41 }
 0x96d   : > { %v5686_v26 = vpop.f32.mrb[64].mxu0 }
 0x96e   : > { %v5198_v3 = vadd.f32 %v5686_v26, %v8020_v30  ;;  %v5189_v18 = vpop.f32.mrb[65].mxu0 }
 0x96f   : > { %v5190_v13 = vadd.f32 %v8020_v30, %v5189_v18  ;;  %v5687_v19 = vpop.f32.mrb[66].mxu0 }
 0x970   : > { %5454 = vst.msk [vmem:[%s8027_s15 + $0xd0] sm:$0xff] %vm2493_vm12, %v5198_v3  ;;  %v5201_v59 = vadd.f32 %v5687_v19, %v8020_v30  ;;  %v5192_v37 = vpop.f32.mrb[67].mxu0 }
 0x971   : > { %5452 = vst.msk [vmem:[%s8027_s15 + $0xc0] sm:$0xff] %vm2493_vm12, %v5190_v13  ;;  %v5193_v14 = vadd.f32 %v8020_v30, %v5192_v37 }
 0x972   : > { %5455 = vst.msk [vmem:[%s8027_s15 + $0xd8] sm:$0xff] %vm2493_vm12, %v5201_v59 }
 0x973   : > { %5453 = vst.msk [vmem:[%s8027_s15 + $0xc8] sm:$0xff] %vm2493_vm12, %v5193_v14 }
 0x975   : > { %v5690_v42 = vpop.f32.mrb[68].mxu0 }
 0x976   : > { %v5214_v28 = vadd.f32 %v5690_v42, %v8020_v30  ;;  %v5205_v5 = vpop.f32.mrb[69].mxu0 }
 0x977   : > { %v5206_v20 = vadd.f32 %v8020_v30, %v5205_v5  ;;  %v5691_v17 = vpop.f32.mrb[70].mxu0 }
 0x978   : > { %5458 = vst.msk [vmem:[%s8027_s15 + $0xf0] sm:$0xff] %vm2493_vm12, %v5214_v28  ;;  %v5217_v27 = vadd.f32 %v5691_v17, %v8020_v30  ;;  %v5208_v29 = vpop.f32.mrb[71].mxu0 }
 0x979   : > { %5456 = vst.msk [vmem:[%s8027_s15 + $0xe0] sm:$0xff] %vm2493_vm12, %v5206_v20  ;;  %v5209_v57 = vadd.f32 %v8020_v30, %v5208_v29 }
 0x97a   : > { %5459 = vst.msk [vmem:[%s8027_s15 + $0xf8] sm:$0xff] %vm2493_vm12, %v5217_v27 }
 0x97b   : > { %5457 = vst.msk [vmem:[%s8027_s15 + $0xe8] sm:$0xff] %vm2493_vm12, %v5209_v57 }
 0x97c PF: > { %s23_s25 = sadd.s32 1, %s5757_s25  }
 0x97d   : > { %p20_p4 = scmp.ge.s32.totalorder %s23_s25, 4  }
 0x97f   :  { %22 = sbr.rel (!%p20_p4) target bundleno = 1 (0x1), region = 185 }

</bundles_post_ra>
